<compile_context>
chip_gen: v7x
topology: tpu7x:2x2x1
jax: 0.10.0
libtpu: 0.0.40
codegen_flags: <defaults>
</compile_context>

<pallas_src>
import functools

import jax
import jax.numpy as jnp
from jax.experimental import pallas as pl
from jax.experimental.pallas import tpu as pltpu


# ----------------------------- Pallas kernel --------------------------------

def _basic_block_kernel(*refs, stride, has_proj, ho, wo):
    """Fused BasicBlock for one image: conv1+bn1+relu, conv2+bn2, +shortcut, relu."""
    if has_proj:
        (x_ref, w1_ref, b1_ref, w2_ref, b2_ref, ws_ref, bs_ref,
         o_ref, y1p_ref) = refs
    else:
        x_ref, w1_ref, b1_ref, w2_ref, b2_ref, o_ref, y1p_ref = refs
        ws_ref = bs_ref = None

    s = stride
    m = ho * wo
    cin = x_ref.shape[-1]
    cout = o_ref.shape[-1]
    taps = [(dy, dx) for dy in range(3) for dx in range(3)]

    def x_window(dy, dx):
        # (ho, wo, cin) input window for conv tap (dy, dx): polyphase slab
        # (dy % s, dx % s) shifted by (dy // s, dx // s) -- unstrided slice.
        ph = (dy % s) * s + (dx % s)
        return x_ref[ph, dy // s:dy // s + ho, dx // s:dx // s + wo, :]

    # ---- conv1 (3x3, stride s) + bn1 + relu: 9 shifted matmuls, f32 acc ----
    acc = jnp.zeros((m, cout), jnp.float32)
    for t, (dy, dx) in enumerate(taps):
        p = x_window(dy, dx).reshape(m, cin)
        acc = acc + jnp.dot(p, w1_ref[t], preferred_element_type=jnp.float32)
    y1 = jnp.maximum(acc + b1_ref[...], 0.0).astype(jnp.bfloat16)

    # ---- zero-pad y1 into VMEM scratch (never touches HBM) for conv2 ----
    y1p_ref[...] = jnp.zeros_like(y1p_ref)
    y1p_ref[1:ho + 1, 1:wo + 1, :] = y1.reshape(ho, wo, cout)

    # ---- conv2 (3x3, stride 1) + bn2 ----
    acc2 = jnp.zeros((m, cout), jnp.float32)
    for t, (dy, dx) in enumerate(taps):
        p = y1p_ref[dy:dy + ho, dx:dx + wo, :].reshape(m, cout)
        acc2 = acc2 + jnp.dot(p, w2_ref[t], preferred_element_type=jnp.float32)
    out = acc2 + b2_ref[...]

    # ---- shortcut: fused 1x1 projection matmul, or the identity window ----
    ctr = x_window(1, 1).reshape(m, cin)      # == x subsampled at the stride
    if has_proj:
        res = (jnp.dot(ctr, ws_ref[...], preferred_element_type=jnp.float32)
               + bs_ref[...])
    else:
        res = ctr.astype(jnp.float32)
    out = jnp.maximum(out + res, 0.0)
    o_ref[...] = out.astype(o_ref.dtype)[None]


# ------------------------------- JAX glue -----------------------------------

def _bn_scale_shift(bn, eps=1e-5):
    scale = bn["gamma"] / jnp.sqrt(bn["var"] + eps)
    shift = bn["beta"] - bn["mean"] * scale
    return scale, shift.astype(jnp.float32).reshape(1, -1)


def _w_to_taps(w_oihw, scale):
    """PyTorch OIHW 3x3 conv weight -> (9, Cin, Cout) bf16 with BN scale folded."""
    cout, cin, kh, kw = w_oihw.shape
    w = jnp.transpose(w_oihw, (2, 3, 1, 0)).reshape(kh * kw, cin, cout)
    return (w * scale[None, None, :]).astype(jnp.bfloat16)


def _polyphase(xp, s):
    """(B, Hp, Wp, C) padded NHWC -> (B*s*s, Hp//s, Wp//s, C) polyphase slabs."""
    B, Hp, Wp, C = xp.shape
    x6 = xp.reshape(B, Hp // s, s, Wp // s, s, C)
    return jnp.transpose(x6, (0, 2, 4, 1, 3, 5)).reshape(B * s * s, Hp // s,
                                                         Wp // s, C)


def basic_block_nhwc(x, params, stride, out_dtype=jnp.float32):
    """ResNet BasicBlock forward, NHWC in / NHWC out (BatchNorm in eval mode)."""
    B, H, W, Cin = x.shape
    Cout = params["conv1_w"].shape[0]
    s, kh, kw, pad = stride, 3, 3, 1
    Ho = (H + 2 * pad - kh) // s + 1
    Wo = (W + 2 * pad - kw) // s + 1
    has_proj = "sc_w" in params
    if not has_proj:
        assert s == 1 and Cin == Cout, (
            "identity shortcut requires stride == 1 and Cin == Cout")

    # Halo-pad once in bf16, then polyphase-split so every in-kernel conv
    # window is a plain unstrided slice (for s == 1 this is a no-op reshape).
    Hn = s * ((kh - 1) // s + Ho)      # rows the phase view needs (>= all taps)
    Wn = s * ((kw - 1) // s + Wo)
    xp = jnp.pad(x.astype(jnp.bfloat16),
                 ((0, 0), (pad, max(pad, Hn - H - pad)),
                  (pad, max(pad, Wn - W - pad)), (0, 0)))[:, :Hn, :Wn, :]
    xph = _polyphase(xp, s)
    Hs, Ws = Hn // s, Wn // s

    s1, b1 = _bn_scale_shift(params["bn1"])
    w1 = _w_to_taps(params["conv1_w"], s1)
    s2, b2 = _bn_scale_shift(params["bn2"])
    w2 = _w_to_taps(params["conv2_w"], s2)

    in_specs = [
        pl.BlockSpec((s * s, Hs, Ws, Cin), lambda b: (b, 0, 0, 0)),
        pl.BlockSpec((9, Cin, Cout), lambda b: (0, 0, 0)),
        pl.BlockSpec((1, Cout), lambda b: (0, 0)),
        pl.BlockSpec((9, Cout, Cout), lambda b: (0, 0, 0)),
        pl.BlockSpec((1, Cout), lambda b: (0, 0)),
    ]
    args = [xph, w1, b1, w2, b2]
    if has_proj:
        ss, bs = _bn_scale_shift(params["bn_sc"])
        ws = (jnp.transpose(params["sc_w"], (2, 3, 1, 0)).reshape(Cin, Cout)
              * ss[None, :]).astype(jnp.bfloat16)
        in_specs += [pl.BlockSpec((Cin, Cout), lambda b: (0, 0)),
                     pl.BlockSpec((1, Cout), lambda b: (0, 0))]
        args += [ws, bs]

    M = Ho * Wo
    flops = 2 * B * M * (9 * Cin * Cout + 9 * Cout * Cout
                         + (Cin * Cout if has_proj else 0))
    bytes_accessed = (xph.size * 2 + w1.size * 2 + w2.size * 2
                      + (Cin * Cout * 2 if has_proj else 0)
                      + B * M * Cout * jnp.dtype(out_dtype).itemsize)

    # TODO(synk): for very large feature maps, tile over output rows with a
    # manual halo DMA instead of whole-image blocks (all ResNet34 BasicBlock
    # shapes fit comfortably in VMEM, so whole-image blocking is used here).
    out = pl.pallas_call(
        functools.partial(_basic_block_kernel, stride=s, has_proj=has_proj,
                          ho=Ho, wo=Wo),
        grid=(B,),                               # B >= 2 parallel blocks keeps
        in_specs=in_specs,                       # both v7x TensorCores busy
        out_specs=pl.BlockSpec((1, M, Cout), lambda b: (b, 0, 0)),
        out_shape=jax.ShapeDtypeStruct((B, M, Cout), out_dtype),
        scratch_shapes=[pltpu.VMEM((Ho + 2, Wo + 2, Cout), jnp.bfloat16)],
        compiler_params=pltpu.CompilerParams(
            dimension_semantics=("parallel",),
            vmem_limit_bytes=32 * 1024 * 1024),  # explicit, safe on v5e/v6e/v7x
        cost_estimate=pl.CostEstimate(flops=int(flops), transcendentals=0,
                                      bytes_accessed=int(bytes_accessed)),
    )(*args)
    return out.reshape(B, Ho, Wo, Cout)


def basic_block_forward(x_nchw, params, stride):
    """NCHW wrapper matching the PyTorch module interface."""
    x = jnp.transpose(x_nchw, (0, 2, 3, 1))
    y = basic_block_nhwc(x, params, stride)
    return jnp.transpose(y, (0, 3, 1, 2))


# ----------------------- deterministic parameter init -----------------------

def _init_bn(key, c):
    k1, k2, k3, k4 = jax.random.split(key, 4)
    return {
        "gamma": jax.random.uniform(k1, (c,), jnp.float32, 0.5, 1.5),
        "beta": jax.random.normal(k2, (c,), jnp.float32) * 0.1,
        "mean": jax.random.normal(k3, (c,), jnp.float32) * 0.1,
        "var": jax.random.uniform(k4, (c,), jnp.float32, 0.5, 1.5),
    }


def init_basic_block_params(key, cin, cout, stride):
    ks = jax.random.split(key, 6)
    p = {
        "conv1_w": jax.random.normal(ks[0], (cout, cin, 3, 3), jnp.float32) * 0.1,
        "bn1": _init_bn(ks[1], cout),
        "conv2_w": jax.random.normal(ks[2], (cout, cout, 3, 3), jnp.float32) * 0.1,
        "bn2": _init_bn(ks[3], cout),
    }
    if stride != 1 or cin != cout:
        p["sc_w"] = jax.random.normal(ks[4], (cout, cin, 1, 1), jnp.float32) * 0.1
        p["bn_sc"] = _init_bn(ks[5], cout)
    return p


# ----------------------------- pure-JAX reference ---------------------------

def _ref_basic_block(x, params, stride, eps=1e-5):
    def bn(y, p):
        scale = p["gamma"] / jnp.sqrt(p["var"] + eps)
        shift = p["beta"] - p["mean"] * scale
        return y * scale[None, :, None, None] + shift[None, :, None, None]

    def conv(x, w, s, pad):
        return jax.lax.conv_general_dilated(
            x, w, (s, s), [(pad, pad), (pad, pad)],
            dimension_numbers=("NCHW", "OIHW", "NCHW"))

    out = jax.nn.relu(bn(conv(x, params["conv1_w"], stride, 1), params["bn1"]))
    out = bn(conv(out, params["conv2_w"], 1, 1), params["bn2"])
    if "sc_w" in params:
        sc = bn(conv(x, params["sc_w"], stride, 0), params["bn_sc"])
    else:
        sc = x
    return jax.nn.relu(out + sc)


# ----------------------------------- main ------------------------------------

if __name__ == "__main__":
    key = jax.random.PRNGKey(0)
    kx, k1, k2 = jax.random.split(key, 3)

    B, Cin, H, W = 2, 4, 16, 16
    Cout = 8
    x = jax.random.normal(kx, (B, Cin, H, W), jnp.float32)

    # Block 1: stride=2, channel change -> projection (1x1 conv + BN) shortcut.
    params1 = init_basic_block_params(k1, Cin, Cout, stride=2)
    # Block 2: stride=1, same channels -> identity shortcut.
    params2 = init_basic_block_params(k2, Cout, Cout, stride=1)

    @jax.jit
    def run_two_blocks(x_nchw, p1, p2):
        # Stay in NHWC across the whole chain: one transpose in, one out.
        xh = jnp.transpose(x_nchw, (0, 2, 3, 1))
        y1h = basic_block_nhwc(xh, p1, 2)
        y2h = basic_block_nhwc(y1h, p2, 1)
        return (jnp.transpose(y1h, (0, 3, 1, 2)),
                jnp.transpose(y2h, (0, 3, 1, 2)))

    y1, y2 = run_two_blocks(x, params1, params2)
    y2 = jax.block_until_ready(y2)

    # Validate against the pure-f32 JAX reference of the PyTorch module.
    # (kernel uses bf16 MXU inputs with f32 accumulation -> loosened tolerance)
    r1 = _ref_basic_block(x, params1, stride=2)
    r2 = _ref_basic_block(r1, params2, stride=1)

    assert y1.shape == (B, Cout, H // 2, W // 2)
    assert y2.shape == (B, Cout, H // 2, W // 2)
    assert jnp.allclose(y1, r1, rtol=5e-2, atol=5e-2)
    assert jnp.allclose(y2, r2, rtol=5e-2, atol=5e-2)

    print("KERNEL_OK")
</pallas_src>

<mosaic_0001>
module attributes {stable_mosaic.version = 11 : i64} {
  func.func @_basic_block_kernel(%arg0: i32, %arg1: memref<4x9x9x4xbf16, #tpu.memory_space<vmem>>, %arg2: memref<9x4x8xbf16, #tpu.memory_space<vmem>>, %arg3: memref<1x8xf32, #tpu.memory_space<vmem>>, %arg4: memref<9x8x8xbf16, #tpu.memory_space<vmem>>, %arg5: memref<1x8xf32, #tpu.memory_space<vmem>>, %arg6: memref<4x8xbf16, #tpu.memory_space<vmem>>, %arg7: memref<1x8xf32, #tpu.memory_space<vmem>>, %arg8: memref<1x64x8xf32, #tpu.memory_space<vmem>>, %arg9: memref<10x10x8xbf16, #tpu.memory_space<vmem>>) attributes {dimension_semantics = [#tpu.dimension_semantics<parallel>], iteration_bounds = array<i64: 2>, scalar_prefetch = 0 : i64, scratch_operands = 1 : i64, tpu.core_type = #tpu.core_type<tc>, window_params = [{transform_indices = @transform_0, window_bounds = array<i64: 4, 9, 9, 4>}, {pipeline_mode = #tpu.pipeline_mode<synchronous>, transform_indices = @transform_1, window_bounds = array<i64: 9, 4, 8>}, {pipeline_mode = #tpu.pipeline_mode<synchronous>, transform_indices = @transform_2, window_bounds = array<i64: 1, 8>}, {pipeline_mode = #tpu.pipeline_mode<synchronous>, transform_indices = @transform_3, window_bounds = array<i64: 9, 8, 8>}, {pipeline_mode = #tpu.pipeline_mode<synchronous>, transform_indices = @transform_4, window_bounds = array<i64: 1, 8>}, {pipeline_mode = #tpu.pipeline_mode<synchronous>, transform_indices = @transform_5, window_bounds = array<i64: 4, 8>}, {pipeline_mode = #tpu.pipeline_mode<synchronous>, transform_indices = @transform_6, window_bounds = array<i64: 1, 8>}, {transform_indices = @transform_7, window_bounds = array<i64: 1, 64, 8>}]} {
    %cst = arith.constant 0.000000e+00 : f32
    %0 = vector.broadcast %cst : f32 to vector<64x8xf32>
    %c0 = arith.constant 0 : index
    %c0_0 = arith.constant 0 : index
    %c0_1 = arith.constant 0 : index
    %c0_2 = arith.constant 0 : index
    %1 = vector.load %arg1[%c0, %c0_0, %c0_1, %c0_2] : memref<4x9x9x4xbf16, #tpu.memory_space<vmem>>, vector<1x8x8x4xbf16>
    %2 = vector.shape_cast %1 : vector<1x8x8x4xbf16> to vector<8x8x4xbf16>
    %3 = vector.shape_cast %2 : vector<8x8x4xbf16> to vector<64x4xbf16>
    %c0_3 = arith.constant 0 : index
    %c0_4 = arith.constant 0 : index
    %c0_5 = arith.constant 0 : index
    %4 = vector.load %arg2[%c0_3, %c0_4, %c0_5] : memref<9x4x8xbf16, #tpu.memory_space<vmem>>, vector<1x4x8xbf16>
    %5 = vector.shape_cast %4 : vector<1x4x8xbf16> to vector<4x8xbf16>
    %cst_6 = arith.constant dense<0.000000e+00> : vector<64x8xf32>
    %6 = tpu.matmul %3, %5, %cst_6 {dimension_numbers = #tpu.dot_dimension_numbers<[1], [0], [0], [1], [0, 0, 1, 1], [], []>} : vector<64x4xbf16>, vector<4x8xbf16>, vector<64x8xf32> -> vector<64x8xf32>
    %7 = arith.addf %0, %6 : vector<64x8xf32>
    %c1 = arith.constant 1 : index
    %c0_7 = arith.constant 0 : index
    %c0_8 = arith.constant 0 : index
    %c0_9 = arith.constant 0 : index
    %8 = vector.load %arg1[%c1, %c0_7, %c0_8, %c0_9] : memref<4x9x9x4xbf16, #tpu.memory_space<vmem>>, vector<1x8x8x4xbf16>
    %9 = vector.shape_cast %8 : vector<1x8x8x4xbf16> to vector<8x8x4xbf16>
    %10 = vector.shape_cast %9 : vector<8x8x4xbf16> to vector<64x4xbf16>
    %c1_10 = arith.constant 1 : index
    %c0_11 = arith.constant 0 : index
    %c0_12 = arith.constant 0 : index
    %11 = vector.load %arg2[%c1_10, %c0_11, %c0_12] : memref<9x4x8xbf16, #tpu.memory_space<vmem>>, vector<1x4x8xbf16>
    %12 = vector.shape_cast %11 : vector<1x4x8xbf16> to vector<4x8xbf16>
    %cst_13 = arith.constant dense<0.000000e+00> : vector<64x8xf32>
    %13 = tpu.matmul %10, %12, %cst_13 {dimension_numbers = #tpu.dot_dimension_numbers<[1], [0], [0], [1], [0, 0, 1, 1], [], []>} : vector<64x4xbf16>, vector<4x8xbf16>, vector<64x8xf32> -> vector<64x8xf32>
    %14 = arith.addf %7, %13 : vector<64x8xf32>
    %c0_14 = arith.constant 0 : index
    %c0_15 = arith.constant 0 : index
    %c1_16 = arith.constant 1 : index
    %c0_17 = arith.constant 0 : index
    %15 = vector.load %arg1[%c0_14, %c0_15, %c1_16, %c0_17] : memref<4x9x9x4xbf16, #tpu.memory_space<vmem>>, vector<1x8x8x4xbf16>
    %16 = vector.shape_cast %15 : vector<1x8x8x4xbf16> to vector<8x8x4xbf16>
    %17 = vector.shape_cast %16 : vector<8x8x4xbf16> to vector<64x4xbf16>
    %c2 = arith.constant 2 : index
    %c0_18 = arith.constant 0 : index
    %c0_19 = arith.constant 0 : index
    %18 = vector.load %arg2[%c2, %c0_18, %c0_19] : memref<9x4x8xbf16, #tpu.memory_space<vmem>>, vector<1x4x8xbf16>
    %19 = vector.shape_cast %18 : vector<1x4x8xbf16> to vector<4x8xbf16>
    %cst_20 = arith.constant dense<0.000000e+00> : vector<64x8xf32>
    %20 = tpu.matmul %17, %19, %cst_20 {dimension_numbers = #tpu.dot_dimension_numbers<[1], [0], [0], [1], [0, 0, 1, 1], [], []>} : vector<64x4xbf16>, vector<4x8xbf16>, vector<64x8xf32> -> vector<64x8xf32>
    %21 = arith.addf %14, %20 : vector<64x8xf32>
    %c2_21 = arith.constant 2 : index
    %c0_22 = arith.constant 0 : index
    %c0_23 = arith.constant 0 : index
    %c0_24 = arith.constant 0 : index
    %22 = vector.load %arg1[%c2_21, %c0_22, %c0_23, %c0_24] : memref<4x9x9x4xbf16, #tpu.memory_space<vmem>>, vector<1x8x8x4xbf16>
    %23 = vector.shape_cast %22 : vector<1x8x8x4xbf16> to vector<8x8x4xbf16>
    %24 = vector.shape_cast %23 : vector<8x8x4xbf16> to vector<64x4xbf16>
    %c3 = arith.constant 3 : index
    %c0_25 = arith.constant 0 : index
    %c0_26 = arith.constant 0 : index
    %25 = vector.load %arg2[%c3, %c0_25, %c0_26] : memref<9x4x8xbf16, #tpu.memory_space<vmem>>, vector<1x4x8xbf16>
    %26 = vector.shape_cast %25 : vector<1x4x8xbf16> to vector<4x8xbf16>
    %cst_27 = arith.constant dense<0.000000e+00> : vector<64x8xf32>
    %27 = tpu.matmul %24, %26, %cst_27 {dimension_numbers = #tpu.dot_dimension_numbers<[1], [0], [0], [1], [0, 0, 1, 1], [], []>} : vector<64x4xbf16>, vector<4x8xbf16>, vector<64x8xf32> -> vector<64x8xf32>
    %28 = arith.addf %21, %27 : vector<64x8xf32>
    %c3_28 = arith.constant 3 : index
    %c0_29 = arith.constant 0 : index
    %c0_30 = arith.constant 0 : index
    %c0_31 = arith.constant 0 : index
    %29 = vector.load %arg1[%c3_28, %c0_29, %c0_30, %c0_31] : memref<4x9x9x4xbf16, #tpu.memory_space<vmem>>, vector<1x8x8x4xbf16>
    %30 = vector.shape_cast %29 : vector<1x8x8x4xbf16> to vector<8x8x4xbf16>
    %31 = vector.shape_cast %30 : vector<8x8x4xbf16> to vector<64x4xbf16>
    %c4 = arith.constant 4 : index
    %c0_32 = arith.constant 0 : index
    %c0_33 = arith.constant 0 : index
    %32 = vector.load %arg2[%c4, %c0_32, %c0_33] : memref<9x4x8xbf16, #tpu.memory_space<vmem>>, vector<1x4x8xbf16>
    %33 = vector.shape_cast %32 : vector<1x4x8xbf16> to vector<4x8xbf16>
    %cst_34 = arith.constant dense<0.000000e+00> : vector<64x8xf32>
    %34 = tpu.matmul %31, %33, %cst_34 {dimension_numbers = #tpu.dot_dimension_numbers<[1], [0], [0], [1], [0, 0, 1, 1], [], []>} : vector<64x4xbf16>, vector<4x8xbf16>, vector<64x8xf32> -> vector<64x8xf32>
    %35 = arith.addf %28, %34 : vector<64x8xf32>
    %c2_35 = arith.constant 2 : index
    %c0_36 = arith.constant 0 : index
    %c1_37 = arith.constant 1 : index
    %c0_38 = arith.constant 0 : index
    %36 = vector.load %arg1[%c2_35, %c0_36, %c1_37, %c0_38] : memref<4x9x9x4xbf16, #tpu.memory_space<vmem>>, vector<1x8x8x4xbf16>
    %37 = vector.shape_cast %36 : vector<1x8x8x4xbf16> to vector<8x8x4xbf16>
    %38 = vector.shape_cast %37 : vector<8x8x4xbf16> to vector<64x4xbf16>
    %c5 = arith.constant 5 : index
    %c0_39 = arith.constant 0 : index
    %c0_40 = arith.constant 0 : index
    %39 = vector.load %arg2[%c5, %c0_39, %c0_40] : memref<9x4x8xbf16, #tpu.memory_space<vmem>>, vector<1x4x8xbf16>
    %40 = vector.shape_cast %39 : vector<1x4x8xbf16> to vector<4x8xbf16>
    %cst_41 = arith.constant dense<0.000000e+00> : vector<64x8xf32>
    %41 = tpu.matmul %38, %40, %cst_41 {dimension_numbers = #tpu.dot_dimension_numbers<[1], [0], [0], [1], [0, 0, 1, 1], [], []>} : vector<64x4xbf16>, vector<4x8xbf16>, vector<64x8xf32> -> vector<64x8xf32>
    %42 = arith.addf %35, %41 : vector<64x8xf32>
    %c0_42 = arith.constant 0 : index
    %c1_43 = arith.constant 1 : index
    %c0_44 = arith.constant 0 : index
    %c0_45 = arith.constant 0 : index
    %43 = vector.load %arg1[%c0_42, %c1_43, %c0_44, %c0_45] : memref<4x9x9x4xbf16, #tpu.memory_space<vmem>>, vector<1x8x8x4xbf16>
    %44 = vector.shape_cast %43 : vector<1x8x8x4xbf16> to vector<8x8x4xbf16>
    %45 = vector.shape_cast %44 : vector<8x8x4xbf16> to vector<64x4xbf16>
    %c6 = arith.constant 6 : index
    %c0_46 = arith.constant 0 : index
    %c0_47 = arith.constant 0 : index
    %46 = vector.load %arg2[%c6, %c0_46, %c0_47] : memref<9x4x8xbf16, #tpu.memory_space<vmem>>, vector<1x4x8xbf16>
    %47 = vector.shape_cast %46 : vector<1x4x8xbf16> to vector<4x8xbf16>
    %cst_48 = arith.constant dense<0.000000e+00> : vector<64x8xf32>
    %48 = tpu.matmul %45, %47, %cst_48 {dimension_numbers = #tpu.dot_dimension_numbers<[1], [0], [0], [1], [0, 0, 1, 1], [], []>} : vector<64x4xbf16>, vector<4x8xbf16>, vector<64x8xf32> -> vector<64x8xf32>
    %49 = arith.addf %42, %48 : vector<64x8xf32>
    %c1_49 = arith.constant 1 : index
    %c1_50 = arith.constant 1 : index
    %c0_51 = arith.constant 0 : index
    %c0_52 = arith.constant 0 : index
    %50 = vector.load %arg1[%c1_49, %c1_50, %c0_51, %c0_52] : memref<4x9x9x4xbf16, #tpu.memory_space<vmem>>, vector<1x8x8x4xbf16>
    %51 = vector.shape_cast %50 : vector<1x8x8x4xbf16> to vector<8x8x4xbf16>
    %52 = vector.shape_cast %51 : vector<8x8x4xbf16> to vector<64x4xbf16>
    %c7 = arith.constant 7 : index
    %c0_53 = arith.constant 0 : index
    %c0_54 = arith.constant 0 : index
    %53 = vector.load %arg2[%c7, %c0_53, %c0_54] : memref<9x4x8xbf16, #tpu.memory_space<vmem>>, vector<1x4x8xbf16>
    %54 = vector.shape_cast %53 : vector<1x4x8xbf16> to vector<4x8xbf16>
    %cst_55 = arith.constant dense<0.000000e+00> : vector<64x8xf32>
    %55 = tpu.matmul %52, %54, %cst_55 {dimension_numbers = #tpu.dot_dimension_numbers<[1], [0], [0], [1], [0, 0, 1, 1], [], []>} : vector<64x4xbf16>, vector<4x8xbf16>, vector<64x8xf32> -> vector<64x8xf32>
    %56 = arith.addf %49, %55 : vector<64x8xf32>
    %c0_56 = arith.constant 0 : index
    %c1_57 = arith.constant 1 : index
    %c1_58 = arith.constant 1 : index
    %c0_59 = arith.constant 0 : index
    %57 = vector.load %arg1[%c0_56, %c1_57, %c1_58, %c0_59] : memref<4x9x9x4xbf16, #tpu.memory_space<vmem>>, vector<1x8x8x4xbf16>
    %58 = vector.shape_cast %57 : vector<1x8x8x4xbf16> to vector<8x8x4xbf16>
    %59 = vector.shape_cast %58 : vector<8x8x4xbf16> to vector<64x4xbf16>
    %c8 = arith.constant 8 : index
    %c0_60 = arith.constant 0 : index
    %c0_61 = arith.constant 0 : index
    %60 = vector.load %arg2[%c8, %c0_60, %c0_61] : memref<9x4x8xbf16, #tpu.memory_space<vmem>>, vector<1x4x8xbf16>
    %61 = vector.shape_cast %60 : vector<1x4x8xbf16> to vector<4x8xbf16>
    %cst_62 = arith.constant dense<0.000000e+00> : vector<64x8xf32>
    %62 = tpu.matmul %59, %61, %cst_62 {dimension_numbers = #tpu.dot_dimension_numbers<[1], [0], [0], [1], [0, 0, 1, 1], [], []>} : vector<64x4xbf16>, vector<4x8xbf16>, vector<64x8xf32> -> vector<64x8xf32>
    %63 = arith.addf %56, %62 : vector<64x8xf32>
    %c0_63 = arith.constant 0 : index
    %c0_64 = arith.constant 0 : index
    %64 = vector.load %arg3[%c0_63, %c0_64] : memref<1x8xf32, #tpu.memory_space<vmem>>, vector<1x8xf32>
    %65 = vector.broadcast %64 : vector<1x8xf32> to vector<64x8xf32>
    %66 = arith.addf %63, %65 : vector<64x8xf32>
    %cst_65 = arith.constant 0.000000e+00 : f32
    %67 = vector.broadcast %cst_65 : f32 to vector<64x8xf32>
    %68 = arith.maximumf %66, %67 : vector<64x8xf32>
    %69 = arith.truncf %68 : vector<64x8xf32> to vector<64x8xbf16>
    %cst_66 = arith.constant 0.000000e+00 : bf16
    %70 = vector.broadcast %cst_66 : bf16 to vector<10x10x8xbf16>
    %c0_67 = arith.constant 0 : index
    %c0_68 = arith.constant 0 : index
    %c0_69 = arith.constant 0 : index
    %71 = vector.load %arg9[%c0_67, %c0_68, %c0_69] : memref<10x10x8xbf16, #tpu.memory_space<vmem>>, vector<10x10x8xbf16>
    tpu.vector_store %arg9[%c0_67, %c0_68, %c0_69], %70 {strides = array<i32>} : memref<10x10x8xbf16, #tpu.memory_space<vmem>>, vector<10x10x8xbf16>,
    %72 = vector.shape_cast %69 : vector<64x8xbf16> to vector<8x8x8xbf16>
    %c1_70 = arith.constant 1 : index
    %c1_71 = arith.constant 1 : index
    %c0_72 = arith.constant 0 : index
    %73 = vector.load %arg9[%c1_70, %c1_71, %c0_72] : memref<10x10x8xbf16, #tpu.memory_space<vmem>>, vector<8x8x8xbf16>
    tpu.vector_store %arg9[%c1_70, %c1_71, %c0_72], %72 {strides = array<i32>} : memref<10x10x8xbf16, #tpu.memory_space<vmem>>, vector<8x8x8xbf16>,
    %cst_73 = arith.constant 0.000000e+00 : f32
    %74 = vector.broadcast %cst_73 : f32 to vector<64x8xf32>
    %c0_74 = arith.constant 0 : index
    %c0_75 = arith.constant 0 : index
    %c0_76 = arith.constant 0 : index
    %75 = vector.load %arg9[%c0_74, %c0_75, %c0_76] : memref<10x10x8xbf16, #tpu.memory_space<vmem>>, vector<8x8x8xbf16>
    %76 = vector.shape_cast %75 : vector<8x8x8xbf16> to vector<64x8xbf16>
    %c0_77 = arith.constant 0 : index
    %c0_78 = arith.constant 0 : index
    %c0_79 = arith.constant 0 : index
    %77 = vector.load %arg4[%c0_77, %c0_78, %c0_79] : memref<9x8x8xbf16, #tpu.memory_space<vmem>>, vector<1x8x8xbf16>
    %78 = vector.shape_cast %77 : vector<1x8x8xbf16> to vector<8x8xbf16>
    %cst_80 = arith.constant dense<0.000000e+00> : vector<64x8xf32>
    %79 = tpu.matmul %76, %78, %cst_80 {dimension_numbers = #tpu.dot_dimension_numbers<[1], [0], [0], [1], [0, 0, 1, 1], [], []>} : vector<64x8xbf16>, vector<8x8xbf16>, vector<64x8xf32> -> vector<64x8xf32>
    %80 = arith.addf %74, %79 : vector<64x8xf32>
    %c0_81 = arith.constant 0 : index
    %c1_82 = arith.constant 1 : index
    %c0_83 = arith.constant 0 : index
    %81 = vector.load %arg9[%c0_81, %c1_82, %c0_83] : memref<10x10x8xbf16, #tpu.memory_space<vmem>>, vector<8x8x8xbf16>
    %82 = vector.shape_cast %81 : vector<8x8x8xbf16> to vector<64x8xbf16>
    %c1_84 = arith.constant 1 : index
    %c0_85 = arith.constant 0 : index
    %c0_86 = arith.constant 0 : index
    %83 = vector.load %arg4[%c1_84, %c0_85, %c0_86] : memref<9x8x8xbf16, #tpu.memory_space<vmem>>, vector<1x8x8xbf16>
    %84 = vector.shape_cast %83 : vector<1x8x8xbf16> to vector<8x8xbf16>
    %cst_87 = arith.constant dense<0.000000e+00> : vector<64x8xf32>
    %85 = tpu.matmul %82, %84, %cst_87 {dimension_numbers = #tpu.dot_dimension_numbers<[1], [0], [0], [1], [0, 0, 1, 1], [], []>} : vector<64x8xbf16>, vector<8x8xbf16>, vector<64x8xf32> -> vector<64x8xf32>
    %86 = arith.addf %80, %85 : vector<64x8xf32>
    %c0_88 = arith.constant 0 : index
    %c2_89 = arith.constant 2 : index
    %c0_90 = arith.constant 0 : index
    %87 = vector.load %arg9[%c0_88, %c2_89, %c0_90] : memref<10x10x8xbf16, #tpu.memory_space<vmem>>, vector<8x8x8xbf16>
    %88 = vector.shape_cast %87 : vector<8x8x8xbf16> to vector<64x8xbf16>
    %c2_91 = arith.constant 2 : index
    %c0_92 = arith.constant 0 : index
    %c0_93 = arith.constant 0 : index
    %89 = vector.load %arg4[%c2_91, %c0_92, %c0_93] : memref<9x8x8xbf16, #tpu.memory_space<vmem>>, vector<1x8x8xbf16>
    %90 = vector.shape_cast %89 : vector<1x8x8xbf16> to vector<8x8xbf16>
    %cst_94 = arith.constant dense<0.000000e+00> : vector<64x8xf32>
    %91 = tpu.matmul %88, %90, %cst_94 {dimension_numbers = #tpu.dot_dimension_numbers<[1], [0], [0], [1], [0, 0, 1, 1], [], []>} : vector<64x8xbf16>, vector<8x8xbf16>, vector<64x8xf32> -> vector<64x8xf32>
    %92 = arith.addf %86, %91 : vector<64x8xf32>
    %c1_95 = arith.constant 1 : index
    %c0_96 = arith.constant 0 : index
    %c0_97 = arith.constant 0 : index
    %93 = vector.load %arg9[%c1_95, %c0_96, %c0_97] : memref<10x10x8xbf16, #tpu.memory_space<vmem>>, vector<8x8x8xbf16>
    %94 = vector.shape_cast %93 : vector<8x8x8xbf16> to vector<64x8xbf16>
    %c3_98 = arith.constant 3 : index
    %c0_99 = arith.constant 0 : index
    %c0_100 = arith.constant 0 : index
    %95 = vector.load %arg4[%c3_98, %c0_99, %c0_100] : memref<9x8x8xbf16, #tpu.memory_space<vmem>>, vector<1x8x8xbf16>
    %96 = vector.shape_cast %95 : vector<1x8x8xbf16> to vector<8x8xbf16>
    %cst_101 = arith.constant dense<0.000000e+00> : vector<64x8xf32>
    %97 = tpu.matmul %94, %96, %cst_101 {dimension_numbers = #tpu.dot_dimension_numbers<[1], [0], [0], [1], [0, 0, 1, 1], [], []>} : vector<64x8xbf16>, vector<8x8xbf16>, vector<64x8xf32> -> vector<64x8xf32>
    %98 = arith.addf %92, %97 : vector<64x8xf32>
    %c1_102 = arith.constant 1 : index
    %c1_103 = arith.constant 1 : index
    %c0_104 = arith.constant 0 : index
    %99 = vector.load %arg9[%c1_102, %c1_103, %c0_104] : memref<10x10x8xbf16, #tpu.memory_space<vmem>>, vector<8x8x8xbf16>
    %100 = vector.shape_cast %99 : vector<8x8x8xbf16> to vector<64x8xbf16>
    %c4_105 = arith.constant 4 : index
    %c0_106 = arith.constant 0 : index
    %c0_107 = arith.constant 0 : index
    %101 = vector.load %arg4[%c4_105, %c0_106, %c0_107] : memref<9x8x8xbf16, #tpu.memory_space<vmem>>, vector<1x8x8xbf16>
    %102 = vector.shape_cast %101 : vector<1x8x8xbf16> to vector<8x8xbf16>
    %cst_108 = arith.constant dense<0.000000e+00> : vector<64x8xf32>
    %103 = tpu.matmul %100, %102, %cst_108 {dimension_numbers = #tpu.dot_dimension_numbers<[1], [0], [0], [1], [0, 0, 1, 1], [], []>} : vector<64x8xbf16>, vector<8x8xbf16>, vector<64x8xf32> -> vector<64x8xf32>
    %104 = arith.addf %98, %103 : vector<64x8xf32>
    %c1_109 = arith.constant 1 : index
    %c2_110 = arith.constant 2 : index
    %c0_111 = arith.constant 0 : index
    %105 = vector.load %arg9[%c1_109, %c2_110, %c0_111] : memref<10x10x8xbf16, #tpu.memory_space<vmem>>, vector<8x8x8xbf16>
    %106 = vector.shape_cast %105 : vector<8x8x8xbf16> to vector<64x8xbf16>
    %c5_112 = arith.constant 5 : index
    %c0_113 = arith.constant 0 : index
    %c0_114 = arith.constant 0 : index
    %107 = vector.load %arg4[%c5_112, %c0_113, %c0_114] : memref<9x8x8xbf16, #tpu.memory_space<vmem>>, vector<1x8x8xbf16>
    %108 = vector.shape_cast %107 : vector<1x8x8xbf16> to vector<8x8xbf16>
    %cst_115 = arith.constant dense<0.000000e+00> : vector<64x8xf32>
    %109 = tpu.matmul %106, %108, %cst_115 {dimension_numbers = #tpu.dot_dimension_numbers<[1], [0], [0], [1], [0, 0, 1, 1], [], []>} : vector<64x8xbf16>, vector<8x8xbf16>, vector<64x8xf32> -> vector<64x8xf32>
    %110 = arith.addf %104, %109 : vector<64x8xf32>
    %c2_116 = arith.constant 2 : index
    %c0_117 = arith.constant 0 : index
    %c0_118 = arith.constant 0 : index
    %111 = vector.load %arg9[%c2_116, %c0_117, %c0_118] : memref<10x10x8xbf16, #tpu.memory_space<vmem>>, vector<8x8x8xbf16>
    %112 = vector.shape_cast %111 : vector<8x8x8xbf16> to vector<64x8xbf16>
    %c6_119 = arith.constant 6 : index
    %c0_120 = arith.constant 0 : index
    %c0_121 = arith.constant 0 : index
    %113 = vector.load %arg4[%c6_119, %c0_120, %c0_121] : memref<9x8x8xbf16, #tpu.memory_space<vmem>>, vector<1x8x8xbf16>
    %114 = vector.shape_cast %113 : vector<1x8x8xbf16> to vector<8x8xbf16>
    %cst_122 = arith.constant dense<0.000000e+00> : vector<64x8xf32>
    %115 = tpu.matmul %112, %114, %cst_122 {dimension_numbers = #tpu.dot_dimension_numbers<[1], [0], [0], [1], [0, 0, 1, 1], [], []>} : vector<64x8xbf16>, vector<8x8xbf16>, vector<64x8xf32> -> vector<64x8xf32>
    %116 = arith.addf %110, %115 : vector<64x8xf32>
    %c2_123 = arith.constant 2 : index
    %c1_124 = arith.constant 1 : index
    %c0_125 = arith.constant 0 : index
    %117 = vector.load %arg9[%c2_123, %c1_124, %c0_125] : memref<10x10x8xbf16, #tpu.memory_space<vmem>>, vector<8x8x8xbf16>
    %118 = vector.shape_cast %117 : vector<8x8x8xbf16> to vector<64x8xbf16>
    %c7_126 = arith.constant 7 : index
    %c0_127 = arith.constant 0 : index
    %c0_128 = arith.constant 0 : index
    %119 = vector.load %arg4[%c7_126, %c0_127, %c0_128] : memref<9x8x8xbf16, #tpu.memory_space<vmem>>, vector<1x8x8xbf16>
    %120 = vector.shape_cast %119 : vector<1x8x8xbf16> to vector<8x8xbf16>
    %cst_129 = arith.constant dense<0.000000e+00> : vector<64x8xf32>
    %121 = tpu.matmul %118, %120, %cst_129 {dimension_numbers = #tpu.dot_dimension_numbers<[1], [0], [0], [1], [0, 0, 1, 1], [], []>} : vector<64x8xbf16>, vector<8x8xbf16>, vector<64x8xf32> -> vector<64x8xf32>
    %122 = arith.addf %116, %121 : vector<64x8xf32>
    %c2_130 = arith.constant 2 : index
    %c2_131 = arith.constant 2 : index
    %c0_132 = arith.constant 0 : index
    %123 = vector.load %arg9[%c2_130, %c2_131, %c0_132] : memref<10x10x8xbf16, #tpu.memory_space<vmem>>, vector<8x8x8xbf16>
    %124 = vector.shape_cast %123 : vector<8x8x8xbf16> to vector<64x8xbf16>
    %c8_133 = arith.constant 8 : index
    %c0_134 = arith.constant 0 : index
    %c0_135 = arith.constant 0 : index
    %125 = vector.load %arg4[%c8_133, %c0_134, %c0_135] : memref<9x8x8xbf16, #tpu.memory_space<vmem>>, vector<1x8x8xbf16>
    %126 = vector.shape_cast %125 : vector<1x8x8xbf16> to vector<8x8xbf16>
    %cst_136 = arith.constant dense<0.000000e+00> : vector<64x8xf32>
    %127 = tpu.matmul %124, %126, %cst_136 {dimension_numbers = #tpu.dot_dimension_numbers<[1], [0], [0], [1], [0, 0, 1, 1], [], []>} : vector<64x8xbf16>, vector<8x8xbf16>, vector<64x8xf32> -> vector<64x8xf32>
    %128 = arith.addf %122, %127 : vector<64x8xf32>
    %c0_137 = arith.constant 0 : index
    %c0_138 = arith.constant 0 : index
    %129 = vector.load %arg5[%c0_137, %c0_138] : memref<1x8xf32, #tpu.memory_space<vmem>>, vector<1x8xf32>
    %130 = vector.broadcast %129 : vector<1x8xf32> to vector<64x8xf32>
    %131 = arith.addf %128, %130 : vector<64x8xf32>
    %c3_139 = arith.constant 3 : index
    %c0_140 = arith.constant 0 : index
    %c0_141 = arith.constant 0 : index
    %c0_142 = arith.constant 0 : index
    %132 = vector.load %arg1[%c3_139, %c0_140, %c0_141, %c0_142] : memref<4x9x9x4xbf16, #tpu.memory_space<vmem>>, vector<1x8x8x4xbf16>
    %133 = vector.shape_cast %132 : vector<1x8x8x4xbf16> to vector<8x8x4xbf16>
    %134 = vector.shape_cast %133 : vector<8x8x4xbf16> to vector<64x4xbf16>
    %c0_143 = arith.constant 0 : index
    %c0_144 = arith.constant 0 : index
    %135 = vector.load %arg6[%c0_143, %c0_144] : memref<4x8xbf16, #tpu.memory_space<vmem>>, vector<4x8xbf16>
    %cst_145 = arith.constant dense<0.000000e+00> : vector<64x8xf32>
    %136 = tpu.matmul %134, %135, %cst_145 {dimension_numbers = #tpu.dot_dimension_numbers<[1], [0], [0], [1], [0, 0, 1, 1], [], []>} : vector<64x4xbf16>, vector<4x8xbf16>, vector<64x8xf32> -> vector<64x8xf32>
    %c0_146 = arith.constant 0 : index
    %c0_147 = arith.constant 0 : index
    %137 = vector.load %arg7[%c0_146, %c0_147] : memref<1x8xf32, #tpu.memory_space<vmem>>, vector<1x8xf32>
    %138 = vector.broadcast %137 : vector<1x8xf32> to vector<64x8xf32>
    %139 = arith.addf %136, %138 : vector<64x8xf32>
    %140 = arith.addf %131, %139 : vector<64x8xf32>
    %cst_148 = arith.constant 0.000000e+00 : f32
    %141 = vector.broadcast %cst_148 : f32 to vector<64x8xf32>
    %142 = arith.maximumf %140, %141 : vector<64x8xf32>
    %143 = vector.shape_cast %142 : vector<64x8xf32> to vector<1x64x8xf32>
    %c0_149 = arith.constant 0 : index
    %c0_150 = arith.constant 0 : index
    %c0_151 = arith.constant 0 : index
    %144 = vector.load %arg8[%c0_149, %c0_150, %c0_151] : memref<1x64x8xf32, #tpu.memory_space<vmem>>, vector<1x64x8xf32>
    tpu.vector_store %arg8[%c0_149, %c0_150, %c0_151], %143 {strides = array<i32>} : memref<1x64x8xf32, #tpu.memory_space<vmem>>, vector<1x64x8xf32>,
    return
  }
  func.func @transform_0(%arg0: i32) -> (i32, i32, i32, i32) {
    %c0_i32 = arith.constant 0 : i32
    %c0_i32_0 = arith.constant 0 : i32
    %c0_i32_1 = arith.constant 0 : i32
    %c0_i32_2 = arith.constant 0 : i32
    return %arg0, %c0_i32, %c0_i32_0, %c0_i32_1 : i32, i32, i32, i32
  }
  func.func @transform_1(%arg0: i32) -> (i32, i32, i32) {
    %c0_i32 = arith.constant 0 : i32
    %c0_i32_0 = arith.constant 0 : i32
    %c0_i32_1 = arith.constant 0 : i32
    %c0_i32_2 = arith.constant 0 : i32
    return %c0_i32, %c0_i32_0, %c0_i32_1 : i32, i32, i32
  }
  func.func @transform_2(%arg0: i32) -> (i32, i32) {
    %c0_i32 = arith.constant 0 : i32
    %c0_i32_0 = arith.constant 0 : i32
    %c0_i32_1 = arith.constant 0 : i32
    return %c0_i32, %c0_i32_0 : i32, i32
  }
  func.func @transform_3(%arg0: i32) -> (i32, i32, i32) {
    %c0_i32 = arith.constant 0 : i32
    %c0_i32_0 = arith.constant 0 : i32
    %c0_i32_1 = arith.constant 0 : i32
    %c0_i32_2 = arith.constant 0 : i32
    return %c0_i32, %c0_i32_0, %c0_i32_1 : i32, i32, i32
  }
  func.func @transform_4(%arg0: i32) -> (i32, i32) {
    %c0_i32 = arith.constant 0 : i32
    %c0_i32_0 = arith.constant 0 : i32
    %c0_i32_1 = arith.constant 0 : i32
    return %c0_i32, %c0_i32_0 : i32, i32
  }
  func.func @transform_5(%arg0: i32) -> (i32, i32) {
    %c0_i32 = arith.constant 0 : i32
    %c0_i32_0 = arith.constant 0 : i32
    %c0_i32_1 = arith.constant 0 : i32
    return %c0_i32, %c0_i32_0 : i32, i32
  }
  func.func @transform_6(%arg0: i32) -> (i32, i32) {
    %c0_i32 = arith.constant 0 : i32
    %c0_i32_0 = arith.constant 0 : i32
    %c0_i32_1 = arith.constant 0 : i32
    return %c0_i32, %c0_i32_0 : i32, i32
  }
  func.func @transform_7(%arg0: i32) -> (i32, i32, i32) {
    %c0_i32 = arith.constant 0 : i32
    %c0_i32_0 = arith.constant 0 : i32
    %c0_i32_1 = arith.constant 0 : i32
    return %arg0, %c0_i32, %c0_i32_0 : i32, i32, i32
  }
}

module attributes {stable_mosaic.version = 11 : i64} {
  func.func @_basic_block_kernel(%arg0: i32, %arg1: memref<1x10x10x8xbf16, #tpu.memory_space<vmem>>, %arg2: memref<9x8x8xbf16, #tpu.memory_space<vmem>>, %arg3: memref<1x8xf32, #tpu.memory_space<vmem>>, %arg4: memref<9x8x8xbf16, #tpu.memory_space<vmem>>, %arg5: memref<1x8xf32, #tpu.memory_space<vmem>>, %arg6: memref<1x64x8xf32, #tpu.memory_space<vmem>>, %arg7: memref<10x10x8xbf16, #tpu.memory_space<vmem>>) attributes {dimension_semantics = [#tpu.dimension_semantics<parallel>], iteration_bounds = array<i64: 2>, scalar_prefetch = 0 : i64, scratch_operands = 1 : i64, tpu.core_type = #tpu.core_type<tc>, window_params = [{transform_indices = @transform_0, window_bounds = array<i64: 1, 10, 10, 8>}, {pipeline_mode = #tpu.pipeline_mode<synchronous>, transform_indices = @transform_1, window_bounds = array<i64: 9, 8, 8>}, {pipeline_mode = #tpu.pipeline_mode<synchronous>, transform_indices = @transform_2, window_bounds = array<i64: 1, 8>}, {pipeline_mode = #tpu.pipeline_mode<synchronous>, transform_indices = @transform_3, window_bounds = array<i64: 9, 8, 8>}, {pipeline_mode = #tpu.pipeline_mode<synchronous>, transform_indices = @transform_4, window_bounds = array<i64: 1, 8>}, {transform_indices = @transform_5, window_bounds = array<i64: 1, 64, 8>}]} {
    %cst = arith.constant 0.000000e+00 : f32
    %0 = vector.broadcast %cst : f32 to vector<64x8xf32>
    %c0 = arith.constant 0 : index
    %c0_0 = arith.constant 0 : index
    %c0_1 = arith.constant 0 : index
    %c0_2 = arith.constant 0 : index
    %1 = vector.load %arg1[%c0, %c0_0, %c0_1, %c0_2] : memref<1x10x10x8xbf16, #tpu.memory_space<vmem>>, vector<1x8x8x8xbf16>
    %2 = vector.shape_cast %1 : vector<1x8x8x8xbf16> to vector<8x8x8xbf16>
    %3 = vector.shape_cast %2 : vector<8x8x8xbf16> to vector<64x8xbf16>
    %c0_3 = arith.constant 0 : index
    %c0_4 = arith.constant 0 : index
    %c0_5 = arith.constant 0 : index
    %4 = vector.load %arg2[%c0_3, %c0_4, %c0_5] : memref<9x8x8xbf16, #tpu.memory_space<vmem>>, vector<1x8x8xbf16>
    %5 = vector.shape_cast %4 : vector<1x8x8xbf16> to vector<8x8xbf16>
    %cst_6 = arith.constant dense<0.000000e+00> : vector<64x8xf32>
    %6 = tpu.matmul %3, %5, %cst_6 {dimension_numbers = #tpu.dot_dimension_numbers<[1], [0], [0], [1], [0, 0, 1, 1], [], []>} : vector<64x8xbf16>, vector<8x8xbf16>, vector<64x8xf32> -> vector<64x8xf32>
    %7 = arith.addf %0, %6 : vector<64x8xf32>
    %c0_7 = arith.constant 0 : index
    %c0_8 = arith.constant 0 : index
    %c1 = arith.constant 1 : index
    %c0_9 = arith.constant 0 : index
    %8 = vector.load %arg1[%c0_7, %c0_8, %c1, %c0_9] : memref<1x10x10x8xbf16, #tpu.memory_space<vmem>>, vector<1x8x8x8xbf16>
    %9 = vector.shape_cast %8 : vector<1x8x8x8xbf16> to vector<8x8x8xbf16>
    %10 = vector.shape_cast %9 : vector<8x8x8xbf16> to vector<64x8xbf16>
    %c1_10 = arith.constant 1 : index
    %c0_11 = arith.constant 0 : index
    %c0_12 = arith.constant 0 : index
    %11 = vector.load %arg2[%c1_10, %c0_11, %c0_12] : memref<9x8x8xbf16, #tpu.memory_space<vmem>>, vector<1x8x8xbf16>
    %12 = vector.shape_cast %11 : vector<1x8x8xbf16> to vector<8x8xbf16>
    %cst_13 = arith.constant dense<0.000000e+00> : vector<64x8xf32>
    %13 = tpu.matmul %10, %12, %cst_13 {dimension_numbers = #tpu.dot_dimension_numbers<[1], [0], [0], [1], [0, 0, 1, 1], [], []>} : vector<64x8xbf16>, vector<8x8xbf16>, vector<64x8xf32> -> vector<64x8xf32>
    %14 = arith.addf %7, %13 : vector<64x8xf32>
    %c0_14 = arith.constant 0 : index
    %c0_15 = arith.constant 0 : index
    %c2 = arith.constant 2 : index
    %c0_16 = arith.constant 0 : index
    %15 = vector.load %arg1[%c0_14, %c0_15, %c2, %c0_16] : memref<1x10x10x8xbf16, #tpu.memory_space<vmem>>, vector<1x8x8x8xbf16>
    %16 = vector.shape_cast %15 : vector<1x8x8x8xbf16> to vector<8x8x8xbf16>
    %17 = vector.shape_cast %16 : vector<8x8x8xbf16> to vector<64x8xbf16>
    %c2_17 = arith.constant 2 : index
    %c0_18 = arith.constant 0 : index
    %c0_19 = arith.constant 0 : index
    %18 = vector.load %arg2[%c2_17, %c0_18, %c0_19] : memref<9x8x8xbf16, #tpu.memory_space<vmem>>, vector<1x8x8xbf16>
    %19 = vector.shape_cast %18 : vector<1x8x8xbf16> to vector<8x8xbf16>
    %cst_20 = arith.constant dense<0.000000e+00> : vector<64x8xf32>
    %20 = tpu.matmul %17, %19, %cst_20 {dimension_numbers = #tpu.dot_dimension_numbers<[1], [0], [0], [1], [0, 0, 1, 1], [], []>} : vector<64x8xbf16>, vector<8x8xbf16>, vector<64x8xf32> -> vector<64x8xf32>
    %21 = arith.addf %14, %20 : vector<64x8xf32>
    %c0_21 = arith.constant 0 : index
    %c1_22 = arith.constant 1 : index
    %c0_23 = arith.constant 0 : index
    %c0_24 = arith.constant 0 : index
    %22 = vector.load %arg1[%c0_21, %c1_22, %c0_23, %c0_24] : memref<1x10x10x8xbf16, #tpu.memory_space<vmem>>, vector<1x8x8x8xbf16>
    %23 = vector.shape_cast %22 : vector<1x8x8x8xbf16> to vector<8x8x8xbf16>
    %24 = vector.shape_cast %23 : vector<8x8x8xbf16> to vector<64x8xbf16>
    %c3 = arith.constant 3 : index
    %c0_25 = arith.constant 0 : index
    %c0_26 = arith.constant 0 : index
    %25 = vector.load %arg2[%c3, %c0_25, %c0_26] : memref<9x8x8xbf16, #tpu.memory_space<vmem>>, vector<1x8x8xbf16>
    %26 = vector.shape_cast %25 : vector<1x8x8xbf16> to vector<8x8xbf16>
    %cst_27 = arith.constant dense<0.000000e+00> : vector<64x8xf32>
    %27 = tpu.matmul %24, %26, %cst_27 {dimension_numbers = #tpu.dot_dimension_numbers<[1], [0], [0], [1], [0, 0, 1, 1], [], []>} : vector<64x8xbf16>, vector<8x8xbf16>, vector<64x8xf32> -> vector<64x8xf32>
    %28 = arith.addf %21, %27 : vector<64x8xf32>
    %c0_28 = arith.constant 0 : index
    %c1_29 = arith.constant 1 : index
    %c1_30 = arith.constant 1 : index
    %c0_31 = arith.constant 0 : index
    %29 = vector.load %arg1[%c0_28, %c1_29, %c1_30, %c0_31] : memref<1x10x10x8xbf16, #tpu.memory_space<vmem>>, vector<1x8x8x8xbf16>
    %30 = vector.shape_cast %29 : vector<1x8x8x8xbf16> to vector<8x8x8xbf16>
    %31 = vector.shape_cast %30 : vector<8x8x8xbf16> to vector<64x8xbf16>
    %c4 = arith.constant 4 : index
    %c0_32 = arith.constant 0 : index
    %c0_33 = arith.constant 0 : index
    %32 = vector.load %arg2[%c4, %c0_32, %c0_33] : memref<9x8x8xbf16, #tpu.memory_space<vmem>>, vector<1x8x8xbf16>
    %33 = vector.shape_cast %32 : vector<1x8x8xbf16> to vector<8x8xbf16>
    %cst_34 = arith.constant dense<0.000000e+00> : vector<64x8xf32>
    %34 = tpu.matmul %31, %33, %cst_34 {dimension_numbers = #tpu.dot_dimension_numbers<[1], [0], [0], [1], [0, 0, 1, 1], [], []>} : vector<64x8xbf16>, vector<8x8xbf16>, vector<64x8xf32> -> vector<64x8xf32>
    %35 = arith.addf %28, %34 : vector<64x8xf32>
    %c0_35 = arith.constant 0 : index
    %c1_36 = arith.constant 1 : index
    %c2_37 = arith.constant 2 : index
    %c0_38 = arith.constant 0 : index
    %36 = vector.load %arg1[%c0_35, %c1_36, %c2_37, %c0_38] : memref<1x10x10x8xbf16, #tpu.memory_space<vmem>>, vector<1x8x8x8xbf16>
    %37 = vector.shape_cast %36 : vector<1x8x8x8xbf16> to vector<8x8x8xbf16>
    %38 = vector.shape_cast %37 : vector<8x8x8xbf16> to vector<64x8xbf16>
    %c5 = arith.constant 5 : index
    %c0_39 = arith.constant 0 : index
    %c0_40 = arith.constant 0 : index
    %39 = vector.load %arg2[%c5, %c0_39, %c0_40] : memref<9x8x8xbf16, #tpu.memory_space<vmem>>, vector<1x8x8xbf16>
    %40 = vector.shape_cast %39 : vector<1x8x8xbf16> to vector<8x8xbf16>
    %cst_41 = arith.constant dense<0.000000e+00> : vector<64x8xf32>
    %41 = tpu.matmul %38, %40, %cst_41 {dimension_numbers = #tpu.dot_dimension_numbers<[1], [0], [0], [1], [0, 0, 1, 1], [], []>} : vector<64x8xbf16>, vector<8x8xbf16>, vector<64x8xf32> -> vector<64x8xf32>
    %42 = arith.addf %35, %41 : vector<64x8xf32>
    %c0_42 = arith.constant 0 : index
    %c2_43 = arith.constant 2 : index
    %c0_44 = arith.constant 0 : index
    %c0_45 = arith.constant 0 : index
    %43 = vector.load %arg1[%c0_42, %c2_43, %c0_44, %c0_45] : memref<1x10x10x8xbf16, #tpu.memory_space<vmem>>, vector<1x8x8x8xbf16>
    %44 = vector.shape_cast %43 : vector<1x8x8x8xbf16> to vector<8x8x8xbf16>
    %45 = vector.shape_cast %44 : vector<8x8x8xbf16> to vector<64x8xbf16>
    %c6 = arith.constant 6 : index
    %c0_46 = arith.constant 0 : index
    %c0_47 = arith.constant 0 : index
    %46 = vector.load %arg2[%c6, %c0_46, %c0_47] : memref<9x8x8xbf16, #tpu.memory_space<vmem>>, vector<1x8x8xbf16>
    %47 = vector.shape_cast %46 : vector<1x8x8xbf16> to vector<8x8xbf16>
    %cst_48 = arith.constant dense<0.000000e+00> : vector<64x8xf32>
    %48 = tpu.matmul %45, %47, %cst_48 {dimension_numbers = #tpu.dot_dimension_numbers<[1], [0], [0], [1], [0, 0, 1, 1], [], []>} : vector<64x8xbf16>, vector<8x8xbf16>, vector<64x8xf32> -> vector<64x8xf32>
    %49 = arith.addf %42, %48 : vector<64x8xf32>
    %c0_49 = arith.constant 0 : index
    %c2_50 = arith.constant 2 : index
    %c1_51 = arith.constant 1 : index
    %c0_52 = arith.constant 0 : index
    %50 = vector.load %arg1[%c0_49, %c2_50, %c1_51, %c0_52] : memref<1x10x10x8xbf16, #tpu.memory_space<vmem>>, vector<1x8x8x8xbf16>
    %51 = vector.shape_cast %50 : vector<1x8x8x8xbf16> to vector<8x8x8xbf16>
    %52 = vector.shape_cast %51 : vector<8x8x8xbf16> to vector<64x8xbf16>
    %c7 = arith.constant 7 : index
    %c0_53 = arith.constant 0 : index
    %c0_54 = arith.constant 0 : index
    %53 = vector.load %arg2[%c7, %c0_53, %c0_54] : memref<9x8x8xbf16, #tpu.memory_space<vmem>>, vector<1x8x8xbf16>
    %54 = vector.shape_cast %53 : vector<1x8x8xbf16> to vector<8x8xbf16>
    %cst_55 = arith.constant dense<0.000000e+00> : vector<64x8xf32>
    %55 = tpu.matmul %52, %54, %cst_55 {dimension_numbers = #tpu.dot_dimension_numbers<[1], [0], [0], [1], [0, 0, 1, 1], [], []>} : vector<64x8xbf16>, vector<8x8xbf16>, vector<64x8xf32> -> vector<64x8xf32>
    %56 = arith.addf %49, %55 : vector<64x8xf32>
    %c0_56 = arith.constant 0 : index
    %c2_57 = arith.constant 2 : index
    %c2_58 = arith.constant 2 : index
    %c0_59 = arith.constant 0 : index
    %57 = vector.load %arg1[%c0_56, %c2_57, %c2_58, %c0_59] : memref<1x10x10x8xbf16, #tpu.memory_space<vmem>>, vector<1x8x8x8xbf16>
    %58 = vector.shape_cast %57 : vector<1x8x8x8xbf16> to vector<8x8x8xbf16>
    %59 = vector.shape_cast %58 : vector<8x8x8xbf16> to vector<64x8xbf16>
    %c8 = arith.constant 8 : index
    %c0_60 = arith.constant 0 : index
    %c0_61 = arith.constant 0 : index
    %60 = vector.load %arg2[%c8, %c0_60, %c0_61] : memref<9x8x8xbf16, #tpu.memory_space<vmem>>, vector<1x8x8xbf16>
    %61 = vector.shape_cast %60 : vector<1x8x8xbf16> to vector<8x8xbf16>
    %cst_62 = arith.constant dense<0.000000e+00> : vector<64x8xf32>
    %62 = tpu.matmul %59, %61, %cst_62 {dimension_numbers = #tpu.dot_dimension_numbers<[1], [0], [0], [1], [0, 0, 1, 1], [], []>} : vector<64x8xbf16>, vector<8x8xbf16>, vector<64x8xf32> -> vector<64x8xf32>
    %63 = arith.addf %56, %62 : vector<64x8xf32>
    %c0_63 = arith.constant 0 : index
    %c0_64 = arith.constant 0 : index
    %64 = vector.load %arg3[%c0_63, %c0_64] : memref<1x8xf32, #tpu.memory_space<vmem>>, vector<1x8xf32>
    %65 = vector.broadcast %64 : vector<1x8xf32> to vector<64x8xf32>
    %66 = arith.addf %63, %65 : vector<64x8xf32>
    %cst_65 = arith.constant 0.000000e+00 : f32
    %67 = vector.broadcast %cst_65 : f32 to vector<64x8xf32>
    %68 = arith.maximumf %66, %67 : vector<64x8xf32>
    %69 = arith.truncf %68 : vector<64x8xf32> to vector<64x8xbf16>
    %cst_66 = arith.constant 0.000000e+00 : bf16
    %70 = vector.broadcast %cst_66 : bf16 to vector<10x10x8xbf16>
    %c0_67 = arith.constant 0 : index
    %c0_68 = arith.constant 0 : index
    %c0_69 = arith.constant 0 : index
    %71 = vector.load %arg7[%c0_67, %c0_68, %c0_69] : memref<10x10x8xbf16, #tpu.memory_space<vmem>>, vector<10x10x8xbf16>
    tpu.vector_store %arg7[%c0_67, %c0_68, %c0_69], %70 {strides = array<i32>} : memref<10x10x8xbf16, #tpu.memory_space<vmem>>, vector<10x10x8xbf16>,
    %72 = vector.shape_cast %69 : vector<64x8xbf16> to vector<8x8x8xbf16>
    %c1_70 = arith.constant 1 : index
    %c1_71 = arith.constant 1 : index
    %c0_72 = arith.constant 0 : index
    %73 = vector.load %arg7[%c1_70, %c1_71, %c0_72] : memref<10x10x8xbf16, #tpu.memory_space<vmem>>, vector<8x8x8xbf16>
    tpu.vector_store %arg7[%c1_70, %c1_71, %c0_72], %72 {strides = array<i32>} : memref<10x10x8xbf16, #tpu.memory_space<vmem>>, vector<8x8x8xbf16>,
    %cst_73 = arith.constant 0.000000e+00 : f32
    %74 = vector.broadcast %cst_73 : f32 to vector<64x8xf32>
    %c0_74 = arith.constant 0 : index
    %c0_75 = arith.constant 0 : index
    %c0_76 = arith.constant 0 : index
    %75 = vector.load %arg7[%c0_74, %c0_75, %c0_76] : memref<10x10x8xbf16, #tpu.memory_space<vmem>>, vector<8x8x8xbf16>
    %76 = vector.shape_cast %75 : vector<8x8x8xbf16> to vector<64x8xbf16>
    %c0_77 = arith.constant 0 : index
    %c0_78 = arith.constant 0 : index
    %c0_79 = arith.constant 0 : index
    %77 = vector.load %arg4[%c0_77, %c0_78, %c0_79] : memref<9x8x8xbf16, #tpu.memory_space<vmem>>, vector<1x8x8xbf16>
    %78 = vector.shape_cast %77 : vector<1x8x8xbf16> to vector<8x8xbf16>
    %cst_80 = arith.constant dense<0.000000e+00> : vector<64x8xf32>
    %79 = tpu.matmul %76, %78, %cst_80 {dimension_numbers = #tpu.dot_dimension_numbers<[1], [0], [0], [1], [0, 0, 1, 1], [], []>} : vector<64x8xbf16>, vector<8x8xbf16>, vector<64x8xf32> -> vector<64x8xf32>
    %80 = arith.addf %74, %79 : vector<64x8xf32>
    %c0_81 = arith.constant 0 : index
    %c1_82 = arith.constant 1 : index
    %c0_83 = arith.constant 0 : index
    %81 = vector.load %arg7[%c0_81, %c1_82, %c0_83] : memref<10x10x8xbf16, #tpu.memory_space<vmem>>, vector<8x8x8xbf16>
    %82 = vector.shape_cast %81 : vector<8x8x8xbf16> to vector<64x8xbf16>
    %c1_84 = arith.constant 1 : index
    %c0_85 = arith.constant 0 : index
    %c0_86 = arith.constant 0 : index
    %83 = vector.load %arg4[%c1_84, %c0_85, %c0_86] : memref<9x8x8xbf16, #tpu.memory_space<vmem>>, vector<1x8x8xbf16>
    %84 = vector.shape_cast %83 : vector<1x8x8xbf16> to vector<8x8xbf16>
    %cst_87 = arith.constant dense<0.000000e+00> : vector<64x8xf32>
    %85 = tpu.matmul %82, %84, %cst_87 {dimension_numbers = #tpu.dot_dimension_numbers<[1], [0], [0], [1], [0, 0, 1, 1], [], []>} : vector<64x8xbf16>, vector<8x8xbf16>, vector<64x8xf32> -> vector<64x8xf32>
    %86 = arith.addf %80, %85 : vector<64x8xf32>
    %c0_88 = arith.constant 0 : index
    %c2_89 = arith.constant 2 : index
    %c0_90 = arith.constant 0 : index
    %87 = vector.load %arg7[%c0_88, %c2_89, %c0_90] : memref<10x10x8xbf16, #tpu.memory_space<vmem>>, vector<8x8x8xbf16>
    %88 = vector.shape_cast %87 : vector<8x8x8xbf16> to vector<64x8xbf16>
    %c2_91 = arith.constant 2 : index
    %c0_92 = arith.constant 0 : index
    %c0_93 = arith.constant 0 : index
    %89 = vector.load %arg4[%c2_91, %c0_92, %c0_93] : memref<9x8x8xbf16, #tpu.memory_space<vmem>>, vector<1x8x8xbf16>
    %90 = vector.shape_cast %89 : vector<1x8x8xbf16> to vector<8x8xbf16>
    %cst_94 = arith.constant dense<0.000000e+00> : vector<64x8xf32>
    %91 = tpu.matmul %88, %90, %cst_94 {dimension_numbers = #tpu.dot_dimension_numbers<[1], [0], [0], [1], [0, 0, 1, 1], [], []>} : vector<64x8xbf16>, vector<8x8xbf16>, vector<64x8xf32> -> vector<64x8xf32>
    %92 = arith.addf %86, %91 : vector<64x8xf32>
    %c1_95 = arith.constant 1 : index
    %c0_96 = arith.constant 0 : index
    %c0_97 = arith.constant 0 : index
    %93 = vector.load %arg7[%c1_95, %c0_96, %c0_97] : memref<10x10x8xbf16, #tpu.memory_space<vmem>>, vector<8x8x8xbf16>
    %94 = vector.shape_cast %93 : vector<8x8x8xbf16> to vector<64x8xbf16>
    %c3_98 = arith.constant 3 : index
    %c0_99 = arith.constant 0 : index
    %c0_100 = arith.constant 0 : index
    %95 = vector.load %arg4[%c3_98, %c0_99, %c0_100] : memref<9x8x8xbf16, #tpu.memory_space<vmem>>, vector<1x8x8xbf16>
    %96 = vector.shape_cast %95 : vector<1x8x8xbf16> to vector<8x8xbf16>
    %cst_101 = arith.constant dense<0.000000e+00> : vector<64x8xf32>
    %97 = tpu.matmul %94, %96, %cst_101 {dimension_numbers = #tpu.dot_dimension_numbers<[1], [0], [0], [1], [0, 0, 1, 1], [], []>} : vector<64x8xbf16>, vector<8x8xbf16>, vector<64x8xf32> -> vector<64x8xf32>
    %98 = arith.addf %92, %97 : vector<64x8xf32>
    %c1_102 = arith.constant 1 : index
    %c1_103 = arith.constant 1 : index
    %c0_104 = arith.constant 0 : index
    %99 = vector.load %arg7[%c1_102, %c1_103, %c0_104] : memref<10x10x8xbf16, #tpu.memory_space<vmem>>, vector<8x8x8xbf16>
    %100 = vector.shape_cast %99 : vector<8x8x8xbf16> to vector<64x8xbf16>
    %c4_105 = arith.constant 4 : index
    %c0_106 = arith.constant 0 : index
    %c0_107 = arith.constant 0 : index
    %101 = vector.load %arg4[%c4_105, %c0_106, %c0_107] : memref<9x8x8xbf16, #tpu.memory_space<vmem>>, vector<1x8x8xbf16>
    %102 = vector.shape_cast %101 : vector<1x8x8xbf16> to vector<8x8xbf16>
    %cst_108 = arith.constant dense<0.000000e+00> : vector<64x8xf32>
    %103 = tpu.matmul %100, %102, %cst_108 {dimension_numbers = #tpu.dot_dimension_numbers<[1], [0], [0], [1], [0, 0, 1, 1], [], []>} : vector<64x8xbf16>, vector<8x8xbf16>, vector<64x8xf32> -> vector<64x8xf32>
    %104 = arith.addf %98, %103 : vector<64x8xf32>
    %c1_109 = arith.constant 1 : index
    %c2_110 = arith.constant 2 : index
    %c0_111 = arith.constant 0 : index
    %105 = vector.load %arg7[%c1_109, %c2_110, %c0_111] : memref<10x10x8xbf16, #tpu.memory_space<vmem>>, vector<8x8x8xbf16>
    %106 = vector.shape_cast %105 : vector<8x8x8xbf16> to vector<64x8xbf16>
    %c5_112 = arith.constant 5 : index
    %c0_113 = arith.constant 0 : index
    %c0_114 = arith.constant 0 : index
    %107 = vector.load %arg4[%c5_112, %c0_113, %c0_114] : memref<9x8x8xbf16, #tpu.memory_space<vmem>>, vector<1x8x8xbf16>
    %108 = vector.shape_cast %107 : vector<1x8x8xbf16> to vector<8x8xbf16>
    %cst_115 = arith.constant dense<0.000000e+00> : vector<64x8xf32>
    %109 = tpu.matmul %106, %108, %cst_115 {dimension_numbers = #tpu.dot_dimension_numbers<[1], [0], [0], [1], [0, 0, 1, 1], [], []>} : vector<64x8xbf16>, vector<8x8xbf16>, vector<64x8xf32> -> vector<64x8xf32>
    %110 = arith.addf %104, %109 : vector<64x8xf32>
    %c2_116 = arith.constant 2 : index
    %c0_117 = arith.constant 0 : index
    %c0_118 = arith.constant 0 : index
    %111 = vector.load %arg7[%c2_116, %c0_117, %c0_118] : memref<10x10x8xbf16, #tpu.memory_space<vmem>>, vector<8x8x8xbf16>
    %112 = vector.shape_cast %111 : vector<8x8x8xbf16> to vector<64x8xbf16>
    %c6_119 = arith.constant 6 : index
    %c0_120 = arith.constant 0 : index
    %c0_121 = arith.constant 0 : index
    %113 = vector.load %arg4[%c6_119, %c0_120, %c0_121] : memref<9x8x8xbf16, #tpu.memory_space<vmem>>, vector<1x8x8xbf16>
    %114 = vector.shape_cast %113 : vector<1x8x8xbf16> to vector<8x8xbf16>
    %cst_122 = arith.constant dense<0.000000e+00> : vector<64x8xf32>
    %115 = tpu.matmul %112, %114, %cst_122 {dimension_numbers = #tpu.dot_dimension_numbers<[1], [0], [0], [1], [0, 0, 1, 1], [], []>} : vector<64x8xbf16>, vector<8x8xbf16>, vector<64x8xf32> -> vector<64x8xf32>
    %116 = arith.addf %110, %115 : vector<64x8xf32>
    %c2_123 = arith.constant 2 : index
    %c1_124 = arith.constant 1 : index
    %c0_125 = arith.constant 0 : index
    %117 = vector.load %arg7[%c2_123, %c1_124, %c0_125] : memref<10x10x8xbf16, #tpu.memory_space<vmem>>, vector<8x8x8xbf16>
    %118 = vector.shape_cast %117 : vector<8x8x8xbf16> to vector<64x8xbf16>
    %c7_126 = arith.constant 7 : index
    %c0_127 = arith.constant 0 : index
    %c0_128 = arith.constant 0 : index
    %119 = vector.load %arg4[%c7_126, %c0_127, %c0_128] : memref<9x8x8xbf16, #tpu.memory_space<vmem>>, vector<1x8x8xbf16>
    %120 = vector.shape_cast %119 : vector<1x8x8xbf16> to vector<8x8xbf16>
    %cst_129 = arith.constant dense<0.000000e+00> : vector<64x8xf32>
    %121 = tpu.matmul %118, %120, %cst_129 {dimension_numbers = #tpu.dot_dimension_numbers<[1], [0], [0], [1], [0, 0, 1, 1], [], []>} : vector<64x8xbf16>, vector<8x8xbf16>, vector<64x8xf32> -> vector<64x8xf32>
    %122 = arith.addf %116, %121 : vector<64x8xf32>
    %c2_130 = arith.constant 2 : index
    %c2_131 = arith.constant 2 : index
    %c0_132 = arith.constant 0 : index
    %123 = vector.load %arg7[%c2_130, %c2_131, %c0_132] : memref<10x10x8xbf16, #tpu.memory_space<vmem>>, vector<8x8x8xbf16>
    %124 = vector.shape_cast %123 : vector<8x8x8xbf16> to vector<64x8xbf16>
    %c8_133 = arith.constant 8 : index
    %c0_134 = arith.constant 0 : index
    %c0_135 = arith.constant 0 : index
    %125 = vector.load %arg4[%c8_133, %c0_134, %c0_135] : memref<9x8x8xbf16, #tpu.memory_space<vmem>>, vector<1x8x8xbf16>
    %126 = vector.shape_cast %125 : vector<1x8x8xbf16> to vector<8x8xbf16>
    %cst_136 = arith.constant dense<0.000000e+00> : vector<64x8xf32>
    %127 = tpu.matmul %124, %126, %cst_136 {dimension_numbers = #tpu.dot_dimension_numbers<[1], [0], [0], [1], [0, 0, 1, 1], [], []>} : vector<64x8xbf16>, vector<8x8xbf16>, vector<64x8xf32> -> vector<64x8xf32>
    %128 = arith.addf %122, %127 : vector<64x8xf32>
    %c0_137 = arith.constant 0 : index
    %c0_138 = arith.constant 0 : index
    %129 = vector.load %arg5[%c0_137, %c0_138] : memref<1x8xf32, #tpu.memory_space<vmem>>, vector<1x8xf32>
    %130 = vector.broadcast %129 : vector<1x8xf32> to vector<64x8xf32>
    %131 = arith.addf %128, %130 : vector<64x8xf32>
    %c0_139 = arith.constant 0 : index
    %c1_140 = arith.constant 1 : index
    %c1_141 = arith.constant 1 : index
    %c0_142 = arith.constant 0 : index
    %132 = vector.load %arg1[%c0_139, %c1_140, %c1_141, %c0_142] : memref<1x10x10x8xbf16, #tpu.memory_space<vmem>>, vector<1x8x8x8xbf16>
    %133 = vector.shape_cast %132 : vector<1x8x8x8xbf16> to vector<8x8x8xbf16>
    %134 = vector.shape_cast %133 : vector<8x8x8xbf16> to vector<64x8xbf16>
    %135 = arith.extf %134 : vector<64x8xbf16> to vector<64x8xf32>
    %136 = arith.addf %131, %135 : vector<64x8xf32>
    %cst_143 = arith.constant 0.000000e+00 : f32
    %137 = vector.broadcast %cst_143 : f32 to vector<64x8xf32>
    %138 = arith.maximumf %136, %137 : vector<64x8xf32>
    %139 = vector.shape_cast %138 : vector<64x8xf32> to vector<1x64x8xf32>
    %c0_144 = arith.constant 0 : index
    %c0_145 = arith.constant 0 : index
    %c0_146 = arith.constant 0 : index
    %140 = vector.load %arg6[%c0_144, %c0_145, %c0_146] : memref<1x64x8xf32, #tpu.memory_space<vmem>>, vector<1x64x8xf32>
    tpu.vector_store %arg6[%c0_144, %c0_145, %c0_146], %139 {strides = array<i32>} : memref<1x64x8xf32, #tpu.memory_space<vmem>>, vector<1x64x8xf32>,
    return
  }
  func.func @transform_0(%arg0: i32) -> (i32, i32, i32, i32) {
    %c0_i32 = arith.constant 0 : i32
    %c0_i32_0 = arith.constant 0 : i32
    %c0_i32_1 = arith.constant 0 : i32
    %c0_i32_2 = arith.constant 0 : i32
    return %arg0, %c0_i32, %c0_i32_0, %c0_i32_1 : i32, i32, i32, i32
  }
  func.func @transform_1(%arg0: i32) -> (i32, i32, i32) {
    %c0_i32 = arith.constant 0 : i32
    %c0_i32_0 = arith.constant 0 : i32
    %c0_i32_1 = arith.constant 0 : i32
    %c0_i32_2 = arith.constant 0 : i32
    return %c0_i32, %c0_i32_0, %c0_i32_1 : i32, i32, i32
  }
  func.func @transform_2(%arg0: i32) -> (i32, i32) {
    %c0_i32 = arith.constant 0 : i32
    %c0_i32_0 = arith.constant 0 : i32
    %c0_i32_1 = arith.constant 0 : i32
    return %c0_i32, %c0_i32_0 : i32, i32
  }
  func.func @transform_3(%arg0: i32) -> (i32, i32, i32) {
    %c0_i32 = arith.constant 0 : i32
    %c0_i32_0 = arith.constant 0 : i32
    %c0_i32_1 = arith.constant 0 : i32
    %c0_i32_2 = arith.constant 0 : i32
    return %c0_i32, %c0_i32_0, %c0_i32_1 : i32, i32, i32
  }
  func.func @transform_4(%arg0: i32) -> (i32, i32) {
    %c0_i32 = arith.constant 0 : i32
    %c0_i32_0 = arith.constant 0 : i32
    %c0_i32_1 = arith.constant 0 : i32
    return %c0_i32, %c0_i32_0 : i32, i32
  }
  func.func @transform_5(%arg0: i32) -> (i32, i32, i32) {
    %c0_i32 = arith.constant 0 : i32
    %c0_i32_0 = arith.constant 0 : i32
    %c0_i32_1 = arith.constant 0 : i32
    return %arg0, %c0_i32, %c0_i32_0 : i32, i32, i32
  }
}

</mosaic_0001>

<bundles_post_ra>
// kernel: run_two_blocks.3
= control target key start
LH: loop header
LB: loop body
LE: loop exit
PB: predicated region body
PF: predicated region fallthrough
CT: control target
= control target key end

     0   :  { %s4471_s18 = smov 0   ;;  %s5363_s0 = inlined_call_operand.vmem [shape: bf16[2,10,10,8], index: 0, kind: input, shape index: {}]   ;;  %s5364_s1 = inlined_call_operand.vmem [shape: bf16[9,8,8], index: 1, kind: input, shape index: {}]   ;;  %s5365_s2 = inlined_call_operand.vmem [shape: f32[1,8], index: 2, kind: input, shape index: {}]   ;;  %s5366_s3 = inlined_call_operand.vmem [shape: bf16[9,8,8], index: 3, kind: input, shape index: {}]   ;;  %s5367_s4 = inlined_call_operand.vmem [shape: f32[1,8], index: 4, kind: input, shape index: {}]   ;;  %s5368_s5 = inlined_call_operand.vmem [shape: f32[2,64,8], index: 5, kind: output, shape index: {}]  }
   0x1 LB: > { %s3665_s19 = sadd.s32 4294967295, %s4438_s18   ;;  %p3669_p0 = scmp.ge.s32.totalorder %s4438_s18, 1  ;;  %s4438_s18 = sphi %s4471_s18, %s15_s18  }
   0x2   : > { %p187_p1 = scmp.lt.s32.totalorder %s4438_s18, 3 }
   0x4   : > { %p188_p2 = pnand %p3669_p0, %p187_p1 }
   0x5   : > { %v3673_v0 = vld [vmem:[%s5364_s1 + $0x4] sm:$0xf] (!%p188_p2)  ;;  %vm385_vm0 = vcmask (!%p188_p2), 1043456   ;;  %p215_p3 = scmp.lt.s32.totalorder (!%p188_p2), %s3665_s19, 1  ;;  %v234_v2 = vld [vmem:[%s5364_s1] sm:$0xf] (!%p188_p2) }
   0x6   : > { %191 = sbr.rel (%p188_p2) target bundleno = 776 (0x308), region = 40  ;;  %4380 = vmatprep.subr.msk.bf16.mxu0 (!%p188_p2), %vm385_vm0, %v3673_v0  ;;  %v387_v1 = vsel (!%p188_p2), %vm385_vm0, %v3673_v0, 0  ;;  %vm243_vm1 = vsmask.f32 (!%p188_p2), 3328  ;;  %vm244_vm2 = vsmask.f32 (!%p188_p2), 7440 }
   0x7   : > { %4073 = vmatpush3.bf16.msra.mxu0 (!%p188_p2), %v387_v1  ;;  %vm4531_vm3 = vmor (!%p188_p2), %vm243_vm1, %vm244_vm2  ;;  %vm372_vm4 = vcmask (!%p188_p2), 64512   ;;  %v487_v40 = vsel (!%p188_p2), %vm385_vm0, %v234_v2, 0  ;;  %vm578_vm5 = vcmask (!%p188_p2), 1042432   ;;  %vm579_vm6 = vcmask (!%p188_p2), 1046532  }
   0x8   : > { %4381 = vmatprep.subr.msk.bf16.mxu0 (!%p188_p2), %vm385_vm0, %v234_v2  ;;  %vm4611_vm7 = vmor (!%p188_p2), %vm578_vm5, %vm579_vm6  ;;  %vm1756_vm8 = vcmask (!%p188_p2), 60416   ;;  %vm1758_vm9 = vcmask (!%p188_p2), 57344   ;;  %vm1880_vm10 = vsmask.f32 (!%p188_p2), 7938  ;;  %vm1886_vm11 = vsmask.f32 (!%p188_p2), 256 }
   0x9   : > { %vm4944_vm12 = vmand (!%p188_p2), %vm1756_vm8, %vm1880_vm10 }
   0xa   : > { %vm4951_vm13 = vmand (!%p188_p2), %vm1758_vm9, %vm1886_vm11 }
   0xd   : > { %s5378_s19 = smov (!%p215_p3, %s3665_s19), 1 }
   0xe   : > { %s4398_s24 = smul.u32 80, %s5378_s19 }
  0x10   : > { %s4494_s27 = scalar_lea.vmem %s5363_s0, %s4398_s24 }
  0x11   : > { %v4497_v3 = vld [vmem:[%s4494_s27] sm:$0xf]  ;;  %v4500_v4 = vld [vmem:[%s4494_s27 + $0x8] sm:$0xf]  ;;  %v4503_v5 = vld [vmem:[%s4494_s27 + $0x4] sm:$0x1] }
  0x12   : > { %v4506_v6 = vld [vmem:[%s4494_s27 + $0xc] sm:$0x1]  ;;  %v247_v7 = vshrl.u32 %v4497_v3, 16  ;;  %v250_v8 = vshll.u32 %v4497_v3, 16  ;;  %v256_v9 = vshll.u32 %v4503_v5, 16  ;;  %v261_v10 = vshrl.u32 %v4500_v4, 16 }
  0x13   : > { %v264_v11 = vshll.u32 %v4500_v4, 16  ;;  %v270_v12 = vshll.u32 %v4506_v6, 16  ;;  %v4515_v13 = vld [vmem:[%s4494_s27 + $0x10] sm:$0xf]  ;;  %v4518_v18 = vld [vmem:[%s4494_s27 + $0x18] sm:$0xf] }
  0x14   : > { %v249_v14 = vrot.slane %v247_v7, 4  ;;  %v252_v15 = vrot.slane %v250_v8, 5  ;;  %v258_v16 = vrot.slane %v256_v9, 5  ;;  %v263_v17 = vrot.slane %v261_v10, 4  ;;  %v4521_v21 = vld [vmem:[%s4494_s27 + $0x14] sm:$0x1] }
  0x15   : > { %v266_v19 = vrot.slane %v264_v11, 5  ;;  %v272_v20 = vrot.slane %v270_v12, 5  ;;  %v4524_v22 = vld [vmem:[%s4494_s27 + $0x1c] sm:$0x1]  ;;  %v275_v24 = vshrl.u32 %v4515_v13, 16  ;;  %v278_v25 = vshll.u32 %v4515_v13, 16 }
  0x16   : > { %v253_v23 = vor.u32 %v252_v15, %v249_v14  ;;  %v284_v26 = vshll.u32 %v4521_v21, 16  ;;  %v289_v29 = vshrl.u32 %v4518_v18, 16  ;;  %v292_v30 = vshll.u32 %v4518_v18, 16  ;;  %v4539_v32 = vld [vmem:[%s4494_s27 + $0x20] sm:$0xf] }
  0x17   : > { %v267_v28 = vor.u32 %v266_v19, %v263_v17  ;;  %v298_v31 = vshll.u32 %v4524_v22, 16  ;;  %v277_v34 = vrot.slane %v275_v24, 4  ;;  %v280_v35 = vrot.slane %v278_v25, 5  ;;  %v4542_v36 = vld [vmem:[%s4494_s27 + $0x28] sm:$0xf] }
  0x18   : > { %v254_v33 = vrot.slane %v253_v23, 4  ;;  %v291_v38 = vrot.slane %v289_v29, 4  ;;  %v294_v39 = vrot.slane %v292_v30, 5  ;;  %v4546_v41 = vld [vmem:[%s4494_s27 + $0x24] sm:$0x1]  ;;  %v286_v44 = vrot.slane %v284_v26, 5 }
  0x19   : > { %v268_v37 = vrot.slane %v267_v28, 4  ;;  %v281_v43 = vor.u32 %v280_v35, %v277_v34  ;;  %v300_v45 = vrot.slane %v298_v31, 5  ;;  %v4553_v48 = vld [vmem:[%s4494_s27 + $0x2c] sm:$0x1]  ;;  %v303_v49 = vshrl.u32 %v4539_v32, 16 }
  0x1a   : > { %v259_v42 = vsel %vm4531_vm3, %v254_v33, %v258_v16  ;;  %v295_v47 = vor.u32 %v294_v39, %v291_v38  ;;  %v306_v50 = vshll.u32 %v4539_v32, 16  ;;  %v312_v53 = vshll.u32 %v4546_v41, 16  ;;  %v4560_v55 = vld [vmem:[%s4494_s27 + $0x30] sm:$0xf]  ;;  %v4564_v60 = vld [vmem:[%s4494_s27 + $0x34] sm:$0x1] }
  0x1b   : > { %v273_v46 = vsel %vm4531_vm3, %v268_v37, %v272_v20  ;;  %v282_v52 = vrot.slane %v281_v43, 4  ;;  %v317_v54 = vshrl.u32 %v4542_v36, 16  ;;  %v305_v57 = vrot.slane %v303_v49, 4  ;;  %v4571_v1 = vld [vmem:[%s4494_s27 + $0x38] sm:$0xf] }
  0x1c   : > { %v3674_v51 = vcombine.low %v259_v42, %v273_v46  ;;  %v296_v56 = vrot.slane %v295_v47, 4  ;;  %v308_v58 = vrot.slane %v306_v50, 5  ;;  %v320_v59 = vshll.u32 %v4542_v36, 16  ;;  %v4576_v9 = vld [vmem:[%s4494_s27 + $0x3c] sm:$0x1] }
  0x1d   : > { %v287_v61 = vsel %vm4531_vm3, %v282_v52, %v286_v44  ;;  %v314_v62 = vrot.slane %v312_v53, 5  ;;  %v319_v63 = vrot.slane %v317_v54, 4  ;;  %v326_v0 = vshll.u32 %v4553_v48, 16  ;;  %v3698_v23 = vld [vmem:[%s5364_s1 + $0x8] sm:$0xf] }
  0x1e   : > { %4074 = vmatprep.mubr.msk.bf16.mxu0 %vm372_vm4, %v3674_v51  ;;  %v301_v2 = vsel %vm4531_vm3, %v296_v56, %v300_v45  ;;  %v309_v7 = vor.u32 %v308_v58, %v305_v57  ;;  %v322_v8 = vrot.slane %v320_v59, 5  ;;  %v331_v10 = vshrl.u32 %v4560_v55, 16  ;;  %v554_v47 = vld [vmem:[%s4494_s27] sm:$0xe]  ;;  %v555_v49 = vld [vmem:[%s4494_s27 + $0x8] sm:$0xe] }
  0x1f   : > { %v3675_v11 = vcombine.low %v287_v61, %v301_v2  ;;  %v328_v12 = vrot.slane %v326_v0, 5  ;;  %v334_v14 = vshll.u32 %v4560_v55, 16  ;;  %v340_v15 = vshll.u32 %v4564_v60, 16  ;;  %v559_v57 = vld [vmem:[%s4494_s27 + $0x28] sm:$0xe] }
  0x20   : > { %v310_v16 = vrot.slane %v309_v7, 4  ;;  %v323_v17 = vor.u32 %v322_v8, %v319_v63  ;;  %v333_v19 = vrot.slane %v331_v10, 4  ;;  %v345_v20 = vshrl.u32 %v4571_v1, 16 }
  0x21   : > { %4075 = vmatmul.mubr.msk.bf16.vlgmr.msra.gmra.mrb[0].mxu0 %vm372_vm4, %v3675_v11  ;;  %v336_v24 = vrot.slane %v334_v14, 5  ;;  %v348_v25 = vshll.u32 %v4571_v1, 16  ;;  %v354_v26 = vshll.u32 %v4576_v9, 16  ;;  %v342_v33 = vrot.slane %v340_v15, 5  ;;  %v561_v11 = vld [vmem:[%s4494_s27 + $0x38] sm:$0xe] }
  0x22   : > { %4083 = vmatpush3.bf16.msra.mxu0 %v487_v40  ;;  %v315_v28 = vsel %vm4531_vm3, %v310_v16, %v314_v62  ;;  %v324_v29 = vrot.slane %v323_v17, 4  ;;  %v347_v30 = vrot.slane %v345_v20, 4  ;;  %v3682_v45 = vcombine.low %v4497_v3, %v4500_v4  ;;  %v3724_v14 = vld [vmem:[%s4494_s27 + $0x8] sm:$0xf]  ;;  %v3726_v20 = vld [vmem:[%s4494_s27 + $0x10] sm:$0xf] }
  0x23   : > { %v337_v31 = vor.u32 %v336_v24, %v333_v19  ;;  %v350_v34 = vrot.slane %v348_v25, 5  ;;  %4382 = vmatprep.subr.msk.bf16.mxu0 %vm385_vm0, %v3698_v23  ;;  %v356_v42 = vrot.slane %v354_v26, 5  ;;  %v3683_v50 = vcombine.low %v4515_v13, %v4518_v18  ;;  %v3715_v13 = vld [vmem:[%s5364_s1 + $0xc] sm:$0xf]  ;;  %v556_v18 = vld [vmem:[%s4494_s27 + $0x10] sm:$0xe] }
  0x24   : > { %v329_v35 = vsel %vm4531_vm3, %v324_v29, %v328_v12  ;;  %v640_v51 = vsel %vm385_vm0, %v3698_v23, 0  ;;  %v3684_v3 = vcombine.low %v4539_v32, %v4542_v36  ;;  %v583_v4 = vrot.slane %v4503_v5, 5  ;;  %v557_v32 = vld [vmem:[%s4494_s27 + $0x18] sm:$0xe]  ;;  %v558_v36 = vld [vmem:[%s4494_s27 + $0x20] sm:$0xe] }
  0x25   : > { %v3676_v37 = vcombine.low %v315_v28, %v329_v35  ;;  %v338_v38 = vrot.slane %v337_v31, 4  ;;  %v351_v39 = vor.u32 %v350_v34, %v347_v30  ;;  %v587_v52 = vrot.slane %v4506_v6, 5  ;;  %v3740_v24 = vld [vmem:[%s5364_s1 + $0x10] sm:$0xf]  ;;  %v4663_v30 = vld [vmem:[%s4494_s27 + $0xc] sm:$0x1] }
  0x26   : > { %v3690_v53 = vrot.slane %v554_v47, 9  ;;  %v3691_v54 = vrot.slane %v555_v49, 9  ;;  %v591_v58 = vrot.slane %v4521_v21, 5  ;;  %v3685_v59 = vcombine.low %v4560_v55, %v4571_v1  ;;  %v560_v21 = vld [vmem:[%s4494_s27 + $0x30] sm:$0xe] }
  0x27   : > { %4078 = vmatprep.mubr.msk.bf16.mxu0 %vm372_vm4, %v3676_v37  ;;  %v343_v40 = vsel %vm4531_vm3, %v338_v38, %v342_v33  ;;  %v352_v43 = vrot.slane %v351_v39, 4  ;;  %v595_v61 = vrot.slane %v4524_v22, 5  ;;  %v3692_v63 = vrot.slane %v556_v18, 9  ;;  %v4666_v35 = vld [vmem:[%s4494_s27 + $0x14] sm:$0x1] }
  0x28   : > { %v584_v5 = vsel %vm4611_vm7, %v3690_v53, %v583_v4  ;;  %v588_v6 = vsel %vm4611_vm7, %v3691_v54, %v587_v52  ;;  %v3693_v0 = vrot.slane %v557_v32, 9  ;;  %v3694_v2 = vrot.slane %v558_v36, 9  ;;  %v3728_v39 = vld [vmem:[%s4494_s27 + $0x18] sm:$0xf]  ;;  %v3732_v47 = vld [vmem:[%s4494_s27 + $0x28] sm:$0xf] }
  0x29   : > { %v357_v44 = vsel %vm4531_vm3, %v352_v43, %v356_v42  ;;  %v3699_v62 = vcombine.low %v584_v5, %v588_v6  ;;  %v599_v7 = vrot.slane %v4546_v41, 5  ;;  %v3695_v8 = vrot.slane %v559_v57, 9  ;;  %v4412_v42 = vld [vmem:[%s4494_s27 + $0x8] ss:$8 sps:$4 sm:$0xff]   ;;  %v4413_v53 = vld [vmem:[%s4494_s27 + $0x18] ss:$8 sps:$4 sm:$0xff]  }
  0x2a   : > { %v3677_v46 = vcombine.low %v343_v40, %v357_v44  ;;  %v603_v10 = vrot.slane %v4553_v48, 5  ;;  %v592_v55 = vsel %vm4611_vm7, %v3692_v63, %v591_v58  ;;  %v596_v22 = vsel %vm4611_vm7, %v3693_v0, %v595_v61  ;;  %v3730_v40 = vld [vmem:[%s4494_s27 + $0x20] sm:$0xf]  ;;  %v3734_v49 = vld [vmem:[%s4494_s27 + $0x30] sm:$0xf] }
  0x2b   : > { %v600_v1 = vsel %vm4611_vm7, %v3694_v2, %v599_v7  ;;  %v3696_v48 = vrot.slane %v560_v21, 9  ;;  %v3700_v12 = vcombine.low %v592_v55, %v596_v22  ;;  %v607_v16 = vrot.slane %v4564_v60, 5  ;;  %v4680_v57 = vld [vmem:[%s4494_s27 + $0x1c] sm:$0x1]  ;;  %v4683_v61 = vld [vmem:[%s4494_s27 + $0x24] sm:$0x1] }
  0x2c   : > { %4079 = vmatmul.mubr.msk.bf16.gmra.mrb[4].mxu0 %vm372_vm4, %v3677_v46  ;;  %v604_v41 = vsel %vm4611_vm7, %v3695_v8, %v603_v10  ;;  %v3697_v17 = vrot.slane %v561_v11, 9  ;;  %v611_v19 = vrot.slane %v4576_v9, 5  ;;  %v759_v23 = vsel %vm385_vm0, %v3715_v13, 0  ;;  %v4414_v2 = vld [vmem:[%s4494_s27 + $0x28] ss:$8 sps:$4 sm:$0xff]  }
  0x2d   : > { %4084 = vmatprep.mubr.msk.bf16.mxu0 %vm372_vm4, %v3682_v45  ;;  %v3701_v15 = vcombine.low %v600_v1, %v604_v41  ;;  %v851_v25 = vshrl.u32 %v3724_v14, 16  ;;  %v854_v26 = vshll.u32 %v3724_v14, 16  ;;  %v865_v28 = vshrl.u32 %v3726_v20, 16  ;;  %v3765_v7 = vld [vmem:[%s5364_s1 + $0x14] sm:$0xf] }
  0x2e   : > { %v868_v60 = vshll.u32 %v3726_v20, 16  ;;  %v608_v9 = vsel %vm4611_vm7, %v3696_v48, %v607_v16  ;;  %v612_v29 = vsel %vm4611_vm7, %v3697_v17, %v611_v19  ;;  %v860_v43 = vshll.u32 %v4663_v30, 16  ;;  %v3736_v8 = vld [vmem:[%s4494_s27 + $0x38] sm:$0xf]  ;;  %v3738_v1 = vld [vmem:[%s4494_s27 + $0x40] sm:$0xf] }
  0x2f   : > { %v853_v31 = vrot.slane %v851_v25, 4  ;;  %v856_v33 = vrot.slane %v854_v26, 5  ;;  %v3702_v34 = vcombine.low %v608_v9, %v612_v29  ;;  %v867_v37 = vrot.slane %v865_v28, 4  ;;  %v4694_v48 = vld [vmem:[%s4494_s27 + $0x2c] sm:$0x1] }
  0x30   : > { %v870_v38 = vrot.slane %v868_v60, 5  ;;  %v874_v45 = vshll.u32 %v4666_v35, 16  ;;  %v879_v46 = vshrl.u32 %v3728_v39, 16  ;;  %v896_v4 = vshll.u32 %v3730_v40, 16  ;;  %v4415_v29 = vld [vmem:[%s4494_s27 + $0x38] ss:$8 sps:$4 sm:$0xff]  }
  0x31   : > { %v857_v44 = vor.u32 %v856_v33, %v853_v31  ;;  %v989_v52 = vsel %vm385_vm0, %v3740_v24, 0  ;;  %v907_v54 = vshrl.u32 %v3732_v47, 16  ;;  %v921_v5 = vshrl.u32 %v3734_v49, 16 }
  0x32   : > { %v924_v6 = vshll.u32 %v3734_v49, 16  ;;  %v862_v32 = vrot.slane %v860_v43, 5  ;;  %v876_v36 = vrot.slane %v874_v45, 5  ;;  %v881_v58 = vrot.slane %v879_v46, 4  ;;  %v4713_v49 = vld [vmem:[%s4494_s27 + $0x44] sm:$0x1] }
  0x33   : > { %v858_v18 = vrot.slane %v857_v44, 4  ;;  %v898_v0 = vrot.slane %v896_v4, 5  ;;  %v909_v10 = vrot.slane %v907_v54, 4  ;;  %v923_v55 = vrot.slane %v921_v5, 4  ;;  %v3749_v5 = vld [vmem:[%s4494_s27 + $0x8] sm:$0xe] }
  0x34   : > { %4085 = vmatmul.mubr.msk.bf16.vlgmr.msra.gmra.mrb[0].mxu0 %vm372_vm4, %v3683_v50  ;;  %v871_v50 = vor.u32 %v870_v38, %v867_v37  ;;  %v926_v22 = vrot.slane %v924_v6, 5  ;;  %v888_v41 = vshll.u32 %v4680_v57, 16  ;;  %v902_v11 = vshll.u32 %v4683_v61, 16  ;;  %v4710_v38 = vld [vmem:[%s4494_s27 + $0x3c] sm:$0x1] }
  0x35   : > { %4093 = vmatpush3.bf16.msra.mxu0 %v640_v51  ;;  %4088 = vmatprep.mubr.msk.bf16.mxu0 %vm372_vm4, %v3684_v3  ;;  %v882_v51 = vshll.u32 %v3728_v39, 16  ;;  %v893_v3 = vshrl.u32 %v3730_v40, 16  ;;  %v863_v14 = vsel %vm4531_vm3, %v858_v18, %v862_v32  ;;  %v935_v19 = vshrl.u32 %v3736_v8, 16  ;;  %v3750_v6 = vld [vmem:[%s4494_s27 + $0x10] sm:$0xe] }
  0x36   : > { %4383 = vmatprep.subr.msk.bf16.mxu0 %vm385_vm0, %v3715_v13  ;;  %v910_v13 = vshll.u32 %v3732_v47, 16  ;;  %v938_v20 = vshll.u32 %v3736_v8, 16  ;;  %v916_v26 = vshll.u32 %v4694_v48, 16  ;;  %v927_v28 = vor.u32 %v926_v22, %v923_v55  ;;  %v3751_v22 = vld [vmem:[%s4494_s27 + $0x18] sm:$0xe] }
  0x37   : > { %v895_v63 = vrot.slane %v893_v3, 4  ;;  %v890_v9 = vrot.slane %v888_v41, 5  ;;  %v904_v37 = vrot.slane %v902_v11, 5  ;;  %v937_v39 = vrot.slane %v935_v19, 4  ;;  %v3753_v41 = vld [vmem:[%s4494_s27 + $0x28] sm:$0xe] }
  0x38   : > { %v912_v21 = vrot.slane %v910_v13, 5  ;;  %v918_v45 = vrot.slane %v916_v26, 5  ;;  %v928_v46 = vrot.slane %v927_v28, 4  ;;  %v1147_v32 = vsel %vm385_vm0, %v3765_v7, 0  ;;  %v3754_v11 = vld [vmem:[%s4494_s27 + $0x30] sm:$0xe] }
  0x39   : > { %v899_v17 = vor.u32 %v898_v0, %v895_v63  ;;  %v3757_v0 = vrot.slane %v3749_v5, 9  ;;  %v3758_v8 = vrot.slane %v3750_v6, 9  ;;  %v4416_v5 = vld [vmem:[%s4494_s27 + $0x10] ss:$8 sps:$4 sm:$0xff]   ;;  %v3797_v6 = vld [vmem:[%s4494_s27 + $0x28] sm:$0xf] }
  0x3a   : > { %v913_v25 = vor.u32 %v912_v21, %v909_v10  ;;  %v1094_v10 = vrot.slane %v4666_v35, 5  ;;  %v3782_v21 = vld [vmem:[%s5364_s1 + $0x18] sm:$0xf] }
  0x3c   : > { %4089 = vmatmul.mubr.msk.bf16.gmra.mrb[4].mxu0 %vm372_vm4, %v3685_v59  ;;  %v872_v59 = vrot.slane %v871_v50, 4  ;;  %v914_v44 = vrot.slane %v913_v25, 4  ;;  %v1095_v35 = vsel %vm4611_vm7, %v3758_v8, %v1094_v10  ;;  %v3762_v25 = vrot.slane %v3754_v11, 9  ;;  %v4799_v11 = vld [vmem:[%s4494_s27 + $0x24] sm:$0x1] }
  0x3d   : > { %4094 = vmatprep.mubr.msk.bf16.mxu0 %vm372_vm4, %v3699_v62  ;;  %v884_v62 = vrot.slane %v882_v51, 5  ;;  %v944_v51 = vshll.u32 %v4710_v38, 16  ;;  %v1403_v8 = vshll.u32 %v3797_v6, 16 }
  0x3e   : > { %v919_v54 = vsel %vm4531_vm3, %v914_v44, %v918_v45 }
  0x3f   : > { %v885_v16 = vor.u32 %v884_v62, %v881_v58 }
  0x41   : > { %v886_v33 = vrot.slane %v885_v16, 4 }
  0x43   : > { %v891_v50 = vsel %vm4531_vm3, %v886_v33, %v890_v9  ;;  %v3756_v9 = vld [vmem:[%s4494_s27 + $0x40] sm:$0xe] }
  0x44   : > { %4095 = vmatmul.mubr.msk.bf16.vlgmr.msra.gmra.mrb[0].mxu0 %vm372_vm4, %v3700_v12  ;;  %v4697_v12 = vld [vmem:[%s4494_s27 + $0x34] sm:$0x1] }
  0x45   : > { %4103 = vmatpush3.bf16.msra.mxu0 %v759_v23  ;;  %4098 = vmatprep.mubr.msk.bf16.mxu0 %vm372_vm4, %v3701_v15  ;;  %v877_v15 = vsel %vm4531_vm3, %v872_v59, %v876_v36  ;;  %v949_v23 = vshrl.u32 %v3738_v1, 16  ;;  %v930_v60 = vshll.u32 %v4697_v12, 16  ;;  %v946_v36 = vrot.slane %v944_v51, 5 }
  0x46   : > { %4384 = vmatprep.subr.msk.bf16.mxu0 %vm385_vm0, %v3740_v24  ;;  %v952_v24 = vshll.u32 %v3738_v1, 16  ;;  %v3741_v31 = vcombine.low %v863_v14, %v877_v15  ;;  %v3752_v1 = vld [vmem:[%s4494_s27 + $0x20] sm:$0xe]  ;;  %v3759_v15 = vrot.slane %v3751_v22, 9  ;;  %v1110_v26 = vrot.slane %v4697_v12, 5 }
  0x47   : > { %v951_v40 = vrot.slane %v949_v23, 4  ;;  %v932_v47 = vrot.slane %v930_v60, 5  ;;  %v3760_v19 = vrot.slane %v3752_v1, 9  ;;  %v3761_v23 = vrot.slane %v3753_v41, 9  ;;  %v3755_v60 = vld [vmem:[%s4494_s27 + $0x38] sm:$0xe] }
  0x48   : > { %v954_v43 = vrot.slane %v952_v24, 5  ;;  %v1106_v24 = vrot.slane %v4694_v48, 5  ;;  %v1111_v48 = vsel %vm4611_vm7, %v3762_v25, %v1110_v26  ;;  %v3803_v25 = vld [vmem:[%s4494_s27 + $0x40] sm:$0xf] }
  0x49   : > { %v933_v13 = vsel %vm4531_vm3, %v928_v46, %v932_v47 }
  0x4a   : > { %v3743_v58 = vcombine.low %v919_v54, %v933_v13  ;;  %v3795_v13 = vld [vmem:[%s4494_s27 + $0x20] sm:$0xf] }
  0x4c   : > { %4099 = vmatmul.mubr.msk.bf16.gmra.mrb[4].mxu0 %vm372_vm4, %v3702_v34  ;;  %v900_v34 = vrot.slane %v899_v17, 4  ;;  %v1098_v17 = vrot.slane %v4680_v57, 5 }
  0x4d   : > { %4104 = vmatprep.mubr.msk.bf16.mxu0 %vm372_vm4, %v4412_v42  ;;  %v940_v42 = vrot.slane %v938_v20, 5  ;;  %v1102_v20 = vrot.slane %v4683_v61, 5  ;;  %v1107_v61 = vsel %vm4611_vm7, %v3761_v23, %v1106_v24  ;;  %v4418_v23 = vld [vmem:[%s4494_s27 + $0x30] ss:$8 sps:$4 sm:$0xff]   ;;  %v3832_v24 = vld [vmem:[%s5364_s1 + $0x20] sm:$0xf] }
  0x4e   : > { %v905_v3 = vsel %vm4531_vm3, %v900_v34, %v904_v37  ;;  %v1099_v28 = vsel %vm4611_vm7, %v3759_v15, %v1098_v17  ;;  %v3768_v33 = vcombine.low %v1107_v61, %v1111_v48  ;;  %v1114_v34 = vrot.slane %v4710_v38, 5  ;;  %v3805_v61 = vld [vmem:[%s4494_s27 + $0x48] sm:$0xf] }
  0x4f   : > { %v941_v4 = vor.u32 %v940_v42, %v937_v39  ;;  %v3742_v18 = vcombine.low %v891_v50, %v905_v3  ;;  %v1103_v57 = vsel %vm4611_vm7, %v3760_v19, %v1102_v20  ;;  %v3764_v37 = vrot.slane %v3756_v9, 9  ;;  %v3793_v42 = vld [vmem:[%s4494_s27 + $0x18] sm:$0xf]  ;;  %v4782_v50 = vld [vmem:[%s4494_s27 + $0x14] sm:$0x1] }
  0x50   : > { %v3767_v12 = vcombine.low %v1099_v28, %v1103_v57  ;;  %v1118_v39 = vrot.slane %v4713_v49, 5  ;;  %v1372_v46 = vshrl.u32 %v3793_v42, 16  ;;  %v1375_v38 = vshll.u32 %v3793_v42, 16 }
  0x51   : > { %v942_v59 = vrot.slane %v941_v4, 4  ;;  %v1405_v20 = vrot.slane %v1403_v8, 5  ;;  %v1395_v48 = vshll.u32 %v4799_v11, 16  ;;  %v1445_v42 = vshll.u32 %v3803_v25, 16 }
  0x52   : > { %v1377_v54 = vrot.slane %v1375_v38, 5 }
  0x54   : > { %4105 = vmatmul.mubr.msk.bf16.vlgmr.msra.gmra.mrb[0].mxu0 %vm372_vm4, %v4413_v53  ;;  %v958_v53 = vshll.u32 %v4713_v49, 16  ;;  %v1119_v49 = vsel %vm4611_vm7, %v3764_v37, %v1118_v39  ;;  %v1442_v39 = vshrl.u32 %v3803_v25, 16 }
  0x55   : > { %4113 = vmatpush3.bf16.msra.mxu0 %v989_v52  ;;  %4108 = vmatprep.mubr.msk.bf16.mxu0 %vm372_vm4, %v4414_v2  ;;  %v955_v52 = vor.u32 %v954_v43, %v951_v40  ;;  %v1090_v2 = vrot.slane %v4663_v30, 5  ;;  %v1266_v40 = vsel %vm385_vm0, %v3782_v21, 0  ;;  %v3807_v43 = vld [vmem:[%s5364_s1 + $0x1c] sm:$0xf] }
  0x56   : > { %4385 = vmatprep.subr.msk.bf16.mxu0 %vm385_vm0, %v3765_v7  ;;  %v960_v63 = vrot.slane %v958_v53, 5  ;;  %v947_v7 = vsel %vm4531_vm3, %v942_v59, %v946_v36  ;;  %v1374_v53 = vrot.slane %v1372_v46, 4  ;;  %v3799_v59 = vld [vmem:[%s4494_s27 + $0x30] sm:$0xf]  ;;  %v1496_v10 = vsel %vm385_vm0, %v3807_v43, 0 }
  0x57   : > { %v956_v62 = vrot.slane %v955_v52, 4  ;;  %v1091_v30 = vsel %vm4611_vm7, %v3757_v0, %v1090_v2  ;;  %v4785_v52 = vld [vmem:[%s4494_s27 + $0x1c] sm:$0x1]  ;;  %v1389_v0 = vshll.u32 %v3795_v13, 16  ;;  %v1400_v2 = vshrl.u32 %v3797_v6, 16 }
  0x58   : > { %v3766_v16 = vcombine.low %v1091_v30, %v1095_v35  ;;  %v1381_v36 = vshll.u32 %v4785_v52, 16 }
  0x59   : > { %v961_v55 = vsel %vm4531_vm3, %v956_v62, %v960_v63  ;;  %v3801_v62 = vld [vmem:[%s4494_s27 + $0x38] sm:$0xf]  ;;  %v1378_v63 = vor.u32 %v1377_v54, %v1374_v53  ;;  %v1391_v17 = vrot.slane %v1389_v0, 5  ;;  %v1402_v19 = vrot.slane %v1400_v2, 4  ;;  %v4829_v54 = vld [vmem:[%s4494_s27 + $0x44] sm:$0x1] }
  0x5a   : > { %v3744_v14 = vcombine.low %v947_v7, %v961_v55  ;;  %v1414_v7 = vshrl.u32 %v3799_v59, 16  ;;  %v1417_v55 = vshll.u32 %v3799_v59, 16  ;;  %v1428_v22 = vshrl.u32 %v3801_v62, 16 }
  0x5b   : > { %v1431_v30 = vshll.u32 %v3801_v62, 16  ;;  %v1383_v41 = vrot.slane %v1381_v36, 5  ;;  %v1379_v15 = vrot.slane %v1378_v63, 4  ;;  %v1406_v37 = vor.u32 %v1405_v20, %v1402_v19  ;;  %v4832_v62 = vld [vmem:[%s4494_s27 + $0x4c] sm:$0x1] }
  0x5c   : > { %4109 = vmatmul.mubr.msk.bf16.gmra.mrb[4].mxu0 %vm372_vm4, %v4415_v29  ;;  %v3763_v29 = vrot.slane %v3755_v60, 9  ;;  %v1416_v26 = vrot.slane %v1414_v7, 4  ;;  %v1419_v28 = vrot.slane %v1417_v55, 5  ;;  %v1430_v57 = vrot.slane %v1428_v22, 4  ;;  %v3816_v22 = vld [vmem:[%s4494_s27 + $0x10] sm:$0xe] }
  0x5d   : > { %4114 = vmatprep.mubr.msk.bf16.mxu0 %vm372_vm4, %v3741_v31  ;;  %v3791_v31 = vld [vmem:[%s4494_s27 + $0x10] sm:$0xf]  ;;  %v1433_v60 = vrot.slane %v1431_v30, 5  ;;  %v1451_v0 = vshll.u32 %v4829_v54, 16  ;;  %v3817_v30 = vld [vmem:[%s4494_s27 + $0x18] sm:$0xe] }
  0x5e   : > { %v1358_v44 = vshrl.u32 %v3791_v31, 16  ;;  %v1361_v45 = vshll.u32 %v3791_v31, 16  ;;  %v1115_v47 = vsel %vm4611_vm7, %v3763_v29, %v1114_v34  ;;  %v4816_v29 = vld [vmem:[%s4494_s27 + $0x3c] sm:$0x1]  ;;  %v3824_v20 = vrot.slane %v3816_v22, 9 }
  0x5f   : > { %v3769_v4 = vcombine.low %v1115_v47, %v1119_v49  ;;  %v1434_v46 = vor.u32 %v1433_v60, %v1430_v57  ;;  %v1437_v38 = vshll.u32 %v4816_v29, 16  ;;  %v1397_v47 = vrot.slane %v1395_v48, 5  ;;  %v4419_v49 = vld [vmem:[%s4494_s27 + $0x40] ss:$8 sps:$4 sm:$0xff]   ;;  %v3821_v48 = vld [vmem:[%s4494_s27 + $0x38] sm:$0xe] }
  0x60   : > { %v1360_v51 = vrot.slane %v1358_v44, 4  ;;  %v1363_v3 = vrot.slane %v1361_v45, 5  ;;  %v1420_v44 = vor.u32 %v1419_v28, %v1416_v26  ;;  %v3825_v25 = vrot.slane %v3817_v30, 9  ;;  %v3818_v57 = vld [vmem:[%s4494_s27 + $0x20] sm:$0xe] }
  0x61   : > { %v1439_v59 = vrot.slane %v1437_v38, 5  ;;  %v1601_v26 = vrot.slane %v4785_v52, 5  ;;  %v3820_v52 = vld [vmem:[%s4494_s27 + $0x30] sm:$0xe]  ;;  %v3823_v38 = vld [vmem:[%s4494_s27 + $0x48] sm:$0xe] }
  0x64   : > { %4115 = vmatmul.mubr.msk.bf16.vlgmr.msra.gmra.mrb[0].mxu0 %vm372_vm4, %v3742_v18  ;;  %v1367_v18 = vshll.u32 %v4782_v50, 16 }
  0x65   : > { %4123 = vmatpush3.bf16.msra.mxu0 %v1147_v32  ;;  %4118 = vmatprep.mubr.msk.bf16.mxu0 %vm372_vm4, %v3743_v58  ;;  %v1364_v32 = vor.u32 %v1363_v3, %v1360_v51  ;;  %v1386_v58 = vshrl.u32 %v3795_v13, 16  ;;  %v1444_v13 = vrot.slane %v1442_v39, 4 }
  0x66   : > { %4386 = vmatprep.subr.msk.bf16.mxu0 %vm385_vm0, %v3782_v21  ;;  %v4417_v21 = vld [vmem:[%s4494_s27 + $0x20] ss:$8 sps:$4 sm:$0xff]   ;;  %v1369_v1 = vrot.slane %v1367_v18, 5 }
  0x67   : > { %v1365_v35 = vrot.slane %v1364_v32, 4  ;;  %v1421_v32 = vrot.slane %v1420_v44, 4  ;;  %v1617_v44 = vrot.slane %v4816_v29, 5 }
  0x69   : > { %v1370_v31 = vsel %vm4531_vm3, %v1365_v35, %v1369_v1  ;;  %v1654_v1 = vsel %vm385_vm0, %v3832_v24, 0 }
  0x6c   : > { %4119 = vmatmul.mubr.msk.bf16.gmra.mrb[4].mxu0 %vm372_vm4, %v3744_v14  ;;  %v1388_v14 = vrot.slane %v1386_v58, 4  ;;  %v1435_v58 = vrot.slane %v1434_v46, 4 }
  0x6d   : > { %4124 = vmatprep.mubr.msk.bf16.mxu0 %vm372_vm4, %v3766_v16  ;;  %v4802_v16 = vld [vmem:[%s4494_s27 + $0x2c] sm:$0x1] }
  0x6e   : > { %v1409_v9 = vshll.u32 %v4802_v16, 16  ;;  %v1392_v34 = vor.u32 %v1391_v17, %v1388_v14  ;;  %v1440_v55 = vsel %vm4531_vm3, %v1435_v58, %v1439_v59  ;;  %v1609_v39 = vrot.slane %v4802_v16, 5 }
  0x70   : > { %v1393_v3 = vrot.slane %v1392_v34, 4  ;;  %v1411_v53 = vrot.slane %v1409_v9, 5  ;;  %v1605_v34 = vrot.slane %v4799_v11, 5  ;;  %v3822_v11 = vld [vmem:[%s4494_s27 + $0x40] sm:$0xe] }
  0x71   : > { %v3830_v29 = vrot.slane %v3822_v11, 9 }
  0x72   : > { %v1398_v63 = vsel %vm4531_vm3, %v1393_v3, %v1397_v47  ;;  %v3831_v3 = vrot.slane %v3823_v38, 9 }
  0x74   : > { %4125 = vmatmul.mubr.msk.bf16.vlgmr.msra.gmra.mrb[0].mxu0 %vm372_vm4, %v3767_v12  ;;  %v4813_v12 = vld [vmem:[%s4494_s27 + $0x34] sm:$0x1] }
  0x75   : > { %4133 = vmatpush3.bf16.msra.mxu0 %v1266_v40  ;;  %4128 = vmatprep.mubr.msk.bf16.mxu0 %vm372_vm4, %v3768_v33  ;;  %v1384_v33 = vsel %vm4531_vm3, %v1379_v15, %v1383_v41  ;;  %v1456_v40 = vshrl.u32 %v3805_v61, 16  ;;  %v1423_v45 = vshll.u32 %v4813_v12, 16  ;;  %v1453_v41 = vrot.slane %v1451_v0, 5 }
  0x76   : > { %4387 = vmatprep.subr.msk.bf16.mxu0 %vm385_vm0, %v3807_v43  ;;  %v1459_v43 = vshll.u32 %v3805_v61, 16  ;;  %v3808_v51 = vcombine.low %v1370_v31, %v1384_v33  ;;  %v3819_v61 = vld [vmem:[%s4494_s27 + $0x28] sm:$0xe]  ;;  %v3826_v31 = vrot.slane %v3818_v57, 9 }
  0x77   : > { %v1458_v6 = vrot.slane %v1456_v40, 4  ;;  %v1425_v36 = vrot.slane %v1423_v45, 5  ;;  %v1613_v40 = vrot.slane %v4813_v12, 5 }
  0x78   : > { %v1461_v18 = vrot.slane %v1459_v43, 5  ;;  %v3829_v43 = vrot.slane %v3821_v48, 9  ;;  %v1606_v45 = vsel %vm4611_vm7, %v3826_v31, %v1605_v34 }
  0x79   : > { %v1426_v7 = vsel %vm4531_vm3, %v1421_v32, %v1425_v36  ;;  %v4918_v32 = vld [vmem:[%s5366_s3] sm:$0xf] }
  0x7a   : > { %v3810_v14 = vcombine.low %v1426_v7, %v1440_v55  ;;  %v1618_v12 = vsel %vm4611_vm7, %v3829_v43, %v1617_v44  ;;  %v4925_v36 = vld [vmem:[%s5365_s2] ss:$0 sm:$0xff] }
  0x7c   : > { %4129 = vmatmul.mubr.msk.bf16.gmra.mrb[4].mxu0 %vm372_vm4, %v3769_v4  ;;  %v1407_v4 = vrot.slane %v1406_v37, 4  ;;  %v3827_v37 = vrot.slane %v3819_v61, 9 }
  0x7d   : > { %4134 = vmatprep.mubr.msk.bf16.mxu0 %vm372_vm4, %v4416_v5  ;;  %v1447_v5 = vrot.slane %v1445_v42, 5  ;;  %v3828_v42 = vrot.slane %v3820_v52, 9 }
  0x7e   : > { %v1412_v2 = vsel %vm4531_vm3, %v1407_v4, %v1411_v53  ;;  %v1610_v46 = vsel %vm4611_vm7, %v3827_v37, %v1609_v39  ;;  %v1625_v4 = vrot.slane %v4832_v62, 5 }
  0x7f   : > { %v1448_v8 = vor.u32 %v1447_v5, %v1444_v13  ;;  %v3809_v35 = vcombine.low %v1398_v63, %v1412_v2  ;;  %v1614_v16 = vsel %vm4611_vm7, %v3828_v42, %v1613_v40  ;;  %v3834_v47 = vcombine.low %v1606_v45, %v1610_v46 }
  0x80   : > { %v1626_v13 = vsel %vm4611_vm7, %v3831_v3, %v1625_v4 }
  0x81   : > { %v1449_v15 = vrot.slane %v1448_v8, 4 }
  0x84   : > { %4135 = vmatmul.mubr.msk.bf16.vlgmr.msra.gmra.mrb[0].mxu0 %vm372_vm4, %v4417_v21  ;;  %v1465_v21 = vshll.u32 %v4832_v62, 16 }
  0x85   : > { %4143 = vmatpush3.bf16.msra.mxu0 %v1496_v10  ;;  %4138 = vmatprep.mubr.msk.bf16.mxu0 %vm372_vm4, %v4418_v23  ;;  %v1462_v10 = vor.u32 %v1461_v18, %v1458_v6  ;;  %v1597_v23 = vrot.slane %v4782_v50, 5  ;;  %v1602_v50 = vsel %vm4611_vm7, %v3825_v25, %v1601_v26  ;;  %v4440_v6 = vmov 0  }
  0x86   : > { %4388 = vmatprep.subr.msk.bf16.mxu0 %vm385_vm0, %v3832_v24  ;;  %v1467_v19 = vrot.slane %v1465_v21, 5  ;;  %v1454_v24 = vsel %vm4531_vm3, %v1449_v15, %v1453_v41  ;;  %1764 = vst.msk [vmem:[#allocation2 + $0x18] sm:$0xf] %vm1756_vm8, %v4440_v6  ;;  %1757 = vst.msk [vmem:[#allocation2] sm:$0xf] %vm1756_vm8, %v4440_v6 }
  0x87   : > { %v1463_v17 = vrot.slane %v1462_v10, 4  ;;  %v1598_v60 = vsel %vm4611_vm7, %v3824_v20, %v1597_v23  ;;  %1765 = vst.msk [vmem:[#allocation2 + $0x1c] sm:$0x1] %vm1758_vm9, %v4440_v6  ;;  %1759 = vst.msk [vmem:[#allocation2 + $0x4] sm:$0x1] %vm1758_vm9, %v4440_v6 }
  0x88   : > { %v3833_v33 = vcombine.low %v1598_v60, %v1602_v50  ;;  %1760 = vst.msk [vmem:[#allocation2 + $0x8] sm:$0xf] %vm1756_vm8, %v4440_v6  ;;  %1762 = vst.msk [vmem:[#allocation2 + $0x10] sm:$0xf] %vm1756_vm8, %v4440_v6 }
  0x89   : > { %v1468_v28 = vsel %vm4531_vm3, %v1463_v17, %v1467_v19  ;;  %1761 = vst.msk [vmem:[#allocation2 + $0xc] sm:$0x1] %vm1758_vm9, %v4440_v6  ;;  %1763 = vst.msk [vmem:[#allocation2 + $0x14] sm:$0x1] %vm1758_vm9, %v4440_v6 }
  0x8a   : > { %v3811_v9 = vcombine.low %v1454_v24, %v1468_v28  ;;  %1766 = vst.msk [vmem:[#allocation2 + $0x20] sm:$0xf] %vm1756_vm8, %v4440_v6  ;;  %1768 = vst.msk [vmem:[#allocation2 + $0x28] sm:$0xf] %vm1756_vm8, %v4440_v6 }
  0x8b   : > { %1767 = vst.msk [vmem:[#allocation2 + $0x24] sm:$0x1] %vm1758_vm9, %v4440_v6  ;;  %1769 = vst.msk [vmem:[#allocation2 + $0x2c] sm:$0x1] %vm1758_vm9, %v4440_v6 }
  0x8c   : > { %4139 = vmatmul.mubr.msk.bf16.gmra.mrb[4].mxu0 %vm372_vm4, %v4419_v49  ;;  %v3835_v49 = vcombine.low %v1614_v16, %v1618_v12  ;;  %1770 = vst.msk [vmem:[#allocation2 + $0x30] sm:$0xf] %vm1756_vm8, %v4440_v6  ;;  %1772 = vst.msk [vmem:[#allocation2 + $0x38] sm:$0xf] %vm1756_vm8, %v4440_v6 }
  0x8d   : > { %4144 = vmatprep.mubr.msk.bf16.mxu0 %vm372_vm4, %v3808_v51  ;;  %v1621_v51 = vrot.slane %v4829_v54, 5  ;;  %1771 = vst.msk [vmem:[#allocation2 + $0x34] sm:$0x1] %vm1758_vm9, %v4440_v6  ;;  %1773 = vst.msk [vmem:[#allocation2 + $0x3c] sm:$0x1] %vm1758_vm9, %v4440_v6 }
  0x8e   : > { %1774 = vst.msk [vmem:[#allocation2 + $0x40] sm:$0xf] %vm1756_vm8, %v4440_v6  ;;  %1776 = vst.msk [vmem:[#allocation2 + $0x48] sm:$0xf] %vm1756_vm8, %v4440_v6  ;;  %v3850_v54 = vld [vmem:[%s5366_s3 + $0x4] sm:$0xf] }
  0x8f   : > { %v1622_v53 = vsel %vm4611_vm7, %v3830_v29, %v1621_v51  ;;  %1775 = vst.msk [vmem:[#allocation2 + $0x44] sm:$0x1] %vm1758_vm9, %v4440_v6  ;;  %1777 = vst.msk [vmem:[#allocation2 + $0x4c] sm:$0x1] %vm1758_vm9, %v4440_v6  ;;  %4389 = vmatprep.subr.msk.bf16.mxu1 %vm385_vm0, %v3850_v54  ;;  %v2089_v18 = vsel %vm385_vm0, %v3850_v54, 0 }
  0x90   : > { %v3836_v5 = vcombine.low %v1622_v53, %v1626_v13  ;;  %4163 = vmatpush3.bf16.msra.mxu1 %v2089_v18  ;;  %v4927_v59 = vld [vmem:[#allocation2] sm:$0xf]  ;;  %v4935_v41 = vld [vmem:[#allocation2 + $0x4] sm:$0x1]  ;;  %v1897_v24 = vld [vmem:[#allocation2 + $0x18] sm:$0xf] }
  0x91   : > { %4390 = vmatprep.subr.msk.bf16.mxu1 %vm385_vm0, %v4918_v32  ;;  %v1951_v7 = vshrl.u32 %v4927_v59, 16  ;;  %v1954_v55 = vshll.u32 %v4927_v59, 16  ;;  %v1960_v17 = vshll.u32 %v4935_v41, 16  ;;  %v1900_v28 = vld [vmem:[#allocation2 + $0x1c] sm:$0x1] }
  0x92   : > { %v1888_v40 = vld [vmem:[#allocation2 + $0xc] sm:$0x1]  ;;  %v1903_v38 = vld [vmem:[#allocation2 + $0x20] sm:$0xf]  ;;  %v1906_v3 = vld [vmem:[#allocation2 + $0x24] sm:$0x1] }
  0x93   : > { %v4938_v23 = vrot.slane %v1951_v7, 4  ;;  %v4940_v25 = vrot.slane %v1954_v55, 5  ;;  %v1891_v18 = vld [vmem:[#allocation2 + $0x10] sm:$0xf] }
  0x94   : > { %4145 = vmatmul.mubr.msk.bf16.vlgmr.msra.gmra.mrb[0].mxu0 %vm372_vm4, %v3809_v35 }
  0x95   : > { %4153 = vmatpush3.bf16.msra.mxu0 %v1654_v1  ;;  %4148 = vmatprep.mubr.msk.bf16.mxu0 %vm372_vm4, %v3810_v14 }
  0x9c   : > { %4149 = vmatmul.mubr.msk.bf16.gmra.mrb[4].mxu0 %vm372_vm4, %v3811_v9  ;;  %v1882_v9 = vld [vmem:[#allocation2 + $0x8] sm:$0xf] }
  0x9d   : > { %4154 = vmatprep.mubr.msk.bf16.mxu0 %vm372_vm4, %v3833_v33 }
  0xa4   : > { %4155 = vmatmul.mubr.msk.bf16.vlgmr.msra.gmra.mrb[0].mxu0 %vm372_vm4, %v3834_v47 }
  0xa5   : > { %4158 = vmatprep.mubr.msk.bf16.mxu0 %vm372_vm4, %v3835_v49 }
  0xac   : > { %4159 = vmatmul.mubr.msk.bf16.gmra.mrb[4].mxu0 %vm372_vm4, %v3836_v5 }
 0x177   : > { %v4156_v58 = vpop.f32.mrb[0].mxu0 }
 0x178   : > { %v1738_v62 = vadd.f32 %v4156_v58, %v4925_v36  ;;  %v1690_v63 = vpop.f32.mrb[1].mxu0  ;;  %v1894_v58 = vld [vmem:[#allocation2 + $0x14] sm:$0x1] }
 0x179   : > { %v1736_v0 = vadd.f32 %v4925_v36, %v1690_v63  ;;  %v4157_v2 = vpop.f32.mrb[2].mxu0 }
 0x17a   : > { %v1746_v8 = vmax.f32 %v1738_v62, 0.0  ;;  %v1739_v10 = vadd.f32 %v4157_v2, %v4925_v36  ;;  %v1693_v21 = vpop.f32.mrb[3].mxu0 }
 0x17b   : > { %v1744_v22 = vmax.f32 %v1736_v0, 0.0  ;;  %v1737_v30 = vadd.f32 %v4925_v36, %v1693_v21 }
 0x17c   : > { %v3976_v35 = vpack.c.bf16 %v1746_v8, %v1746_v8  ;;  %v1747_v1 = vmax.f32 %v1739_v10, 0.0 }
 0x17d   : > { %v3974_v14 = vpack.c.bf16 %v1744_v22, %v1744_v22  ;;  %v1745_v15 = vmax.f32 %v1737_v30, 0.0 }
 0x17e   : > { %v1815_v19 = vshrl.u32 %v3976_v35, 16  ;;  %v3977_v20 = vpack.c.bf16 %v1747_v1, %v1747_v1  ;;  %v1818_v26 = vshll.u32 %v3976_v35, 16 }
 0x17f   : > { %v1799_v57 = vshrl.u32 %v3974_v14, 16  ;;  %v1802_v60 = vshll.u32 %v3974_v14, 16  ;;  %v3975_v50 = vpack.c.bf16 %v1745_v15, %v1745_v15  ;;  %v4160_v61 = vpop.f32.mrb[4].mxu0  ;;  %v1921_v15 = vld [vmem:[#allocation2 + $0x38] sm:$0xf] }
 0x180   : > { %v1817_v52 = vrot.slane %v1815_v19, 7  ;;  %v1823_v31 = vshrl.u32 %v3977_v20, 16  ;;  %v1826_v33 = vshll.u32 %v3977_v20, 16  ;;  %v1742_v34 = vadd.f32 %v4160_v61, %v4925_v36  ;;  %v1706_v37 = vpop.f32.mrb[5].mxu0  ;;  %v1912_v61 = vld [vmem:[#allocation2 + $0x2c] sm:$0x1] }
 0x181   : > { %v1801_v42 = vrot.slane %v1799_v57, 7  ;;  %v1807_v43 = vshrl.u32 %v3975_v50, 16  ;;  %v1810_v44 = vshll.u32 %v3975_v50, 16  ;;  %v1740_v45 = vadd.f32 %v4925_v36, %v1706_v37  ;;  %v4161_v46 = vpop.f32.mrb[6].mxu0  ;;  %v1909_v50 = vld [vmem:[#allocation2 + $0x28] sm:$0xf] }
 0x182   : > { %v1820_v11 = vor.u32 %v1818_v26, %v1817_v52  ;;  %v1821_v16 = vrot.slane %v1817_v52, 4  ;;  %v1825_v12 = vrot.slane %v1823_v31, 7  ;;  %v1750_v47 = vmax.f32 %v1742_v34, 0.0  ;;  %v1709_v29 = vpop.f32.mrb[7].mxu0 }
 0x183   : > { %v1804_v49 = vor.u32 %v1802_v60, %v1801_v42  ;;  %v1805_v51 = vrot.slane %v1801_v42, 4  ;;  %v1809_v4 = vrot.slane %v1807_v43, 7  ;;  %v1748_v53 = vmax.f32 %v1740_v45, 0.0 }
 0x184   : > { %v1898_v13 = vsel %vm4944_vm12, %v1820_v11, %v1897_v24  ;;  %v1901_v5 = vsel %vm4951_vm13, %v1821_v16, %v1900_v28  ;;  %v1828_v6 = vor.u32 %v1826_v33, %v1825_v12  ;;  %v1829_v54 = vrot.slane %v1825_v12, 4  ;;  %v1924_v28 = vld [vmem:[#allocation2 + $0x3c] sm:$0x1]  ;;  %v1927_v16 = vld [vmem:[#allocation2 + $0x40] sm:$0xf] }
 0x185   : > { %1899 = vst [vmem:[#allocation2 + $0x18] sm:$0xf] %v1898_v13  ;;  %1902 = vst [vmem:[#allocation2 + $0x1c] sm:$0x1] %v1901_v5  ;;  %v1883_v62 = vsel %vm4944_vm12, %v1804_v49, %v1882_v9  ;;  %v1889_v63 = vsel %vm4951_vm13, %v1805_v51, %v1888_v40  ;;  %v1812_v0 = vor.u32 %v1810_v44, %v1809_v4  ;;  %v1813_v2 = vrot.slane %v1809_v4, 4 }
 0x186   : > { %1884 = vst [vmem:[#allocation2 + $0x8] sm:$0xf] %v1883_v62  ;;  %1890 = vst [vmem:[#allocation2 + $0xc] sm:$0x1] %v1889_v63  ;;  %v1904_v8 = vsel %vm4944_vm12, %v1828_v6, %v1903_v38  ;;  %v1907_v10 = vsel %vm4951_vm13, %v1829_v54, %v1906_v3  ;;  %v3980_v21 = vpack.c.bf16 %v1750_v47, %v1750_v47  ;;  %v1930_v12 = vld [vmem:[#allocation2 + $0x44] sm:$0x1] }
 0x187   : > { %v3978_v7 = vpack.c.bf16 %v1748_v53, %v1748_v53  ;;  %1905 = vst [vmem:[#allocation2 + $0x20] sm:$0xf] %v1904_v8  ;;  %1908 = vst [vmem:[#allocation2 + $0x24] sm:$0x1] %v1907_v10  ;;  %v1892_v55 = vsel %vm4944_vm12, %v1812_v0, %v1891_v18  ;;  %v1895_v22 = vsel %vm4951_vm13, %v1813_v2, %v1894_v58  ;;  %v1915_v38 = vld [vmem:[#allocation2 + $0x30] sm:$0xf] }
 0x188   : > { %v1743_v30 = vadd.f32 %v4161_v46, %v4925_v36  ;;  %v1741_v35 = vadd.f32 %v4925_v36, %v1709_v29  ;;  %1893 = vst [vmem:[#allocation2 + $0x10] sm:$0xf] %v1892_v55  ;;  %1896 = vst [vmem:[#allocation2 + $0x14] sm:$0x1] %v1895_v22  ;;  %v1847_v1 = vshrl.u32 %v3980_v21, 16  ;;  %v1850_v24 = vshll.u32 %v3980_v21, 16 }
 0x189   : > { %v1831_v14 = vshrl.u32 %v3978_v7, 16  ;;  %v1834_v60 = vshll.u32 %v3978_v7, 16  ;;  %v1957_v31 = vor.u32 %v4940_v25, %v4938_v23  ;;  %v4978_v36 = vrot.slane %v1960_v17, 5  ;;  %v1918_v53 = vld [vmem:[#allocation2 + $0x34] sm:$0x1] }
 0x18a   : > { %v1751_v19 = vmax.f32 %v1743_v30, 0.0  ;;  %v1749_v20 = vmax.f32 %v1741_v35, 0.0  ;;  %v1849_v26 = vrot.slane %v1847_v1, 7 }
 0x18b   : > { %v1833_v57 = vrot.slane %v1831_v14, 7  ;;  %v1958_v13 = vrot.slane %v1957_v31, 4 }
 0x18c   : > { %v3981_v52 = vpack.c.bf16 %v1751_v19, %v1751_v19  ;;  %v3979_v9 = vpack.c.bf16 %v1749_v20, %v1749_v20  ;;  %v1852_v33 = vor.u32 %v1850_v24, %v1849_v26  ;;  %v1853_v34 = vrot.slane %v1849_v26, 4  ;;  %v4999_v0 = vld [vmem:[#allocation2 + $0x18] sm:$0xf]  ;;  %v5011_v35 = vld [vmem:[#allocation2 + $0x1c] sm:$0x1] }
 0x18d   : > { %v1836_v37 = vor.u32 %v1834_v60, %v1833_v57  ;;  %v1837_v42 = vrot.slane %v1833_v57, 4  ;;  %v4980_v46 = vld [vmem:[#allocation2 + $0x8] sm:$0xf]  ;;  %v4990_v47 = vld [vmem:[#allocation2 + $0xc] sm:$0x1]  ;;  %v1993_v19 = vshrl.u32 %v4999_v0, 16  ;;  %v1963_v48 = vsel %vm4531_vm3, %v1958_v13, %v4978_v36 }
 0x18e   : > { %v1855_v40 = vshrl.u32 %v3981_v52, 16  ;;  %v1858_v43 = vshll.u32 %v3981_v52, 16  ;;  %v1839_v44 = vshrl.u32 %v3979_v9, 16  ;;  %v1842_v45 = vshll.u32 %v3979_v9, 16  ;;  %v5015_v20 = vld [vmem:[#allocation2 + $0x20] sm:$0xf] }
 0x18f   : > { %v1922_v11 = vsel %vm4944_vm12, %v1852_v33, %v1921_v15  ;;  %v1925_v23 = vsel %vm4951_vm13, %v1853_v34, %v1924_v28  ;;  %v1910_v17 = vsel %vm4944_vm12, %v1836_v37, %v1909_v50  ;;  %v1913_v25 = vsel %vm4951_vm13, %v1837_v42, %v1912_v61  ;;  %v4994_v4 = vld [vmem:[#allocation2 + $0x10] sm:$0xf]  ;;  %v5001_v2 = vld [vmem:[#allocation2 + $0x14] sm:$0x1]  ;;  %v5028_v34 = vld [vmem:[#allocation2 + $0x24] sm:$0x1] }
 0x190   : > { %1923 = vst [vmem:[#allocation2 + $0x38] sm:$0xf] %v1922_v11  ;;  %1926 = vst [vmem:[#allocation2 + $0x3c] sm:$0x1] %v1925_v23  ;;  %v1857_v29 = vrot.slane %v1855_v40, 7  ;;  %v1841_v49 = vrot.slane %v1839_v44, 7 }
 0x191   : > { %1911 = vst [vmem:[#allocation2 + $0x28] sm:$0xf] %v1910_v17  ;;  %1914 = vst [vmem:[#allocation2 + $0x2c] sm:$0x1] %v1913_v25  ;;  %v1965_v51 = vshrl.u32 %v4980_v46, 16  ;;  %v1968_v3 = vshll.u32 %v4980_v46, 16 }
 0x192   : > { %v1974_v5 = vshll.u32 %v4990_v47, 16  ;;  %v1979_v6 = vshrl.u32 %v4994_v4, 16  ;;  %v1982_v54 = vshll.u32 %v4994_v4, 16  ;;  %v1860_v18 = vor.u32 %v1858_v43, %v1857_v29 }
 0x193   : > { %v1861_v58 = vrot.slane %v1857_v29, 4  ;;  %v1844_v62 = vor.u32 %v1842_v45, %v1841_v49  ;;  %v1845_v63 = vrot.slane %v1841_v49, 4  ;;  %v1967_v8 = vrot.slane %v1965_v51, 4 }
 0x194   : > { %v1970_v10 = vrot.slane %v1968_v3, 5  ;;  %v1981_v21 = vrot.slane %v1979_v6, 4  ;;  %v1928_v7 = vsel %vm4944_vm12, %v1860_v18, %v1927_v16  ;;  %v1984_v14 = vrot.slane %v1982_v54, 5 }
 0x195   : > { %v1931_v55 = vsel %vm4951_vm13, %v1861_v58, %v1930_v12  ;;  %v1916_v22 = vsel %vm4944_vm12, %v1844_v62, %v1915_v38  ;;  %v1919_v30 = vsel %vm4951_vm13, %v1845_v63, %v1918_v53  ;;  %1929 = vst [vmem:[#allocation2 + $0x40] sm:$0xf] %v1928_v7  ;;  %v1988_v15 = vshll.u32 %v5001_v2, 16  ;;  %v3875_v58 = vld [vmem:[%s5366_s3 + $0x8] sm:$0xf] }
 0x196   : > { %1932 = vst [vmem:[#allocation2 + $0x44] sm:$0x1] %v1931_v55  ;;  %1917 = vst [vmem:[#allocation2 + $0x30] sm:$0xf] %v1916_v22  ;;  %v1971_v1 = vor.u32 %v1970_v10, %v1967_v8  ;;  %v1976_v39 = vrot.slane %v1974_v5, 5  ;;  %v1996_v26 = vshll.u32 %v4999_v0, 16  ;;  %v1985_v28 = vor.u32 %v1984_v14, %v1981_v21 }
 0x197   : > { %1920 = vst [vmem:[#allocation2 + $0x34] sm:$0x1] %v1919_v30  ;;  %v1995_v57 = vrot.slane %v1993_v19, 4  ;;  %v2002_v60 = vshll.u32 %v5011_v35, 16  ;;  %v2007_v52 = vshrl.u32 %v5015_v20, 16  ;;  %v2010_v9 = vshll.u32 %v5015_v20, 16 }
 0x198   : > { %v1972_v24 = vrot.slane %v1971_v1, 4  ;;  %v5022_v50 = vld [vmem:[#allocation2 + $0x28] sm:$0xf]  ;;  %v1998_v61 = vrot.slane %v1996_v26, 5  ;;  %v1986_v33 = vrot.slane %v1985_v28, 4  ;;  %v1990_v36 = vrot.slane %v1988_v15, 5 }
 0x199   : > { %v2021_v37 = vshrl.u32 %v5022_v50, 16  ;;  %v5031_v43 = vld [vmem:[#allocation2 + $0x2c] sm:$0x1]  ;;  %v2009_v44 = vrot.slane %v2007_v52, 4  ;;  %v2012_v45 = vrot.slane %v2010_v9, 5  ;;  %v2004_v11 = vrot.slane %v2002_v60, 5 }
 0x19a   : > { %v1977_v31 = vsel %vm4531_vm3, %v1972_v24, %v1976_v39  ;;  %v1999_v40 = vor.u32 %v1998_v61, %v1995_v57  ;;  %v2189_v23 = vsel %vm385_vm0, %v4918_v32, 0  ;;  %v2024_v25 = vshll.u32 %v5022_v50, 16  ;;  %v5036_v16 = vld [vmem:[#allocation2 + $0x38] sm:$0xf]  ;;  %v5055_v8 = vld [vmem:[#allocation2 + $0x3c] sm:$0x1] }
 0x19b   : > { %v3851_v42 = vcombine.low %v1963_v48, %v1977_v31  ;;  %v2023_v17 = vrot.slane %v2021_v37, 4  ;;  %v1991_v12 = vsel %vm4531_vm3, %v1986_v33, %v1990_v36  ;;  %v2013_v29 = vor.u32 %v2012_v45, %v2009_v44  ;;  %v2256_v37 = vld [vmem:[#allocation2] sm:$0xe] }
 0x19c   : > { %v2000_v38 = vrot.slane %v1999_v40, 4  ;;  %v2016_v49 = vshll.u32 %v5028_v34, 16  ;;  %v2026_v3 = vrot.slane %v2024_v25, 5  ;;  %v2030_v53 = vshll.u32 %v5031_v43, 16 }
 0x19d   : > { %4164 = vmatprep.mubr.msk.bf16.mxu1 %vm372_vm4, %v3851_v42  ;;  %v5042_v51 = vld [vmem:[#allocation2 + $0x30] sm:$0xf]  ;;  %v2014_v54 = vrot.slane %v2013_v29, 4  ;;  %v2049_v18 = vshrl.u32 %v5036_v16, 16  ;;  %v2052_v22 = vshll.u32 %v5036_v16, 16  ;;  %v2058_v48 = vshll.u32 %v5055_v8, 16 }
 0x19e   : > { %v5045_v32 = vld [vmem:[#allocation2 + $0x34] sm:$0x1]  ;;  %v2035_v13 = vshrl.u32 %v5042_v51, 16  ;;  %v2038_v5 = vshll.u32 %v5042_v51, 16  ;;  %v2005_v6 = vsel %vm4531_vm3, %v2000_v38, %v2004_v11  ;;  %v2027_v63 = vor.u32 %v2026_v3, %v2023_v17  ;;  %v2257_v42 = vld [vmem:[#allocation2 + $0x8] sm:$0xe] }
 0x19f   : > { %v3852_v62 = vcombine.low %v1991_v12, %v2005_v6  ;;  %v2044_v7 = vshll.u32 %v5045_v32, 16  ;;  %v2051_v55 = vrot.slane %v2049_v18, 4  ;;  %v2018_v30 = vrot.slane %v2016_v49, 5  ;;  %v3884_v11 = vld [vmem:[%s5366_s3 + $0xc] sm:$0xf] }
 0x1a0   : > { %v2037_v10 = vrot.slane %v2035_v13, 4  ;;  %v2040_v21 = vrot.slane %v2038_v5, 5  ;;  %v2028_v1 = vrot.slane %v2027_v63, 4  ;;  %v2032_v14 = vrot.slane %v2030_v53, 5  ;;  %v2260_v29 = vld [vmem:[#allocation2 + $0x20] sm:$0xe] }
 0x1a1   : > { %4165 = vmatmul.mubr.msk.bf16.vlgmr.msra.gmra.mrb[0].mxu1 %vm372_vm4, %v3852_v62  ;;  %v2054_v19 = vrot.slane %v2052_v22, 5  ;;  %v2019_v39 = vsel %vm4531_vm3, %v2014_v54, %v2018_v30  ;;  %v2046_v57 = vrot.slane %v2044_v7, 5  ;;  %v2060_v9 = vrot.slane %v2058_v48, 5  ;;  %v2532_v30 = vld [vmem:[#allocation2 + $0x8] sm:$0xf] }
 0x1a2   : > { %v2041_v15 = vor.u32 %v2040_v21, %v2037_v10  ;;  %4173 = vmatpush3.bf16.msra.mxu1 %v2189_v23  ;;  %v2033_v26 = vsel %vm4531_vm3, %v2028_v1, %v2032_v14  ;;  %v3859_v36 = vcombine.low %v4927_v59, %v4980_v46  ;;  %v3860_v40 = vcombine.low %v4994_v4, %v4999_v0  ;;  %v3893_v10 = vld [vmem:[%s5366_s3 + $0x10] sm:$0xf] }
 0x1a3   : > { %4391 = vmatprep.subr.msk.bf16.mxu1 %vm385_vm0, %v3875_v58  ;;  %v3853_v28 = vcombine.low %v2019_v39, %v2033_v26  ;;  %v2055_v60 = vor.u32 %v2054_v19, %v2051_v55  ;;  %v2339_v44 = vsel %vm385_vm0, %v3875_v58, 0  ;;  %v3861_v45 = vcombine.low %v5015_v20, %v5022_v50  ;;  %v2258_v20 = vld [vmem:[#allocation2 + $0x10] sm:$0xe]  ;;  %v2261_v50 = vld [vmem:[#allocation2 + $0x28] sm:$0xe] }
 0x1a4   : > { %v2042_v24 = vrot.slane %v2041_v15, 4  ;;  %v2282_v59 = vrot.slane %v4935_v41, 5  ;;  %v2286_v46 = vrot.slane %v4990_v47, 5  ;;  %v3867_v23 = vrot.slane %v2256_v37, 9  ;;  %v2259_v47 = vld [vmem:[#allocation2 + $0x18] sm:$0xe] }
 0x1a5   : > { %4168 = vmatprep.mubr.msk.bf16.mxu1 %vm372_vm4, %v3853_v28  ;;  %v2056_v52 = vrot.slane %v2055_v60, 4  ;;  %v3868_v17 = vrot.slane %v2257_v42, 9  ;;  %v3862_v41 = vcombine.low %v5042_v51, %v5036_v16  ;;  %v2290_v25 = vrot.slane %v5001_v2, 5  ;;  %v2262_v51 = vld [vmem:[#allocation2 + $0x30] sm:$0xe] }
 0x1a6   : > { %v2047_v61 = vsel %vm4531_vm3, %v2042_v24, %v2046_v57  ;;  %v2283_v4 = vsel %vm4611_vm7, %v3867_v23, %v2282_v59  ;;  %v3869_v38 = vrot.slane %v2258_v20, 9  ;;  %v3872_v49 = vrot.slane %v2261_v50, 9  ;;  %v2263_v58 = vld [vmem:[#allocation2 + $0x38] sm:$0xe]  ;;  %v2534_v55 = vld [vmem:[#allocation2 + $0x10] sm:$0xf] }
 0x1a7   : > { %v2061_v31 = vsel %vm4531_vm3, %v2056_v52, %v2060_v9  ;;  %v2287_v0 = vsel %vm4611_vm7, %v3868_v17, %v2286_v46  ;;  %v2302_v3 = vrot.slane %v5031_v43, 5  ;;  %v2294_v53 = vrot.slane %v5011_v35, 5  ;;  %v4424_v39 = vld [vmem:[#allocation2 + $0x8] ss:$8 sps:$4 sm:$0xff]   ;;  %v2538_v24 = vld [vmem:[#allocation2 + $0x20] sm:$0xf] }
 0x1a8   : > { %v3854_v33 = vcombine.low %v2047_v61, %v2061_v31  ;;  %v3876_v12 = vcombine.low %v2283_v4, %v2287_v0  ;;  %v3870_v13 = vrot.slane %v2259_v47, 9  ;;  %v3871_v5 = vrot.slane %v2260_v29, 9  ;;  %v2542_v28 = vld [vmem:[#allocation2 + $0x30] sm:$0xf]  ;;  %v2536_v61 = vld [vmem:[#allocation2 + $0x18] sm:$0xf] }
 0x1a9   : > { %v2298_v6 = vrot.slane %v5028_v34, 5  ;;  %v2291_v16 = vsel %vm4611_vm7, %v3869_v38, %v2290_v25  ;;  %v2303_v2 = vsel %vm4611_vm7, %v3872_v49, %v2302_v3  ;;  %v2457_v43 = vsel %vm385_vm0, %v3884_v11, 0  ;;  %v5123_v52 = vld [vmem:[#allocation2 + $0x14] sm:$0x1]  ;;  %v4425_v59 = vld [vmem:[#allocation2 + $0x18] ss:$8 sps:$4 sm:$0xff]  }
 0x1aa   : > { %4169 = vmatmul.mubr.msk.bf16.gmra.mrb[4].mxu1 %vm372_vm4, %v3854_v33  ;;  %v2295_v54 = vsel %vm4611_vm7, %v3870_v13, %v2294_v53  ;;  %v3873_v63 = vrot.slane %v2262_v51, 9  ;;  %v2306_v34 = vrot.slane %v5045_v32, 5  ;;  %v3874_v21 = vrot.slane %v2263_v58, 9  ;;  %v2540_v33 = vld [vmem:[#allocation2 + $0x28] sm:$0xf] }
 0x1ab   : > { %4174 = vmatprep.mubr.msk.bf16.mxu1 %vm372_vm4, %v3859_v36  ;;  %v3877_v18 = vcombine.low %v2291_v16, %v2295_v54  ;;  %v2299_v35 = vsel %vm4611_vm7, %v3871_v5, %v2298_v6  ;;  %v2310_v7 = vrot.slane %v5055_v8, 5  ;;  %v2563_v32 = vshrl.u32 %v2534_v55, 16  ;;  %v4426_v0 = vld [vmem:[#allocation2 + $0x28] ss:$8 sps:$4 sm:$0xff]   ;;  %v5132_v20 = vld [vmem:[%s5366_s3 + $0x14] sm:$0xf] }
 0x1ac   : > { %v3878_v62 = vcombine.low %v2299_v35, %v2303_v2  ;;  %v2307_v22 = vsel %vm4611_vm7, %v3873_v63, %v2306_v34  ;;  %v2566_v1 = vshll.u32 %v2534_v55, 16  ;;  %v2549_v19 = vshrl.u32 %v2532_v30, 16  ;;  %v2546_v29 = vld [vmem:[#allocation2 + $0x40] sm:$0xf]  ;;  %v5137_v49 = vld [vmem:[#allocation2 + $0x24] sm:$0x1] }
 0x1ad   : > { %v2311_v14 = vsel %vm4611_vm7, %v3874_v21, %v2310_v7  ;;  %v2552_v48 = vshll.u32 %v2532_v30, 16  ;;  %v2565_v26 = vrot.slane %v2563_v32, 4  ;;  %v2591_v9 = vshrl.u32 %v2538_v24, 16  ;;  %v2544_v2 = vld [vmem:[#allocation2 + $0x38] sm:$0xf] }
 0x1ae   : > { %v3879_v15 = vcombine.low %v2307_v22, %v2311_v14  ;;  %v2568_v8 = vrot.slane %v2566_v1, 5  ;;  %v2551_v57 = vrot.slane %v2549_v19, 4  ;;  %v2594_v31 = vshll.u32 %v2538_v24, 16  ;;  %v5141_v51 = vld [vmem:[#allocation2 + $0x1c] sm:$0x1] }
 0x1af   : > { %v2554_v60 = vrot.slane %v2552_v48, 5  ;;  %v2619_v37 = vshrl.u32 %v2542_v28, 16  ;;  %v2622_v42 = vshll.u32 %v2542_v28, 16  ;;  %v2572_v23 = vshll.u32 %v5123_v52, 16  ;;  %v5148_v21 = vld [vmem:[#allocation2 + $0x2c] sm:$0x1] }
 0x1b0   : > { %v2569_v36 = vor.u32 %v2568_v8, %v2565_v26  ;;  %v2605_v17 = vshrl.u32 %v2540_v33, 16  ;;  %v2608_v4 = vshll.u32 %v2540_v33, 16  ;;  %v2593_v50 = vrot.slane %v2591_v9, 4  ;;  %v4427_v22 = vld [vmem:[#allocation2 + $0x38] ss:$8 sps:$4 sm:$0xff]  }
 0x1b1   : > { %v2555_v46 = vor.u32 %v2554_v60, %v2551_v57  ;;  %v2624_v38 = vrot.slane %v2622_v42, 5  ;;  %v2574_v5 = vrot.slane %v2572_v23, 5  ;;  %v2650_v35 = vshll.u32 %v2546_v29, 16  ;;  %v2763_v23 = vld [vmem:[#allocation2 + $0x10] sm:$0xe] }
 0x1b2   : > { %4175 = vmatmul.mubr.msk.bf16.vlgmr.msra.gmra.mrb[0].mxu1 %vm372_vm4, %v3860_v40  ;;  %v2687_v40 = vsel %vm385_vm0, %v3893_v10, 0  ;;  %v2570_v25 = vrot.slane %v2569_v36, 4  ;;  %v2607_v6 = vrot.slane %v2605_v17, 4  ;;  %v2610_v16 = vrot.slane %v2608_v4, 5 }
 0x1b3   : > { %4183 = vmatpush3.bf16.msra.mxu1 %v2339_v44  ;;  %4178 = vmatprep.mubr.msk.bf16.mxu1 %vm372_vm4, %v3861_v45  ;;  %v5126_v44 = vld [vmem:[#allocation2 + $0xc] sm:$0x1]  ;;  %v2577_v45 = vshrl.u32 %v2536_v61, 16  ;;  %v2556_v13 = vrot.slane %v2555_v46, 4  ;;  %v2633_v7 = vshrl.u32 %v2544_v2, 16  ;;  %v2636_v55 = vshll.u32 %v2544_v2, 16 }
 0x1b4   : > { %4392 = vmatprep.subr.msk.bf16.mxu1 %vm385_vm0, %v3884_v11  ;;  %v2580_v11 = vshll.u32 %v2536_v61, 16  ;;  %v2558_v47 = vshll.u32 %v5126_v44, 16  ;;  %v2586_v32 = vshll.u32 %v5141_v51, 16  ;;  %v2611_v1 = vor.u32 %v2610_v16, %v2607_v6  ;;  %v2765_v2 = vld [vmem:[#allocation2 + $0x20] sm:$0xe] }
 0x1b5   : > { %v2579_v3 = vrot.slane %v2577_v45, 4  ;;  %v2614_v26 = vshll.u32 %v5148_v21, 16  ;;  %v2635_v57 = vrot.slane %v2633_v7, 4  ;;  %v2638_v60 = vrot.slane %v2636_v55, 5  ;;  %v5163_v45 = vld [vmem:[#allocation2 + $0x3c] sm:$0x1] }
 0x1b6   : > { %v2582_v53 = vrot.slane %v2580_v11, 5  ;;  %v2560_v58 = vrot.slane %v2558_v47, 5  ;;  %v2612_v61 = vrot.slane %v2611_v1, 4  ;;  %v2588_v33 = vrot.slane %v2586_v32, 5 }
 0x1b7   : > { %v2616_v42 = vrot.slane %v2614_v26, 5  ;;  %v2845_v4 = vsel %vm385_vm0, %v5132_v20, 0  ;;  %v2804_v32 = vrot.slane %v5148_v21, 5 }
 0x1b8   : > { %v2583_v34 = vor.u32 %v2582_v53, %v2579_v3  ;;  %v2561_v30 = vsel %vm4531_vm3, %v2556_v13, %v2560_v58  ;;  %v2788_v13 = vrot.slane %v5126_v44, 5  ;;  %v2764_v58 = vld [vmem:[#allocation2 + $0x18] sm:$0xe] }
 0x1b9   : > { %v3904_v55 = vrot.slane %v2764_v58, 9 }
 0x1ba   : > { %4179 = vmatmul.mubr.msk.bf16.gmra.mrb[4].mxu1 %vm372_vm4, %v3862_v41  ;;  %v2596_v41 = vrot.slane %v2594_v31, 5  ;;  %v2584_v24 = vrot.slane %v2583_v34, 4  ;;  %v5157_v31 = vld [vmem:[#allocation2 + $0x44] sm:$0x1]  ;;  %v2766_v34 = vld [vmem:[#allocation2 + $0x28] sm:$0xe] }
 0x1bb   : > { %4184 = vmatprep.mubr.msk.bf16.mxu1 %vm372_vm4, %v3876_v12  ;;  %v2621_v12 = vrot.slane %v2619_v37, 4  ;;  %v2656_v46 = vshll.u32 %v5157_v31, 16  ;;  %v2816_v21 = vrot.slane %v5157_v31, 5 }
 0x1bc   : > { %v2597_v54 = vor.u32 %v2596_v41, %v2593_v50  ;;  %v2589_v11 = vsel %vm4531_vm3, %v2584_v24, %v2588_v33  ;;  %v2642_v41 = vshll.u32 %v5163_v45, 16 }
 0x1bd   : > { %v2625_v63 = vor.u32 %v2624_v38, %v2621_v12  ;;  %v3919_v12 = vld [vmem:[%s5366_s3 + $0x18] sm:$0xf]  ;;  %v3903_v38 = vrot.slane %v2763_v23, 9  ;;  %v2658_v3 = vrot.slane %v2656_v46, 5  ;;  %v3047_v46 = vld [vmem:[#allocation2 + $0x30] sm:$0xf] }
 0x1be   : > { %v2598_v19 = vrot.slane %v2597_v54, 4  ;;  %v2767_v54 = vld [vmem:[#allocation2 + $0x30] sm:$0xe] }
 0x1bf   : > { %v2626_v8 = vrot.slane %v2625_v63, 4  ;;  %v2800_v63 = vrot.slane %v5137_v49, 5 }
 0x1c2   : > { %4185 = vmatmul.mubr.msk.bf16.vlgmr.msra.gmra.mrb[0].mxu1 %vm372_vm4, %v3877_v18  ;;  %v5143_v18 = vld [vmem:[#allocation2 + $0x34] sm:$0x1] }
 0x1c3   : > { %4193 = vmatpush3.bf16.msra.mxu1 %v2457_v43  ;;  %4188 = vmatprep.mubr.msk.bf16.mxu1 %vm372_vm4, %v3878_v62  ;;  %v2647_v43 = vshrl.u32 %v2546_v29, 16  ;;  %v2575_v62 = vsel %vm4531_vm3, %v2570_v25, %v2574_v5  ;;  %v2628_v14 = vshll.u32 %v5143_v18, 16  ;;  %v2762_v25 = vld [vmem:[#allocation2 + $0x8] sm:$0xe]  ;;  %v2792_v29 = vrot.slane %v5123_v52, 5 }
 0x1c4   : > { %4393 = vmatprep.subr.msk.bf16.mxu1 %vm385_vm0, %v3893_v10  ;;  %v2600_v10 = vshll.u32 %v5137_v49, 16  ;;  %v3902_v53 = vrot.slane %v2762_v25, 9  ;;  %v2644_v5 = vrot.slane %v2642_v41, 5  ;;  %v2808_v7 = vrot.slane %v5143_v18, 5 }
 0x1c5   : > { %v2649_v48 = vrot.slane %v2647_v43, 4  ;;  %v2630_v9 = vrot.slane %v2628_v14, 5  ;;  %v2793_v16 = vsel %vm4611_vm7, %v3903_v38, %v2792_v29  ;;  %v2769_v14 = vld [vmem:[#allocation2 + $0x40] sm:$0xe]  ;;  %v2964_v18 = vsel %vm385_vm0, %v3919_v12, 0 }
 0x1c6   : > { %v2602_v28 = vrot.slane %v2600_v10, 5  ;;  %v3907_v10 = vrot.slane %v2767_v54, 9  ;;  %v3909_v26 = vrot.slane %v2769_v14, 9  ;;  %v3115_v38 = vshll.u32 %v3047_v46, 16  ;;  %v3053_v29 = vld [vmem:[#allocation2 + $0x48] sm:$0xf] }
 0x1c7   : > { %v4430_v54 = vld [vmem:[#allocation2 + $0x30] ss:$8 sps:$4 sm:$0xff]  }
 0x1c8   : > { %v2603_v36 = vsel %vm4531_vm3, %v2598_v19, %v2602_v28  ;;  %v2809_v49 = vsel %vm4611_vm7, %v3907_v10, %v2808_v7  ;;  %v2812_v28 = vrot.slane %v5163_v45, 5  ;;  %v3051_v10 = vld [vmem:[#allocation2 + $0x40] sm:$0xf] }
 0x1c9   : > { %v3895_v17 = vcombine.low %v2589_v11, %v2603_v36 }
 0x1ca   : > { %4189 = vmatmul.mubr.msk.bf16.gmra.mrb[4].mxu1 %vm372_vm4, %v3879_v15  ;;  %v3894_v15 = vcombine.low %v2561_v30, %v2575_v62  ;;  %v3905_v62 = vrot.slane %v2765_v2, 9  ;;  %v3906_v30 = vrot.slane %v2766_v34, 9  ;;  %v3117_v34 = vrot.slane %v3115_v38, 5 }
 0x1cb   : > { %4194 = vmatprep.mubr.msk.bf16.mxu1 %vm372_vm4, %v4424_v39  ;;  %v2652_v39 = vrot.slane %v2650_v35, 5  ;;  %v2789_v35 = vsel %vm4611_vm7, %v3902_v53, %v2788_v13 }
 0x1cc   : > { %v3911_v44 = vcombine.low %v2789_v35, %v2793_v16  ;;  %v2801_v1 = vsel %vm4611_vm7, %v3905_v62, %v2800_v63 }
 0x1cd   : > { %v2653_v37 = vor.u32 %v2652_v39, %v2649_v48  ;;  %v2805_v48 = vsel %vm4611_vm7, %v3906_v30, %v2804_v32  ;;  %v3157_v30 = vshll.u32 %v3053_v29, 16 }
 0x1ce   : > { %v3913_v39 = vcombine.low %v2805_v48, %v2809_v49  ;;  %v5234_v49 = vld [vmem:[#allocation2 + $0x2c] sm:$0x1]  ;;  %v5238_v48 = vld [vmem:[#allocation2 + $0x34] sm:$0x1] }
 0x1cf   : > { %v2654_v47 = vrot.slane %v2653_v37, 4 }
 0x1d1   : > { %v2659_v6 = vsel %vm4531_vm3, %v2654_v47, %v2658_v3  ;;  %v3049_v47 = vld [vmem:[#allocation2 + $0x38] sm:$0xf]  ;;  %v5221_v3 = vld [vmem:[#allocation2 + $0x1c] sm:$0x1] }
 0x1d2   : > { %4195 = vmatmul.mubr.msk.bf16.vlgmr.msra.gmra.mrb[0].mxu1 %vm372_vm4, %v4425_v59  ;;  %v2639_v59 = vor.u32 %v2638_v60, %v2635_v57  ;;  %v3039_v57 = vld [vmem:[#allocation2 + $0x10] sm:$0xf]  ;;  %v2817_v60 = vsel %vm4611_vm7, %v3909_v26, %v2816_v21  ;;  %v3126_v2 = vshrl.u32 %v3049_v47, 16  ;;  %v3079_v62 = vshll.u32 %v5221_v3, 16 }
 0x1d3   : > { %4203 = vmatpush3.bf16.msra.mxu1 %v2687_v40  ;;  %4198 = vmatprep.mubr.msk.bf16.mxu1 %vm372_vm4, %v4426_v0  ;;  %v2631_v40 = vsel %vm4531_vm3, %v2626_v8, %v2630_v9  ;;  %v2617_v0 = vsel %vm4531_vm3, %v2612_v61, %v2616_v42  ;;  %v3928_v8 = vld [vmem:[%s5366_s3 + $0x1c] sm:$0xf]  ;;  %v3041_v61 = vld [vmem:[#allocation2 + $0x18] sm:$0xf]  ;;  %v3056_v9 = vshrl.u32 %v3039_v57, 16  ;;  %v3059_v31 = vshll.u32 %v3039_v57, 16 }
 0x1d4   : > { %4394 = vmatprep.subr.msk.bf16.mxu1 %vm385_vm0, %v5132_v20  ;;  %v3896_v50 = vcombine.low %v2617_v0, %v2631_v40  ;;  %v2640_v20 = vrot.slane %v2639_v59, 4  ;;  %v3070_v37 = vshrl.u32 %v3041_v61, 16  ;;  %v3073_v42 = vshll.u32 %v3041_v61, 16  ;;  %v4428_v40 = vld [vmem:[#allocation2 + $0x10] ss:$8 sps:$4 sm:$0xff]  }
 0x1d5   : > { %v3058_v11 = vrot.slane %v3056_v9, 4  ;;  %v3061_v45 = vrot.slane %v3059_v31, 5  ;;  %v3045_v59 = vld [vmem:[#allocation2 + $0x28] sm:$0xf]  ;;  %v5218_v0 = vld [vmem:[#allocation2 + $0x14] sm:$0x1] }
 0x1d6   : > { %v2645_v52 = vsel %vm4531_vm3, %v2640_v20, %v2644_v5  ;;  %v3072_v23 = vrot.slane %v3070_v37, 4  ;;  %v3101_v41 = vshll.u32 %v3045_v59, 16  ;;  %v3194_v20 = vsel %vm385_vm0, %v3928_v8, 0  ;;  %v4429_v5 = vld [vmem:[#allocation2 + $0x20] ss:$8 sps:$4 sm:$0xff]  }
 0x1d7   : > { %v3897_v43 = vcombine.low %v2645_v52, %v2659_v6  ;;  %v3062_v25 = vor.u32 %v3061_v45, %v3058_v11  ;;  %v3065_v6 = vshll.u32 %v5218_v0, 16  ;;  %v3129_v52 = vshll.u32 %v3049_v47, 16  ;;  %v5243_v57 = vld [vmem:[#allocation2 + $0x3c] sm:$0x1]  ;;  %v4431_v9 = vld [vmem:[#allocation2 + $0x40] ss:$8 sps:$4 sm:$0xff]  }
 0x1d8   : > { %v3103_v58 = vrot.slane %v3101_v41, 5  ;;  %v3128_v14 = vrot.slane %v3126_v2, 4  ;;  %v3081_v21 = vrot.slane %v3079_v62, 5  ;;  %v3159_v61 = vrot.slane %v3157_v30, 5  ;;  %v5252_v41 = vld [vmem:[#allocation2 + $0x44] sm:$0x1] }
 0x1d9   : > { %v3067_v32 = vrot.slane %v3065_v6, 5  ;;  %v5254_v47 = vld [vmem:[#allocation2 + $0x4c] sm:$0x1]  ;;  %v3149_v6 = vshll.u32 %v5252_v41, 16 }
 0x1da   : > { %4199 = vmatmul.mubr.msk.bf16.gmra.mrb[4].mxu1 %vm372_vm4, %v4427_v22  ;;  %v2796_v22 = vrot.slane %v5141_v51, 5  ;;  %v2768_v51 = vld [vmem:[#allocation2 + $0x38] sm:$0xe] }
 0x1db   : > { %4204 = vmatprep.mubr.msk.bf16.mxu1 %vm372_vm4, %v3894_v15  ;;  %v3908_v24 = vrot.slane %v2768_v51, 9  ;;  %v3140_v51 = vshrl.u32 %v3051_v10, 16 }
 0x1dc   : > { %v2797_v15 = vsel %vm4611_vm7, %v3904_v55, %v2796_v22  ;;  %v3154_v22 = vshrl.u32 %v3053_v29, 16 }
 0x1dd   : > { %v3912_v19 = vcombine.low %v2797_v15, %v2801_v1  ;;  %v2813_v33 = vsel %vm4611_vm7, %v3908_v24, %v2812_v28  ;;  %v3131_v15 = vrot.slane %v3129_v52, 5  ;;  %v3107_v28 = vshll.u32 %v5234_v49, 16 }
 0x1de   : > { %v3914_v36 = vcombine.low %v2813_v33, %v2817_v60  ;;  %v3156_v60 = vrot.slane %v3154_v22, 4  ;;  %v3142_v11 = vrot.slane %v3140_v51, 4 }
 0x1df   : > { %v3132_v37 = vor.u32 %v3131_v15, %v3128_v14  ;;  %v3273_v14 = vld [vmem:[#allocation2 + $0x30] sm:$0xe] }
 0x1e2   : > { %4205 = vmatmul.mubr.msk.bf16.vlgmr.msra.gmra.mrb[0].mxu1 %vm372_vm4, %v3895_v17  ;;  %v3075_v17 = vrot.slane %v3073_v42, 5 }
 0x1e3   : > { %4213 = vmatpush3.bf16.msra.mxu1 %v2845_v4  ;;  %4208 = vmatprep.mubr.msk.bf16.mxu1 %vm372_vm4, %v3896_v50  ;;  %v3043_v4 = vld [vmem:[#allocation2 + $0x20] sm:$0xf]  ;;  %v3098_v50 = vshrl.u32 %v3045_v59, 16 }
 0x1e4   : > { %4395 = vmatprep.subr.msk.bf16.mxu1 %vm385_vm0, %v3919_v12  ;;  %v3112_v12 = vshrl.u32 %v3047_v46, 16  ;;  %v3084_v53 = vshrl.u32 %v3043_v4, 16  ;;  %v3087_v13 = vshll.u32 %v3043_v4, 16  ;;  %v3076_v16 = vor.u32 %v3075_v17, %v3072_v23 }
 0x1e5   : > { %v3100_v35 = vrot.slane %v3098_v50, 4  ;;  %v3135_v46 = vshll.u32 %v5243_v57, 16  ;;  %v3109_v17 = vrot.slane %v3107_v28, 5  ;;  %v3133_v50 = vrot.slane %v3132_v37, 4 }
 0x1e6   : > { %v3114_v63 = vrot.slane %v3112_v12, 4  ;;  %v3086_v7 = vrot.slane %v3084_v53, 4  ;;  %v3089_v55 = vrot.slane %v3087_v13, 5  ;;  %v3077_v1 = vrot.slane %v3076_v16, 4  ;;  %v3269_v16 = vld [vmem:[#allocation2 + $0x10] sm:$0xe] }
 0x1e7   : > { %v3137_v13 = vrot.slane %v3135_v46, 5 }
 0x1e8   : > { %v3090_v24 = vor.u32 %v3089_v55, %v3086_v7  ;;  %v3082_v31 = vsel %vm4531_vm3, %v3077_v1, %v3081_v21  ;;  %v3151_v7 = vrot.slane %v3149_v6, 5  ;;  %v3272_v1 = vld [vmem:[#allocation2 + $0x28] sm:$0xe]  ;;  %v3941_v21 = vrot.slane %v3273_v14, 9 }
 0x1ea   : > { %4209 = vmatmul.mubr.msk.bf16.gmra.mrb[4].mxu1 %vm372_vm4, %v3897_v43  ;;  %v5227_v43 = vld [vmem:[%s5366_s3 + $0x20] sm:$0xf]  ;;  %v3091_v23 = vrot.slane %v3090_v24, 4 }
 0x1eb   : > { %4214 = vmatprep.mubr.msk.bf16.mxu1 %vm372_vm4, %v3911_v44  ;;  %v3063_v44 = vrot.slane %v3062_v25, 4  ;;  %v3160_v25 = vor.u32 %v3159_v61, %v3156_v60  ;;  %v3352_v52 = vsel %vm385_vm0, %v5227_v43, 0  ;;  %v3315_v61 = vrot.slane %v5243_v57, 5 }
 0x1ed   : > { %v3068_v26 = vsel %vm4531_vm3, %v3063_v44, %v3067_v32  ;;  %v3161_v44 = vrot.slane %v3160_v25, 4 }
 0x1ee   : > { %v3929_v42 = vcombine.low %v3068_v26, %v3082_v31  ;;  %v3274_v26 = vld [vmem:[#allocation2 + $0x38] sm:$0xe]  ;;  %v3276_v31 = vld [vmem:[#allocation2 + $0x48] sm:$0xe] }
 0x1ef   : > { %v3942_v60 = vrot.slane %v3274_v26, 9  ;;  %v3944_v37 = vrot.slane %v3276_v31, 9 }
 0x1f2   : > { %4215 = vmatmul.mubr.msk.bf16.vlgmr.msra.gmra.mrb[0].mxu1 %vm372_vm4, %v3912_v19  ;;  %v5236_v19 = vld [vmem:[#allocation2 + $0x24] sm:$0x1] }
 0x1f3   : > { %4223 = vmatpush3.bf16.msra.mxu1 %v2964_v18  ;;  %4218 = vmatprep.mubr.msk.bf16.mxu1 %vm372_vm4, %v3913_v39  ;;  %v3104_v18 = vor.u32 %v3103_v58, %v3100_v35  ;;  %v3143_v39 = vshll.u32 %v3051_v10, 16  ;;  %v3093_v33 = vshll.u32 %v5236_v19, 16  ;;  %v3295_v10 = vrot.slane %v5218_v0, 5 }
 0x1f4   : > { %4396 = vmatprep.subr.msk.bf16.mxu1 %vm385_vm0, %v3928_v8  ;;  %v3118_v8 = vor.u32 %v3117_v34, %v3114_v63  ;;  %v3270_v63 = vld [vmem:[#allocation2 + $0x18] sm:$0xe]  ;;  %v3937_v34 = vrot.slane %v3269_v16, 9  ;;  %v3303_v28 = vrot.slane %v5236_v19, 5  ;;  %v3316_v19 = vsel %vm4611_vm7, %v3942_v60, %v3315_v61 }
 0x1f5   : > { %v3145_v45 = vrot.slane %v3143_v39, 5  ;;  %v3095_v12 = vrot.slane %v3093_v33, 5  ;;  %v3938_v55 = vrot.slane %v3270_v63, 9  ;;  %v3940_v39 = vrot.slane %v3272_v1, 9  ;;  %v3275_v33 = vld [vmem:[#allocation2 + $0x40] sm:$0xe] }
 0x1f6   : > { %v3119_v59 = vrot.slane %v3118_v8, 4  ;;  %v3296_v32 = vsel %vm4611_vm7, %v3937_v34, %v3295_v10  ;;  %v3311_v8 = vrot.slane %v5238_v48, 5  ;;  %v3969_v10 = vld [vmem:[%s4494_s27 + $0x40] sm:$0xf] }
 0x1f7   : > { %v3146_v29 = vor.u32 %v3145_v45, %v3142_v11  ;;  %v3323_v11 = vrot.slane %v5254_v47, 5 }
 0x1f9   : > { %v3147_v58 = vrot.slane %v3146_v29, 4 }
 0x1fa   : > { %4219 = vmatmul.mubr.msk.bf16.gmra.mrb[4].mxu1 %vm372_vm4, %v3914_v36  ;;  %v3121_v36 = vshll.u32 %v5238_v48, 16 }
 0x1fb   : > { %4224 = vmatprep.mubr.msk.bf16.mxu1 %vm372_vm4, %v4428_v40  ;;  %v3105_v40 = vrot.slane %v3104_v18, 4  ;;  %v3152_v22 = vsel %vm4531_vm3, %v3147_v58, %v3151_v7  ;;  %v3271_v18 = vld [vmem:[#allocation2 + $0x20] sm:$0xe] }
 0x1fc   : > { %v3123_v4 = vrot.slane %v3121_v36, 5  ;;  %v3939_v24 = vrot.slane %v3271_v18, 9 }
 0x1fd   : > { %v3110_v38 = vsel %vm4531_vm3, %v3105_v40, %v3109_v17  ;;  %v3319_v40 = vrot.slane %v5252_v41, 5  ;;  %v3955_v17 = vld [vmem:[%s4494_s27 + $0x8] sm:$0xf] }
 0x1fe   : > { %v3124_v53 = vsel %vm4531_vm3, %v3119_v59, %v3123_v4  ;;  %v3304_v48 = vsel %vm4611_vm7, %v3939_v24, %v3303_v28  ;;  %v3324_v59 = vsel %vm4611_vm7, %v3944_v37, %v3323_v11  ;;  %v3961_v4 = vld [vmem:[%s4494_s27 + $0x20] sm:$0xf]  ;;  %v3459_v25 = vshrl.u32 %v3955_v17, 16  ;;  %v3964_v37 = vld [vmem:[%s4494_s27 + $0x2c] sm:$0x1] }
 0x1ff   : > { %v3501_v29 = vshrl.u32 %v3961_v4, 16 }
 0x200   : > { %v3461_v16 = vrot.slane %v3459_v25, 4  ;;  %v3524_v25 = vshll.u32 %v3964_v37, 16 }
 0x202   : > { %4225 = vmatmul.mubr.msk.bf16.vlgmr.msra.gmra.mrb[0].mxu1 %vm372_vm4, %v4429_v5  ;;  %v3096_v5 = vsel %vm4531_vm3, %v3091_v23, %v3095_v12  ;;  %v3959_v23 = vld [vmem:[%s4494_s27 + $0x18] sm:$0xf]  ;;  %v3462_v12 = vshll.u32 %v3955_v17, 16 }
 0x203   : > { %4233 = vmatpush3.bf16.msra.mxu1 %v3194_v20  ;;  %4228 = vmatprep.mubr.msk.bf16.mxu1 %vm372_vm4, %v4430_v54  ;;  %v3163_v20 = vshll.u32 %v5254_v47, 16  ;;  %v3930_v2 = vcombine.low %v3096_v5, %v3110_v38  ;;  %v3138_v54 = vsel %vm4531_vm3, %v3133_v50, %v3137_v13  ;;  %v3487_v50 = vshrl.u32 %v3959_v23, 16  ;;  %v3957_v47 = vld [vmem:[%s4494_s27 + $0x10] sm:$0xf]  ;;  %v3960_v38 = vld [vmem:[%s4494_s27 + $0x1c] sm:$0x1] }
 0x204   : > { %4397 = vmatprep.subr.msk.bf16.mxu1 %vm385_vm0, %v5227_v43  ;;  %v3931_v35 = vcombine.low %v3124_v53, %v3138_v54  ;;  %v3299_v43 = vrot.slane %v5221_v3, 5  ;;  %v3307_v3 = vrot.slane %v5234_v49, 5  ;;  %v3312_v49 = vsel %vm4611_vm7, %v3941_v21, %v3311_v8  ;;  %v3956_v54 = vld [vmem:[%s4494_s27 + $0xc] sm:$0x1] }
 0x205   : > { %v3165_v62 = vrot.slane %v3163_v20, 5  ;;  %v3948_v57 = vcombine.low %v3312_v49, %v3316_v19  ;;  %v3490_v41 = vshll.u32 %v3959_v23, 16  ;;  %v3504_v20 = vshll.u32 %v3961_v4, 16  ;;  %v3968_v49 = vld [vmem:[%s4494_s27 + $0x3c] sm:$0x1] }
 0x206   : > { %v3300_v0 = vsel %vm4611_vm7, %v3938_v55, %v3299_v43  ;;  %v3473_v56 = vshrl.u32 %v3957_v47, 16  ;;  %v3476_v53 = vshll.u32 %v3957_v47, 16  ;;  %v3489_v13 = vrot.slane %v3487_v50, 4  ;;  %v3958_v55 = vld [vmem:[%s4494_s27 + $0x14] sm:$0x1] }
 0x207   : > { %v3166_v30 = vsel %vm4531_vm3, %v3161_v44, %v3165_v62  ;;  %v3946_v51 = vcombine.low %v3296_v32, %v3300_v0  ;;  %v3492_v5 = vrot.slane %v3490_v41, 5  ;;  %v3496_v6 = vshll.u32 %v3960_v38, 16  ;;  %v3963_v44 = vld [vmem:[%s4494_s27 + $0x28] sm:$0xf]  ;;  %v3962_v62 = vld [vmem:[%s4494_s27 + $0x24] sm:$0x1] }
 0x208   : > { %v3932_v15 = vcombine.low %v3152_v22, %v3166_v30  ;;  %v3506_v58 = vrot.slane %v3504_v20, 5  ;;  %v3475_v63 = vrot.slane %v3473_v56, 4  ;;  %v3478_v34 = vrot.slane %v3476_v53, 5  ;;  %v3965_v30 = vld [vmem:[%s4494_s27 + $0x30] sm:$0xf] }
 0x209   : > { %v3493_v7 = vor.u32 %v3492_v5, %v3489_v13  ;;  %v3468_v1 = vshll.u32 %v3956_v54, 16  ;;  %v3515_v14 = vshrl.u32 %v3963_v44, 16  ;;  %v3510_v18 = vshll.u32 %v3962_v62, 16  ;;  %v3966_v50 = vld [vmem:[%s4494_s27 + $0x34] sm:$0x1] }
 0x20a   : > { %4229 = vmatmul.mubr.msk.bf16.gmra.mrb[4].mxu1 %vm372_vm4, %v4431_v9  ;;  %v3308_v9 = vsel %vm4611_vm7, %v3940_v39, %v3307_v3  ;;  %v3560_v39 = vshll.u32 %v3969_v10, 16  ;;  %v3479_v3 = vor.u32 %v3478_v34, %v3475_v63  ;;  %v3482_v26 = vshll.u32 %v3958_v55, 16 }
 0x20b   : > { %4234 = vmatprep.mubr.msk.bf16.mxu1 %vm372_vm4, %v3929_v42  ;;  %v3947_v36 = vcombine.low %v3304_v48, %v3308_v9  ;;  %v3943_v42 = vrot.slane %v3275_v33, 9  ;;  %v3529_v21 = vshrl.u32 %v3965_v30, 16  ;;  %v3532_v8 = vshll.u32 %v3965_v30, 16 }
 0x20c   : > { %v3494_v24 = vrot.slane %v3493_v7, 4  ;;  %v3498_v28 = vrot.slane %v3496_v6, 5  ;;  %v3470_v31 = vrot.slane %v3468_v1, 5  ;;  %v3517_v33 = vrot.slane %v3515_v14, 4 }
 0x20d   : > { %v3320_v45 = vsel %vm4611_vm7, %v3943_v42, %v3319_v40  ;;  %v3512_v19 = vrot.slane %v3510_v18, 5  ;;  %v3562_v42 = vrot.slane %v3560_v39, 5  ;;  %v3480_v40 = vrot.slane %v3479_v3, 4 }
 0x20e   : > { %v3949_v46 = vcombine.low %v3320_v45, %v3324_v59  ;;  %v3484_v11 = vrot.slane %v3482_v26, 5  ;;  %v3970_v45 = vld [vmem:[%s4494_s27 + $0x44] sm:$0x1]  ;;  %v3531_v59 = vrot.slane %v3529_v21, 4  ;;  %v3499_v23 = vsel %vm4531_vm3, %v3494_v24, %v3498_v28 }
 0x20f   : > { %v3552_v4 = vshll.u32 %v3968_v49, 16  ;;  %v3566_v20 = vshll.u32 %v3970_v45, 16  ;;  %v3580_v56 = vunpack.c.l.bf16 %v3499_v23  ;;  %v3538_v5 = vshll.u32 %v3966_v50, 16 }
 0x210   : > { %v3485_v53 = vsel %vm4531_vm3, %v3480_v40, %v3484_v11  ;;  %v3526_v62 = vrot.slane %v3524_v25, 5 }
 0x211   : > { %v3568_v55 = vrot.slane %v3566_v20, 5  ;;  %v3540_v1 = vrot.slane %v3538_v5, 5 }
 0x212   : > { %4235 = vmatmul.mubr.msk.bf16.vlgmr.msra.gmra.mrb[0].mxu1 %vm372_vm4, %v3930_v2  ;;  %v3464_v2 = vrot.slane %v3462_v12, 5  ;;  %v3954_v12 = vld [vmem:[%s5367_s4] ss:$0 sm:$0xff] }
 0x213   : > { %4243 = vmatpush3.bf16.msra.mxu1 %v3352_v52  ;;  %4238 = vmatprep.mubr.msk.bf16.mxu1 %vm372_vm4, %v3931_v35  ;;  %v3967_v52 = vld [vmem:[%s4494_s27 + $0x38] sm:$0xf]  ;;  %v3503_v35 = vrot.slane %v3501_v29, 4  ;;  %s3973_s27 = sshll.u32 %s5378_s19, 6 }
 0x214   : > { %v3543_v43 = vshrl.u32 %v3967_v52, 16  ;;  %v3546_v22 = vshll.u32 %v3967_v52, 16  ;;  %v3465_v32 = vor.u32 %v3464_v2, %v3461_v16  ;;  %v3554_v52 = vrot.slane %v3552_v4, 5  ;;  %s5334_s21 = scalar_lea.vmem %s5368_s5, %s3973_s27 }
 0x215   : > { %v3507_v0 = vor.u32 %v3506_v58, %v3503_v35 }
 0x216   : > { %v3545_v60 = vrot.slane %v3543_v43, 4  ;;  %v3548_v61 = vrot.slane %v3546_v22, 5  ;;  %v3466_v9 = vrot.slane %v3465_v32, 4 }
 0x218   : > { %v3549_v17 = vor.u32 %v3548_v61, %v3545_v60  ;;  %v3471_v41 = vsel %vm4531_vm3, %v3466_v9, %v3470_v31 }
 0x219   : > { %v3578_v16 = vunpack.c.l.bf16 %v3471_v41 }
 0x21a   : > { %4239 = vmatmul.mubr.msk.bf16.gmra.mrb[4].mxu1 %vm372_vm4, %v3932_v15  ;;  %v3518_v15 = vshll.u32 %v3963_v44, 16  ;;  %v3550_v2 = vrot.slane %v3549_v17, 4 }
 0x21b   : > { %4244 = vmatprep.mubr.msk.bf16.mxu1 %vm372_vm4, %v3946_v51  ;;  %v3557_v51 = vshrl.u32 %v3969_v10, 16  ;;  %v3579_v10 = vunpack.c.l.bf16 %v3485_v53 }
 0x21c   : > { %v3520_v48 = vrot.slane %v3518_v15, 5 }
 0x21e   : > { %v3521_v47 = vor.u32 %v3520_v48, %v3517_v33 }
 0x220   : > { %v3522_v44 = vrot.slane %v3521_v47, 4 }
 0x222   : > { %4245 = vmatmul.mubr.msk.bf16.vlgmr.msra.gmra.mrb[0].mxu1 %vm372_vm4, %v3947_v36  ;;  %v3508_v36 = vrot.slane %v3507_v0, 4  ;;  %v3555_v0 = vsel %vm4531_vm3, %v3550_v2, %v3554_v52  ;;  %v3527_v39 = vsel %vm4531_vm3, %v3522_v44, %v3526_v62 }
 0x223   : > { %4248 = vmatprep.mubr.msk.bf16.mxu1 %vm372_vm4, %v3948_v57  ;;  %v3559_v57 = vrot.slane %v3557_v51, 4  ;;  %v3584_v24 = vunpack.c.l.bf16 %v3555_v0  ;;  %v3582_v9 = vunpack.c.l.bf16 %v3527_v39 }
 0x224   : > { %v3513_v38 = vsel %vm4531_vm3, %v3508_v36, %v3512_v19 }
 0x225   : > { %v3563_v29 = vor.u32 %v3562_v42, %v3559_v57  ;;  %v3581_v58 = vunpack.c.l.bf16 %v3513_v38 }
 0x227   : > { %v3564_v7 = vrot.slane %v3563_v29, 4 }
 0x229   : > { %v3569_v21 = vsel %vm4531_vm3, %v3564_v7, %v3568_v55 }
 0x22a   : > { %4249 = vmatmul.mubr.msk.bf16.gmra.mrb[4].mxu1 %vm372_vm4, %v3949_v46  ;;  %v3534_v46 = vrot.slane %v3532_v8, 5  ;;  %v3585_v33 = vunpack.c.l.bf16 %v3569_v21 }
 0x22c   : > { %v3535_v13 = vor.u32 %v3534_v46, %v3531_v59 }
 0x22e   : > { %v3536_v32 = vrot.slane %v3535_v13, 4 }
 0x230   : > { %v3541_v28 = vsel %vm4531_vm3, %v3536_v32, %v3540_v1 }
 0x231   : > { %v3583_v27 = vunpack.c.l.bf16 %v3541_v28 }
 0x2f5   : > { %v4246_v6 = vpop.f32.mrb[0].mxu1 }
 0x2f6   : > { %v3436_v54 = vadd.f32 %v4246_v6, %v3954_v12  ;;  %v3388_v35 = vpop.f32.mrb[1].mxu1 }
 0x2f7   : > { %v3434_v63 = vadd.f32 %v3954_v12, %v3388_v35  ;;  %v4247_v34 = vpop.f32.mrb[2].mxu1 }
 0x2f8   : > { %v3588_v43 = vadd.f32 %v3580_v56, %v3436_v54  ;;  %v3437_v22 = vadd.f32 %v4247_v34, %v3954_v12  ;;  %v3391_v30 = vpop.f32.mrb[3].mxu1 }
 0x2f9   : > { %v3586_v14 = vadd.f32 %v3578_v16, %v3434_v63  ;;  %v3435_v15 = vadd.f32 %v3954_v12, %v3391_v30 }
 0x2fa   : > { %v3596_v18 = vmax.f32 %v3588_v43, 0.0  ;;  %v3589_v51 = vadd.f32 %v3581_v58, %v3437_v22 }
 0x2fb   : > { %v3594_v3 = vmax.f32 %v3586_v14, 0.0  ;;  %v3587_v26 = vadd.f32 %v3579_v10, %v3435_v15 }
 0x2fc   : > { %3604 = vst.msk [vmem:[%s5334_s21 + $0x10] sm:$0xff] %vm372_vm4, %v3596_v18  ;;  %v3597_v8 = vmax.f32 %v3589_v51, 0.0 }
 0x2fd   : > { %3602 = vst.msk [vmem:[%s5334_s21] sm:$0xff] %vm372_vm4, %v3594_v3  ;;  %v3595_v60 = vmax.f32 %v3587_v26, 0.0  ;;  %v4250_v61 = vpop.f32.mrb[4].mxu1 }
 0x2fe   : > { %3605 = vst.msk [vmem:[%s5334_s21 + $0x18] sm:$0xff] %vm372_vm4, %v3597_v8  ;;  %v3440_v31 = vadd.f32 %v4250_v61, %v3954_v12  ;;  %v3404_v49 = vpop.f32.mrb[5].mxu1 }
 0x2ff   : > { %3603 = vst.msk [vmem:[%s5334_s21 + $0x8] sm:$0xff] %vm372_vm4, %v3595_v60  ;;  %v3438_v48 = vadd.f32 %v3954_v12, %v3404_v49  ;;  %v4251_v36 = vpop.f32.mrb[6].mxu1 }
 0x300   : > { %v3592_v19 = vadd.f32 %v3584_v24, %v3440_v31  ;;  %v3441_v37 = vadd.f32 %v4251_v36, %v3954_v12  ;;  %v3407_v57 = vpop.f32.mrb[7].mxu1 }
 0x301   : > { %v3590_v42 = vadd.f32 %v3582_v9, %v3438_v48  ;;  %v3439_v40 = vadd.f32 %v3954_v12, %v3407_v57 }
 0x302   : > { %v3600_v11 = vmax.f32 %v3592_v19, 0.0  ;;  %v3593_v45 = vadd.f32 %v3585_v33, %v3441_v37 }
 0x303   : > { %v3598_v59 = vmax.f32 %v3590_v42, 0.0  ;;  %v3591_v46 = vadd.f32 %v3583_v27, %v3439_v40 }
 0x304   : > { %3608 = vst.msk [vmem:[%s5334_s21 + $0x30] sm:$0xff] %vm372_vm4, %v3600_v11  ;;  %v3601_v23 = vmax.f32 %v3593_v45, 0.0 }
 0x305   : > { %3606 = vst.msk [vmem:[%s5334_s21 + $0x20] sm:$0xff] %vm372_vm4, %v3598_v59  ;;  %v3599_v17 = vmax.f32 %v3591_v46, 0.0 }
 0x306   : > { %3609 = vst.msk [vmem:[%s5334_s21 + $0x38] sm:$0xff] %vm372_vm4, %v3601_v23 }
 0x307   : > { %3607 = vst.msk [vmem:[%s5334_s21 + $0x28] sm:$0xff] %vm372_vm4, %v3599_v17 }
 0x308 PF: > { %s15_s18 = sadd.s32 1, %s4438_s18  }
 0x309   : > { %p12_p4 = scmp.ge.s32.totalorder %s15_s18, 4  }
 0x30b   :  { %14 = sbr.rel (!%p12_p4) target bundleno = 1 (0x1), region = 90 }

// kernel: run_two_blocks.2
= control target key start
LH: loop header
LB: loop body
LE: loop exit
PB: predicated region body
PF: predicated region fallthrough
CT: control target
= control target key end

     0   :  { %s4450_s24 = smov 0   ;;  %s5132_s0 = inlined_call_operand.vmem [shape: bf16[8,9,9,4], index: 0, kind: input, shape index: {}]   ;;  %s5133_s1 = inlined_call_operand.vmem [shape: bf16[9,4,8], index: 1, kind: input, shape index: {}]   ;;  %s5134_s2 = inlined_call_operand.vmem [shape: f32[1,8], index: 2, kind: input, shape index: {}]   ;;  %s5135_s3 = inlined_call_operand.vmem [shape: bf16[9,8,8], index: 3, kind: input, shape index: {}]   ;;  %s5136_s4 = inlined_call_operand.vmem [shape: f32[1,8], index: 4, kind: input, shape index: {}]   ;;  %s5137_s5 = inlined_call_operand.vmem [shape: bf16[4,8], index: 5, kind: input, shape index: {}]   ;;  %s5138_s6 = inlined_call_operand.vmem [shape: f32[1,8], index: 6, kind: input, shape index: {}]   ;;  %s5139_s7 = inlined_call_operand.vmem [shape: f32[2,64,8], index: 7, kind: output, shape index: {}]  }
   0x1 LB: > { %s4456_s25 = sadd.s32 4294967295, %s4407_s24   ;;  %p3593_p0 = scmp.ge.s32.totalorder %s4407_s24, 1  ;;  %s4407_s24 = sphi %s4450_s24, %s17_s24  }
   0x2   : > { %p239_p1 = scmp.lt.s32.totalorder %s4407_s24, 3 }
   0x4   : > { %p240_p2 = pnand %p3593_p0, %p239_p1 }
   0x5   : > { %v3606_v0 = vld [vmem:[%s5133_s1 + $0x2] sm:$0x3] (!%p240_p2)  ;;  %vm338_vm0 = vcmask (!%p240_p2), 1041408   ;;  %s3594_s28 = sshll.u32 (!%p240_p2), %s4456_s25, 2  ;;  %v293_v2 = vld [vmem:[%s5133_s1] sm:$0x3] (!%p240_p2) }
   0x6   : > { %243 = sbr.rel (%p240_p2) target bundleno = 775 (0x307), region = 48  ;;  %4331 = vmatprep.subr.msk.bf16.mxu0 (!%p240_p2), %vm338_vm0, %v3606_v0  ;;  %v340_v1 = vsel (!%p240_p2), %vm338_vm0, %v3606_v0, 0  ;;  %p273_p3 = scmp.lt.s32.totalorder (!%p240_p2), %s3594_s28, 7  ;;  %vm325_vm1 = vcmask (!%p240_p2), 31744   ;;  %v440_v3 = vsel (!%p240_p2), %vm338_vm0, %v293_v2, 0  ;;  %vm1703_vm5 = vcmask (!%p240_p2), 60416  }
   0x7   : > { %3988 = vmatpush3.bf16.msra.mxu0 (!%p240_p2), %v340_v1  ;;  %v3623_v5 = vld [vmem:[%s5133_s1 + $0x4] sm:$0x3] (!%p240_p2)  ;;  %vm523_vm2 = vsmask.f32 (!%p240_p2), 3328  ;;  %vm524_vm3 = vsmask.f32 (!%p240_p2), 7440 }
   0x8   : > { %4332 = vmatprep.subr.msk.bf16.mxu0 (!%p240_p2), %vm338_vm0, %v293_v2  ;;  %vm4503_vm4 = vmor (!%p240_p2), %vm523_vm2, %vm524_vm3  ;;  %v665_v50 = vsel (!%p240_p2), %vm338_vm0, %v3623_v5, 0  ;;  %v3640_v55 = vld [vmem:[%s5133_s1 + $0x6] sm:$0x3] (!%p240_p2)  ;;  %vm1705_vm6 = vcmask (!%p240_p2), 57344   ;;  %vm2036_vm7 = vcmask (!%p240_p2), 1043456   ;;  %vm2023_vm12 = vcmask (!%p240_p2), 64512  }
   0x9   : > { %vm1827_vm8 = vsmask.f32 (!%p240_p2), 7938  ;;  %vm1833_vm9 = vsmask.f32 (!%p240_p2), 256  ;;  %vm2229_vm13 = vcmask (!%p240_p2), 1042432   ;;  %vm2230_vm14 = vcmask (!%p240_p2), 1046532  }
   0xa   : > { %vm4730_vm10 = vmand (!%p240_p2), %vm1703_vm5, %vm1827_vm8  ;;  %p279_p4 = scmp.lt.s32.totalorder (!%p240_p2), %s4456_s25, 1 }
   0xb   : > { %vm4737_vm11 = vmand (!%p240_p2), %vm1705_vm6, %vm1833_vm9 }
   0xc   : > { %vm4877_vm15 = vmor (!%p240_p2), %vm2229_vm13, %vm2230_vm14 }
   0xd   : > { %s5149_s28 = smov (!%p273_p3, %s3594_s28), 7  ;;  %s5151_s25 = smov (!%p279_p4, %s4456_s25), 1 }
   0xe   : > { %s4351_s8 = smul.u32 72, %s5149_s28 }
  0x10   : > { %s4473_s11 = scalar_lea.vmem %s5132_s0, %s4351_s8 }
  0x11   : > { %v4361_v4 = vld [vmem:[%s4473_s11 + $0x48] ss:$8 sps:$4 sm:$0xff]   ;;  %v4362_v6 = vld [vmem:[%s4473_s11 + $0x58] ss:$8 sps:$4 sm:$0xff]   ;;  %v508_v11 = vld [vmem:[%s4473_s11 + $0x4] sm:$0x1] }
  0x12   : > { %3989 = vmatprep.mubr.msk.bf16.mxu0 %vm325_vm1, %v4361_v4  ;;  %v4363_v7 = vld [vmem:[%s4473_s11 + $0x68] ss:$8 sps:$4 sm:$0xff]   ;;  %v4364_v8 = vld [vmem:[%s4473_s11 + $0x78] ss:$8 sps:$4 sm:$0xff]   ;;  %v510_v13 = vld [vmem:[%s4473_s11 + $0xc] sm:$0x1] }
  0x13   : > { %3990 = vmatmul.mubr.msk.bf16.vlgmr.msra.gmra.mrb[0].mxu0 %vm325_vm1, %v4362_v6  ;;  %v4365_v9 = vld [vmem:[%s4473_s11] ss:$8 sps:$4 sm:$0xff]   ;;  %v536_v17 = vshll.u32 %v508_v11, 16  ;;  %v511_v19 = vld [vmem:[%s4473_s11 + $0x10] sm:$0xf]  ;;  %v550_v23 = vshll.u32 %v510_v13, 16 }
  0x14   : > { %3998 = vmatpush3.bf16.msra.mxu0 %v440_v3  ;;  %3993 = vmatprep.mubr.msk.bf16.mxu0 %vm325_vm1, %v4363_v7  ;;  %v507_v10 = vld [vmem:[%s4473_s11] sm:$0xf]  ;;  %v509_v12 = vld [vmem:[%s4473_s11 + $0x8] sm:$0xf]  ;;  %v513_v24 = vld [vmem:[%s4473_s11 + $0x18] sm:$0xf] }
  0x15   : > { %4333 = vmatprep.subr.msk.bf16.mxu0 %vm338_vm0, %v3623_v5  ;;  %v527_v14 = vshrl.u32 %v507_v10, 16  ;;  %v530_v15 = vshll.u32 %v507_v10, 16  ;;  %v541_v16 = vshrl.u32 %v509_v12, 16  ;;  %v544_v18 = vshll.u32 %v509_v12, 16  ;;  %v4366_v28 = vld [vmem:[%s4473_s11 + $0x10] ss:$8 sps:$4 sm:$0xff]  }
  0x16   : > { %v555_v26 = vshrl.u32 %v511_v19, 16  ;;  %v558_v27 = vshll.u32 %v511_v19, 16  ;;  %v512_v30 = vld [vmem:[%s4473_s11 + $0x14] sm:$0x1]  ;;  %v569_v31 = vshrl.u32 %v513_v24, 16  ;;  %v572_v32 = vshll.u32 %v513_v24, 16 }
  0x17   : > { %v529_v20 = vrot.slane %v527_v14, 4  ;;  %v532_v21 = vrot.slane %v530_v15, 5  ;;  %v543_v22 = vrot.slane %v541_v16, 4  ;;  %v546_v25 = vrot.slane %v544_v18, 5  ;;  %v515_v33 = vld [vmem:[%s4473_s11 + $0x20] sm:$0xf] }
  0x18   : > { %v4367_v34 = vld [vmem:[%s4473_s11 + $0x20] ss:$8 sps:$4 sm:$0xff]   ;;  %v538_v35 = vrot.slane %v536_v17, 5  ;;  %v514_v37 = vld [vmem:[%s4473_s11 + $0x1c] sm:$0x1]  ;;  %v557_v38 = vrot.slane %v555_v26, 4 }
  0x19   : > { %v533_v29 = vor.u32 %v532_v21, %v529_v20  ;;  %v547_v36 = vor.u32 %v546_v25, %v543_v22  ;;  %v560_v39 = vrot.slane %v558_v27, 5  ;;  %v552_v42 = vrot.slane %v550_v23, 5  ;;  %v517_v45 = vld [vmem:[%s4473_s11 + $0x28] sm:$0xf]  ;;  %v516_v48 = vld [vmem:[%s4473_s11 + $0x24] sm:$0x1] }
  0x1a   : > { %v571_v43 = vrot.slane %v569_v31, 4  ;;  %v574_v44 = vrot.slane %v572_v32, 5  ;;  %v564_v47 = vshll.u32 %v512_v30, 16  ;;  %v583_v49 = vshrl.u32 %v515_v33, 16  ;;  %v518_v52 = vld [vmem:[%s4473_s11 + $0x2c] sm:$0x1] }
  0x1b   : > { %3994 = vmatmul.mubr.msk.bf16.gmra.mrb[4].mxu0 %vm325_vm1, %v4364_v8  ;;  %v534_v41 = vrot.slane %v533_v29, 4  ;;  %v548_v46 = vrot.slane %v547_v36, 4  ;;  %v578_v51 = vshll.u32 %v514_v37, 16  ;;  %v586_v53 = vshll.u32 %v515_v33, 16  ;;  %v519_v59 = vld [vmem:[%s4473_s11 + $0x30] sm:$0xf] }
  0x1c   : > { %3999 = vmatprep.mubr.msk.bf16.mxu0 %vm325_vm1, %v4365_v9  ;;  %v561_v56 = vor.u32 %v560_v39, %v557_v38  ;;  %v585_v57 = vrot.slane %v583_v49, 4  ;;  %v597_v58 = vshrl.u32 %v517_v45, 16  ;;  %v575_v61 = vor.u32 %v574_v44, %v571_v43  ;;  %v521_v0 = vld [vmem:[%s4473_s11 + $0x38] sm:$0xf]  ;;  %v520_v13 = vld [vmem:[%s4473_s11 + $0x34] sm:$0x1] }
  0x1d   : > { %v539_v54 = vsel %vm4503_vm4, %v534_v41, %v538_v35  ;;  %v553_v60 = vsel %vm4503_vm4, %v548_v46, %v552_v42  ;;  %v588_v62 = vrot.slane %v586_v53, 5  ;;  %v592_v63 = vshll.u32 %v516_v48, 16  ;;  %v4368_v5 = vld [vmem:[%s4473_s11 + $0x30] ss:$8 sps:$4 sm:$0xff]   ;;  %v522_v19 = vld [vmem:[%s4473_s11 + $0x3c] sm:$0x1] }
  0x1e   : > { %v566_v1 = vrot.slane %v564_v47, 5  ;;  %v599_v2 = vrot.slane %v597_v58, 4  ;;  %v600_v3 = vshll.u32 %v517_v45, 16  ;;  %v606_v4 = vshll.u32 %v518_v52, 16  ;;  %v3657_v43 = vld [vmem:[%s5133_s1 + $0x8] sm:$0x3] }
  0x1f   : > { %v580_v6 = vrot.slane %v578_v51, 5  ;;  %v589_v7 = vor.u32 %v588_v62, %v585_v57  ;;  %v611_v8 = vshrl.u32 %v519_v59, 16  ;;  %v614_v9 = vshll.u32 %v519_v59, 16  ;;  %v4369_v47 = vld [vmem:[%s4473_s11 + $0x90] ss:$8 sps:$4 sm:$0xff]  }
  0x20   : > { %v3624_v10 = vcombine.low %v539_v54, %v553_v60  ;;  %v562_v11 = vrot.slane %v561_v56, 4  ;;  %v602_v12 = vrot.slane %v600_v3, 5  ;;  %v576_v14 = vrot.slane %v575_v61, 4  ;;  %v4370_v48 = vld [vmem:[%s4473_s11 + $0xa0] ss:$8 sps:$4 sm:$0xff]  }
  0x21   : > { %v594_v15 = vrot.slane %v592_v63, 5  ;;  %v608_v16 = vrot.slane %v606_v4, 5  ;;  %v625_v17 = vshrl.u32 %v521_v0, 16  ;;  %v613_v20 = vrot.slane %v611_v8, 4  ;;  %v3666_v49 = vld [vmem:[%s4473_s11 + $0x90] sm:$0xf] }
  0x22   : > { %v603_v18 = vor.u32 %v602_v12, %v599_v2  ;;  %v616_v21 = vrot.slane %v614_v9, 5  ;;  %v628_v22 = vshll.u32 %v521_v0, 16  ;;  %v590_v23 = vrot.slane %v589_v7, 4  ;;  %v4371_v51 = vld [vmem:[%s4473_s11 + $0xb0] ss:$8 sps:$4 sm:$0xff]  }
  0x23   : > { %4000 = vmatmul.mubr.msk.bf16.vlgmr.msra.gmra.mrb[0].mxu0 %vm325_vm1, %v4366_v28  ;;  %v627_v24 = vrot.slane %v625_v17, 4  ;;  %v567_v27 = vsel %vm4503_vm4, %v562_v11, %v566_v1  ;;  %v620_v28 = vshll.u32 %v520_v13, 16  ;;  %v581_v29 = vsel %vm4503_vm4, %v576_v14, %v580_v6  ;;  %v3668_v52 = vld [vmem:[%s4473_s11 + $0x98] sm:$0xf]  ;;  %v3682_v53 = vld [vmem:[%s5133_s1 + $0xa] sm:$0x3] }
  0x24   : > { %4008 = vmatpush3.bf16.msra.mxu0 %v665_v50  ;;  %4003 = vmatprep.mubr.msk.bf16.mxu0 %vm325_vm1, %v4367_v34  ;;  %v604_v25 = vrot.slane %v603_v18, 4  ;;  %v630_v26 = vrot.slane %v628_v22, 5  ;;  %v617_v30 = vor.u32 %v616_v21, %v613_v20  ;;  %v634_v32 = vshll.u32 %v522_v19, 16  ;;  %v3667_v54 = vld [vmem:[%s4473_s11 + $0x94] sm:$0x1] }
  0x25   : > { %4334 = vmatprep.subr.msk.bf16.mxu0 %vm338_vm0, %v3640_v55  ;;  %v595_v33 = vsel %vm4503_vm4, %v590_v23, %v594_v15  ;;  %v3625_v35 = vcombine.low %v567_v27, %v581_v29  ;;  %v622_v36 = vrot.slane %v620_v28, 5  ;;  %v784_v42 = vsel %vm338_vm0, %v3640_v55, 0  ;;  %v3669_v55 = vld [vmem:[%s4473_s11 + $0x9c] sm:$0x1]  ;;  %v4372_v60 = vld [vmem:[%s4473_s11 + $0xc0] ss:$8 sps:$4 sm:$0xff]  }
  0x26   : > { %v631_v31 = vor.u32 %v630_v26, %v627_v24  ;;  %v609_v34 = vsel %vm4503_vm4, %v604_v25, %v608_v16  ;;  %v618_v38 = vrot.slane %v617_v30, 4  ;;  %v636_v41 = vrot.slane %v634_v32, 5  ;;  %v3670_v63 = vld [vmem:[%s4473_s11 + $0xa0] sm:$0xf]  ;;  %v3674_v8 = vld [vmem:[%s4473_s11 + $0xb0] sm:$0xf] }
  0x27   : > { %v3626_v37 = vcombine.low %v595_v33, %v609_v34  ;;  %v903_v50 = vsel %vm338_vm0, %v3657_v43, 0  ;;  %v995_v56 = vshrl.u32 %v3666_v49, 16  ;;  %v998_v57 = vshll.u32 %v3666_v49, 16  ;;  %v4373_v0 = vld [vmem:[%s4473_s11 + $0xd8] ss:$8 sps:$4 sm:$0xff]  }
  0x28   : > { %v632_v39 = vrot.slane %v631_v31, 4  ;;  %v623_v44 = vsel %vm4503_vm4, %v618_v38, %v622_v36  ;;  %v1009_v58 = vshrl.u32 %v3668_v52, 16  ;;  %v1012_v59 = vshll.u32 %v3668_v52, 16  ;;  %v3676_v9 = vld [vmem:[%s4473_s11 + $0xb8] sm:$0xf] }
  0x29   : > { %v1004_v61 = vshll.u32 %v3667_v54, 16  ;;  %v1018_v62 = vshll.u32 %v3669_v55, 16  ;;  %v997_v1 = vrot.slane %v995_v56, 4  ;;  %v1000_v2 = vrot.slane %v998_v57, 5  ;;  %v3671_v12 = vld [vmem:[%s4473_s11 + $0xa4] sm:$0x1] }
  0x2a   : > { %v637_v45 = vsel %vm4503_vm4, %v632_v39, %v636_v41  ;;  %v1011_v3 = vrot.slane %v1009_v58, 4  ;;  %v1014_v4 = vrot.slane %v1012_v59, 5  ;;  %v1023_v6 = vshrl.u32 %v3670_v63, 16  ;;  %v3673_v13 = vld [vmem:[%s4473_s11 + $0xac] sm:$0x1] }
  0x2b   : > { %4004 = vmatmul.mubr.msk.bf16.gmra.mrb[4].mxu0 %vm325_vm1, %v4368_v5  ;;  %v3627_v46 = vcombine.low %v623_v44, %v637_v45  ;;  %v3672_v5 = vld [vmem:[%s4473_s11 + $0xa8] sm:$0xf]  ;;  %v1026_v7 = vshll.u32 %v3670_v63, 16  ;;  %v1006_v16 = vrot.slane %v1004_v61, 5  ;;  %v1020_v17 = vrot.slane %v1018_v62, 5 }
  0x2c   : > { %4009 = vmatprep.mubr.msk.bf16.mxu0 %vm325_vm1, %v3624_v10  ;;  %v1001_v10 = vor.u32 %v1000_v2, %v997_v1  ;;  %v1015_v11 = vor.u32 %v1014_v4, %v1011_v3  ;;  %v1037_v14 = vshrl.u32 %v3672_v5, 16  ;;  %v1040_v15 = vshll.u32 %v3672_v5, 16  ;;  %v4374_v26 = vld [vmem:[%s4473_s11 + $0xe8] ss:$8 sps:$4 sm:$0xff]   ;;  %v4375_v32 = vld [vmem:[%s4473_s11 + $0xf8] ss:$8 sps:$4 sm:$0xff]  }
  0x2d   : > { %v1051_v18 = vshrl.u32 %v3674_v8, 16  ;;  %v1054_v19 = vshll.u32 %v3674_v8, 16  ;;  %v1065_v20 = vshrl.u32 %v3676_v9, 16  ;;  %v1068_v21 = vshll.u32 %v3676_v9, 16  ;;  %v3699_v33 = vld [vmem:[%s5133_s1 + $0xc] sm:$0x3] }
  0x2e   : > { %v1025_v22 = vrot.slane %v1023_v6, 4  ;;  %v1028_v23 = vrot.slane %v1026_v7, 5  ;;  %v1032_v24 = vshll.u32 %v3671_v12, 16  ;;  %v1046_v25 = vshll.u32 %v3673_v13, 16  ;;  %v3678_v34 = vld [vmem:[%s4473_s11 + $0xc0] sm:$0xf] }
  0x2f   : > { %v1002_v27 = vrot.slane %v1001_v10, 4  ;;  %v1016_v28 = vrot.slane %v1015_v11, 4  ;;  %v1039_v29 = vrot.slane %v1037_v14, 4  ;;  %v1042_v30 = vrot.slane %v1040_v15, 5  ;;  %v3680_v39 = vld [vmem:[%s4473_s11 + $0xc8] sm:$0xf] }
  0x30   : > { %v1133_v31 = vsel %vm338_vm0, %v3682_v53, 0  ;;  %v1056_v36 = vrot.slane %v1054_v19, 5  ;;  %v1070_v38 = vrot.slane %v1068_v21, 5  ;;  %v1029_v41 = vor.u32 %v1028_v23, %v1025_v22  ;;  %v3677_v44 = vld [vmem:[%s4473_s11 + $0xbc] sm:$0x1] }
  0x31   : > { %v1007_v45 = vsel %vm4503_vm4, %v1002_v27, %v1006_v16  ;;  %v1079_v49 = vshrl.u32 %v3678_v34, 16  ;;  %v1096_v52 = vshll.u32 %v3680_v39, 16  ;;  %v1074_v57 = vshll.u32 %v3677_v44, 16  ;;  %v3679_v58 = vld [vmem:[%s4473_s11 + $0xc4] sm:$0x1] }
  0x32   : > { %v3681_v62 = vld [vmem:[%s4473_s11 + $0xcc] sm:$0x1]  ;;  %v1088_v8 = vshll.u32 %v3679_v58, 16  ;;  %v1252_v21 = vsel %vm338_vm0, %v3699_v33, 0  ;;  %v3716_v22 = vld [vmem:[%s5133_s1 + $0xe] sm:$0x3] }
  0x33   : > { %4010 = vmatmul.mubr.msk.bf16.vlgmr.msra.gmra.mrb[0].mxu0 %vm325_vm1, %v3625_v35  ;;  %v1053_v35 = vrot.slane %v1051_v18, 4  ;;  %v1081_v63 = vrot.slane %v1079_v49, 4  ;;  %v1098_v2 = vrot.slane %v1096_v52, 5  ;;  %v1076_v6 = vrot.slane %v1074_v57, 5  ;;  %v4378_v27 = vld [vmem:[%s4473_s11 + $0x18] ss:$8 sps:$4 sm:$0xff]  }
  0x34   : > { %4018 = vmatpush3.bf16.msra.mxu0 %v784_v42  ;;  %4013 = vmatprep.mubr.msk.bf16.mxu0 %vm325_vm1, %v3626_v37  ;;  %v1067_v37 = vrot.slane %v1065_v20, 4  ;;  %v1034_v42 = vrot.slane %v1032_v24, 5  ;;  %v1102_v12 = vshll.u32 %v3681_v62, 16  ;;  %v1090_v16 = vrot.slane %v1088_v8, 5  ;;  %v3733_v52 = vld [vmem:[%s4473_s11 + $0x28] sm:$0xf] }
  0x35   : > { %4335 = vmatprep.subr.msk.bf16.mxu0 %vm338_vm0, %v3657_v43  ;;  %v3675_v43 = vld [vmem:[%s4473_s11 + $0xb4] sm:$0x1]  ;;  %v1057_v54 = vor.u32 %v1056_v36, %v1053_v35  ;;  %v4382_v58 = vld [vmem:[%s4473_s11 + $0x60] ss:$8 sps:$4 sm:$0xff]  }
  0x36   : > { %v1060_v55 = vshll.u32 %v3675_v43, 16  ;;  %v1071_v56 = vor.u32 %v1070_v38, %v1067_v37  ;;  %v1104_v20 = vrot.slane %v1102_v12, 5  ;;  %v4380_v37 = vld [vmem:[%s4473_s11 + $0x38] ss:$8 sps:$4 sm:$0xff]   ;;  %v3726_v38 = vld [vmem:[%s4473_s11 + $0xc] sm:$0x1] }
  0x37   : > { %v1058_v3 = vrot.slane %v1057_v54, 4 }
  0x38   : > { %v1062_v4 = vrot.slane %v1060_v55, 5  ;;  %v1072_v5 = vrot.slane %v1071_v56, 4 }
  0x3a   : > { %v1063_v13 = vsel %vm4503_vm4, %v1058_v3, %v1062_v4  ;;  %v1077_v14 = vsel %vm4503_vm4, %v1072_v5, %v1076_v6  ;;  %v3732_v5 = vld [vmem:[%s4473_s11 + $0x24] sm:$0x1] }
  0x3b   : > { %4014 = vmatmul.mubr.msk.bf16.gmra.mrb[4].mxu0 %vm325_vm1, %v3627_v46  ;;  %v1021_v46 = vsel %vm4503_vm4, %v1016_v28, %v1020_v17  ;;  %v3685_v17 = vcombine.low %v1063_v13, %v1077_v14  ;;  %v3725_v28 = vld [vmem:[%s4473_s11 + $0x8] sm:$0xf] }
  0x3c   : > { %4019 = vmatprep.mubr.msk.bf16.mxu0 %vm325_vm1, %v4369_v47  ;;  %v1043_v47 = vor.u32 %v1042_v30, %v1039_v29  ;;  %v3683_v59 = vcombine.low %v1007_v45, %v1021_v46  ;;  %v4379_v29 = vld [vmem:[%s4473_s11 + $0x28] ss:$8 sps:$4 sm:$0xff]   ;;  %v3729_v45 = vld [vmem:[%s4473_s11 + $0x18] sm:$0xf] }
  0x3d   : > { %v3727_v30 = vld [vmem:[%s4473_s11 + $0x10] sm:$0xf]  ;;  %v1494_v55 = vshll.u32 %v3729_v45, 16 }
  0x3e   : > { %v1044_v61 = vrot.slane %v1043_v47, 4  ;;  %v1477_v35 = vshrl.u32 %v3727_v30, 16  ;;  %v1480_v36 = vshll.u32 %v3727_v30, 16  ;;  %v4381_v46 = vld [vmem:[%s4473_s11 + $0x50] ss:$8 sps:$4 sm:$0xff]  }
  0x3f   : > { %v3731_v47 = vld [vmem:[%s4473_s11 + $0x20] sm:$0xf]  ;;  %v1496_v6 = vrot.slane %v1494_v55, 5 }
  0x40   : > { %v1479_v43 = vrot.slane %v1477_v35, 4  ;;  %v1482_v44 = vrot.slane %v1480_v36, 5  ;;  %v1505_v56 = vshrl.u32 %v3731_v47, 16  ;;  %v1508_v57 = vshll.u32 %v3731_v47, 16 }
  0x42   : > { %v1483_v54 = vor.u32 %v1482_v44, %v1479_v43  ;;  %v1510_v8 = vrot.slane %v1508_v57, 5 }
  0x43   : > { %4020 = vmatmul.mubr.msk.bf16.vlgmr.msra.gmra.mrb[0].mxu0 %vm325_vm1, %v4370_v48  ;;  %v1048_v48 = vrot.slane %v1046_v25, 5 }
  0x44   : > { %4028 = vmatpush3.bf16.msra.mxu0 %v903_v50  ;;  %4023 = vmatprep.mubr.msk.bf16.mxu0 %vm325_vm1, %v4371_v51  ;;  %v1082_v50 = vshll.u32 %v3678_v34, 16  ;;  %v1093_v51 = vshrl.u32 %v3680_v39, 16  ;;  %v1466_v34 = vshll.u32 %v3725_v28, 16  ;;  %v1484_v4 = vrot.slane %v1483_v54, 4 }
  0x45   : > { %4336 = vmatprep.subr.msk.bf16.mxu0 %vm338_vm0, %v3682_v53  ;;  %v4376_v53 = vld [vmem:[%s4473_s11 + $0x108] ss:$8 sps:$4 sm:$0xff]   ;;  %v1049_v9 = vsel %vm4503_vm4, %v1044_v61, %v1048_v48  ;;  %v1472_v48 = vshll.u32 %v3726_v38, 16 }
  0x46   : > { %v1095_v1 = vrot.slane %v1093_v51, 4  ;;  %v1491_v51 = vshrl.u32 %v3729_v45, 16 }
  0x48   : > { %v1099_v11 = vor.u32 %v1098_v2, %v1095_v1  ;;  %v3730_v2 = vld [vmem:[%s4473_s11 + $0x1c] sm:$0x1]  ;;  %v1493_v3 = vrot.slane %v1491_v51, 4 }
  0x4a   : > { %v1100_v19 = vrot.slane %v1099_v11, 4  ;;  %v3737_v11 = vld [vmem:[%s4473_s11 + $0x38] sm:$0xf] }
  0x4b   : > { %4024 = vmatmul.mubr.msk.bf16.gmra.mrb[4].mxu0 %vm325_vm1, %v4372_v60  ;;  %v1030_v60 = vrot.slane %v1029_v41, 4  ;;  %v1468_v41 = vrot.slane %v1466_v34, 5  ;;  %v4384_v34 = vld [vmem:[%s4473_s11 + $0x80] ss:$8 sps:$4 sm:$0xff]  }
  0x4c   : > { %4029 = vmatprep.mubr.msk.bf16.mxu0 %vm325_vm1, %v4373_v0  ;;  %v1084_v0 = vrot.slane %v1082_v50, 5  ;;  %v1105_v24 = vsel %vm4503_vm4, %v1100_v19, %v1104_v20  ;;  %v3734_v19 = vld [vmem:[%s4473_s11 + $0x2c] sm:$0x1]  ;;  %v3736_v20 = vld [vmem:[%s4473_s11 + $0x34] sm:$0x1] }
  0x4d   : > { %v1035_v7 = vsel %vm4503_vm4, %v1030_v60, %v1034_v42  ;;  %v3728_v42 = vld [vmem:[%s4473_s11 + $0x14] sm:$0x1]  ;;  %v1522_v60 = vshll.u32 %v3733_v52, 16  ;;  %v1528_v30 = vshll.u32 %v3734_v19, 16 }
  0x4e   : > { %v1085_v10 = vor.u32 %v1084_v0, %v1081_v63  ;;  %v3684_v15 = vcombine.low %v1035_v7, %v1049_v9  ;;  %v1486_v50 = vshll.u32 %v3728_v42, 16  ;;  %v1474_v0 = vrot.slane %v1472_v48, 5 }
  0x4f   : > { %v1507_v7 = vrot.slane %v1505_v56, 4  ;;  %v1524_v13 = vrot.slane %v1522_v60, 5 }
  0x50   : > { %v1086_v18 = vrot.slane %v1085_v10, 4  ;;  %v1488_v1 = vrot.slane %v1486_v50, 5  ;;  %v4383_v10 = vld [vmem:[%s4473_s11 + $0x70] ss:$8 sps:$4 sm:$0xff]  }
  0x52   : > { %v1091_v23 = vsel %vm4503_vm4, %v1086_v18, %v1090_v16  ;;  %v3739_v16 = vld [vmem:[%s4473_s11 + $0x40] sm:$0xf]  ;;  %v1514_v18 = vshll.u32 %v3732_v5, 16 }
  0x53   : > { %4030 = vmatmul.mubr.msk.bf16.vlgmr.msra.gmra.mrb[0].mxu0 %vm325_vm1, %v4374_v26  ;;  %v3686_v25 = vcombine.low %v1091_v23, %v1105_v24  ;;  %v4377_v26 = vld [vmem:[%s4473_s11 + $0x8] ss:$8 sps:$4 sm:$0xff]   ;;  %v1497_v23 = vor.u32 %v1496_v6, %v1493_v3  ;;  %v1511_v24 = vor.u32 %v1510_v8, %v1507_v7  ;;  %v4409_v3 = vmov 0   ;;  %v4702_v6 = vld [vmem:[%s5135_s3] sm:$0xf] }
  0x54   : > { %4038 = vmatpush3.bf16.msra.mxu0 %v1133_v31  ;;  %4033 = vmatprep.mubr.msk.bf16.mxu0 %vm325_vm1, %v4375_v32  ;;  %v1371_v31 = vsel %vm338_vm0, %v3716_v22, 0  ;;  %v3741_v32 = vld [vmem:[%s5133_s1 + $0x10] sm:$0x3]  ;;  %v1516_v38 = vrot.slane %v1514_v18, 5  ;;  %1711 = vst.msk [vmem:[#allocation2 + $0x18] sm:$0xf] %vm1703_vm5, %v4409_v3 }
  0x55   : > { %4337 = vmatprep.subr.msk.bf16.mxu0 %vm338_vm0, %v3699_v33  ;;  %v1463_v33 = vshrl.u32 %v3725_v28, 16  ;;  %v1601_v9 = vsel %vm338_vm0, %v3741_v32, 0  ;;  %v1564_v28 = vshll.u32 %v3739_v16, 16  ;;  %v1498_v36 = vrot.slane %v1497_v23, 4  ;;  %1712 = vst.msk [vmem:[#allocation2 + $0x1c] sm:$0x1] %vm1705_vm6, %v4409_v3 }
  0x56   : > { %1704 = vst.msk [vmem:[#allocation2] sm:$0xf] %vm1703_vm5, %v4409_v3  ;;  %1707 = vst.msk [vmem:[#allocation2 + $0x8] sm:$0xf] %vm1703_vm5, %v4409_v3  ;;  %v4711_v8 = vld [vmem:[%s5134_s2] ss:$0 sm:$0xff] }
  0x57   : > { %v1465_v39 = vrot.slane %v1463_v33, 4  ;;  %v1566_v44 = vrot.slane %v1564_v28, 5  ;;  %1706 = vst.msk [vmem:[#allocation2 + $0x4] sm:$0x1] %vm1705_vm6, %v4409_v3  ;;  %1708 = vst.msk [vmem:[#allocation2 + $0xc] sm:$0x1] %vm1705_vm6, %v4409_v3 }
  0x58   : > { %1709 = vst.msk [vmem:[#allocation2 + $0x10] sm:$0xf] %vm1703_vm5, %v4409_v3  ;;  %1713 = vst.msk [vmem:[#allocation2 + $0x20] sm:$0xf] %vm1703_vm5, %v4409_v3 }
  0x59   : > { %v1469_v49 = vor.u32 %v1468_v41, %v1465_v39  ;;  %v3738_v39 = vld [vmem:[%s4473_s11 + $0x3c] sm:$0x1]  ;;  %1710 = vst.msk [vmem:[#allocation2 + $0x14] sm:$0x1] %vm1705_vm6, %v4409_v3  ;;  %1714 = vst.msk [vmem:[#allocation2 + $0x24] sm:$0x1] %vm1705_vm6, %v4409_v3 }
  0x5a   : > { %v1556_v51 = vshll.u32 %v3738_v39, 16  ;;  %1715 = vst.msk [vmem:[#allocation2 + $0x28] sm:$0xf] %vm1703_vm5, %v4409_v3  ;;  %1717 = vst.msk [vmem:[#allocation2 + $0x30] sm:$0xf] %vm1703_vm5, %v4409_v3 }
  0x5b   : > { %4034 = vmatmul.mubr.msk.bf16.gmra.mrb[4].mxu0 %vm325_vm1, %v4376_v53  ;;  %v3735_v53 = vld [vmem:[%s4473_s11 + $0x30] sm:$0xf]  ;;  %v1470_v63 = vrot.slane %v1469_v49, 4  ;;  %v3740_v49 = vld [vmem:[%s4473_s11 + $0x44] sm:$0x1] }
  0x5c   : > { %4039 = vmatprep.mubr.msk.bf16.mxu0 %vm325_vm1, %v3683_v59  ;;  %v1519_v59 = vshrl.u32 %v3733_v52, 16  ;;  %v1533_v61 = vshrl.u32 %v3735_v53, 16  ;;  %v1536_v62 = vshll.u32 %v3735_v53, 16  ;;  %v1570_v55 = vshll.u32 %v3740_v49, 16  ;;  %1716 = vst.msk [vmem:[#allocation2 + $0x2c] sm:$0x1] %vm1705_vm6, %v4409_v3 }
  0x5d   : > { %1718 = vst.msk [vmem:[#allocation2 + $0x34] sm:$0x1] %vm1705_vm6, %v4409_v3  ;;  %1720 = vst.msk [vmem:[#allocation2 + $0x3c] sm:$0x1] %vm1705_vm6, %v4409_v3  ;;  %v4706_v7 = vld [vmem:[#allocation2] sm:$0xf] }
  0x5e   : > { %v1521_v12 = vrot.slane %v1519_v59, 4  ;;  %v1535_v14 = vrot.slane %v1533_v61, 4  ;;  %v1558_v59 = vrot.slane %v1556_v51, 5  ;;  %1719 = vst.msk [vmem:[#allocation2 + $0x38] sm:$0xf] %vm1703_vm5, %v4409_v3 }
  0x5f   : > { %1721 = vst.msk [vmem:[#allocation2 + $0x40] sm:$0xf] %vm1703_vm5, %v4409_v3  ;;  %1723 = vst.msk [vmem:[#allocation2 + $0x48] sm:$0xf] %vm1703_vm5, %v4409_v3  ;;  %v1835_v49 = vld [vmem:[#allocation2 + $0xc] sm:$0x1] }
  0x60   : > { %1722 = vst.msk [vmem:[#allocation2 + $0x44] sm:$0x1] %vm1705_vm6, %v4409_v3  ;;  %1724 = vst.msk [vmem:[#allocation2 + $0x4c] sm:$0x1] %vm1705_vm6, %v4409_v3 }
  0x63   : > { %4040 = vmatmul.mubr.msk.bf16.vlgmr.msra.gmra.mrb[0].mxu0 %vm325_vm1, %v3684_v15  ;;  %v1538_v15 = vrot.slane %v1536_v62, 5 }
  0x64   : > { %4048 = vmatpush3.bf16.msra.mxu0 %v1252_v21  ;;  %4043 = vmatprep.mubr.msk.bf16.mxu0 %vm325_vm1, %v3685_v17  ;;  %v1500_v17 = vshll.u32 %v3730_v2, 16  ;;  %v1475_v21 = vsel %vm4503_vm4, %v1470_v63, %v1474_v0  ;;  %v1572_v63 = vrot.slane %v1570_v55, 5 }
  0x65   : > { %4338 = vmatprep.subr.msk.bf16.mxu0 %vm338_vm0, %v3716_v22  ;;  %v1489_v22 = vsel %vm4503_vm4, %v1484_v4, %v1488_v1  ;;  %v3759_v4 = vld [vmem:[%s5135_s3 + $0x4] sm:$0xf] }
  0x66   : > { %v1502_v33 = vrot.slane %v1500_v17, 5  ;;  %v3742_v35 = vcombine.low %v1475_v21, %v1489_v22  ;;  %v2038_v5 = vsel %vm2036_vm7, %v3759_v4, 0  ;;  %4341 = vmatprep.subr.msk.bf16.mxu1 %vm2036_vm7, %v3759_v4 }
  0x67   : > { %4178 = vmatpush3.bf16.msra.mxu1 %v2038_v5 }
  0x68   : > { %v1503_v50 = vsel %vm4503_vm4, %v1498_v36, %v1502_v33  ;;  %4342 = vmatprep.subr.msk.bf16.mxu1 %vm2036_vm7, %v4702_v6  ;;  %v1844_v33 = vld [vmem:[#allocation2 + $0x18] sm:$0xf] }
  0x6b   : > { %4044 = vmatmul.mubr.msk.bf16.gmra.mrb[4].mxu0 %vm325_vm1, %v3686_v25  ;;  %v1547_v25 = vshrl.u32 %v3737_v11, 16 }
  0x6c   : > { %4049 = vmatprep.mubr.msk.bf16.mxu0 %vm325_vm1, %v4377_v26  ;;  %v1550_v26 = vshll.u32 %v3737_v11, 16 }
  0x6d   : > { %v1549_v41 = vrot.slane %v1547_v25, 4 }
  0x6e   : > { %v1552_v42 = vrot.slane %v1550_v26, 5 }
  0x70   : > { %v1553_v53 = vor.u32 %v1552_v42, %v1549_v41  ;;  %v1829_v42 = vld [vmem:[#allocation2 + $0x8] sm:$0xf] }
  0x72   : > { %v1554_v61 = vrot.slane %v1553_v53, 4 }
  0x73   : > { %4050 = vmatmul.mubr.msk.bf16.vlgmr.msra.gmra.mrb[0].mxu0 %vm325_vm1, %v4378_v27  ;;  %v1561_v27 = vshrl.u32 %v3739_v16, 16 }
  0x74   : > { %4058 = vmatpush3.bf16.msra.mxu0 %v1371_v31  ;;  %4053 = vmatprep.mubr.msk.bf16.mxu0 %vm325_vm1, %v4379_v29  ;;  %v1525_v29 = vor.u32 %v1524_v13, %v1521_v12  ;;  %v1539_v31 = vor.u32 %v1538_v15, %v1535_v14  ;;  %v1559_v0 = vsel %vm4503_vm4, %v1554_v61, %v1558_v59 }
  0x75   : > { %4339 = vmatprep.subr.msk.bf16.mxu0 %vm338_vm0, %v3741_v32  ;;  %v1542_v32 = vshll.u32 %v3736_v20, 16  ;;  %v1563_v43 = vrot.slane %v1561_v27, 4  ;;  %v4723_v27 = vld [vmem:[#allocation2 + $0x4] sm:$0x1] }
  0x76   : > { %v1526_v45 = vrot.slane %v1525_v29, 4  ;;  %v1540_v47 = vrot.slane %v1539_v31, 4  ;;  %v1907_v31 = vshll.u32 %v4723_v27, 16 }
  0x77   : > { %v1544_v48 = vrot.slane %v1542_v32, 5  ;;  %v1567_v54 = vor.u32 %v1566_v44, %v1563_v43 }
  0x79   : > { %v1545_v57 = vsel %vm4503_vm4, %v1540_v47, %v1544_v48  ;;  %v1568_v62 = vrot.slane %v1567_v54, 4 }
  0x7b   : > { %4054 = vmatmul.mubr.msk.bf16.gmra.mrb[4].mxu0 %vm325_vm1, %v4380_v37  ;;  %v1512_v37 = vrot.slane %v1511_v24, 4  ;;  %v1573_v1 = vsel %vm4503_vm4, %v1568_v62, %v1572_v63  ;;  %v1853_v62 = vld [vmem:[#allocation2 + $0x24] sm:$0x1] }
  0x7c   : > { %4059 = vmatprep.mubr.msk.bf16.mxu0 %vm325_vm1, %v4381_v46  ;;  %v1530_v46 = vrot.slane %v1528_v30, 5  ;;  %v3745_v2 = vcombine.low %v1559_v0, %v1573_v1 }
  0x7d   : > { %v1517_v52 = vsel %vm4503_vm4, %v1512_v37, %v1516_v38 }
  0x7e   : > { %v1531_v56 = vsel %vm4503_vm4, %v1526_v45, %v1530_v46 }
  0x7f   : > { %v3744_v60 = vcombine.low %v1531_v56, %v1545_v57  ;;  %v1850_v57 = vld [vmem:[#allocation2 + $0x20] sm:$0xf] }
  0x83   : > { %4060 = vmatmul.mubr.msk.bf16.vlgmr.msra.gmra.mrb[0].mxu0 %vm325_vm1, %v4382_v58  ;;  %v3743_v58 = vcombine.low %v1503_v50, %v1517_v52 }
  0x84   : > { %4068 = vmatpush3.bf16.msra.mxu0 %v1601_v9  ;;  %4063 = vmatprep.mubr.msk.bf16.mxu0 %vm325_vm1, %v4383_v10  ;;  %v1898_v9 = vshrl.u32 %v4706_v7, 16  ;;  %v1901_v10 = vshll.u32 %v4706_v7, 16 }
  0x85   : > { %4340 = vmatprep.subr.msk.bf16.mxu0 %vm2036_vm7, %v3759_v4 }
  0x86   : > { %v4718_v19 = vrot.slane %v1898_v9, 4  ;;  %v4720_v20 = vrot.slane %v1901_v10, 5  ;;  %v1841_v9 = vld [vmem:[#allocation2 + $0x14] sm:$0x1] }
  0x88   : > { %v1904_v30 = vor.u32 %v4720_v20, %v4718_v19 }
  0x8b   : > { %4064 = vmatmul.mubr.msk.bf16.gmra.mrb[4].mxu0 %vm325_vm1, %v4384_v34  ;;  %v1847_v34 = vld [vmem:[#allocation2 + $0x1c] sm:$0x1] }
  0x8c   : > { %4069 = vmatprep.mubr.msk.bf16.mxu0 %vm325_vm1, %v3742_v35 }
  0x93   : > { %4070 = vmatmul.mubr.msk.bf16.vlgmr.msra.gmra.mrb[0].mxu0 %vm325_vm1, %v3743_v58 }
  0x94   : > { %4073 = vmatprep.mubr.msk.bf16.mxu0 %vm325_vm1, %v3744_v60  ;;  %4078 = vmatpush3.bf16.msra.mxu0 %v2038_v5  ;;  %v1838_v5 = vld [vmem:[#allocation2 + $0x10] sm:$0xf] }
  0x9b   : > { %4074 = vmatmul.mubr.msk.bf16.gmra.mrb[4].mxu0 %vm325_vm1, %v3745_v2 }
 0x166   : > { %v4071_v11 = vpop.f32.mrb[0].mxu0 }
 0x167   : > { %v1685_v12 = vadd.f32 %v4071_v11, %v4711_v8  ;;  %v1637_v13 = vpop.f32.mrb[1].mxu0 }
 0x168   : > { %v1683_v14 = vadd.f32 %v4711_v8, %v1637_v13  ;;  %v4072_v15 = vpop.f32.mrb[2].mxu0 }
 0x169   : > { %v1693_v16 = vmax.f32 %v1685_v12, 0.0  ;;  %v1686_v17 = vadd.f32 %v4072_v15, %v4711_v8  ;;  %v1640_v18 = vpop.f32.mrb[3].mxu0 }
 0x16a   : > { %v1691_v21 = vmax.f32 %v1683_v14, 0.0  ;;  %v1684_v22 = vadd.f32 %v4711_v8, %v1640_v18 }
 0x16b   : > { %v3886_v23 = vpack.c.bf16 %v1693_v16, %v1693_v16  ;;  %v1694_v24 = vmax.f32 %v1686_v17, 0.0 }
 0x16c   : > { %v3884_v25 = vpack.c.bf16 %v1691_v21, %v1691_v21  ;;  %v1692_v26 = vmax.f32 %v1684_v22, 0.0 }
 0x16d   : > { %v1762_v28 = vshrl.u32 %v3886_v23, 16  ;;  %v3887_v29 = vpack.c.bf16 %v1694_v24, %v1694_v24  ;;  %v1765_v32 = vshll.u32 %v3886_v23, 16 }
 0x16e   : > { %v1746_v35 = vshrl.u32 %v3884_v25, 16  ;;  %v1749_v36 = vshll.u32 %v3884_v25, 16  ;;  %v3885_v37 = vpack.c.bf16 %v1692_v26, %v1692_v26  ;;  %v4075_v38 = vpop.f32.mrb[4].mxu0  ;;  %v1868_v26 = vld [vmem:[#allocation2 + $0x38] sm:$0xf] }
 0x16f   : > { %v1764_v39 = vrot.slane %v1762_v28, 7  ;;  %v1770_v43 = vshrl.u32 %v3887_v29, 16  ;;  %v1773_v44 = vshll.u32 %v3887_v29, 16  ;;  %v1689_v45 = vadd.f32 %v4075_v38, %v4711_v8  ;;  %v1653_v46 = vpop.f32.mrb[5].mxu0  ;;  %v1859_v38 = vld [vmem:[#allocation2 + $0x2c] sm:$0x1] }
 0x170   : > { %v1748_v48 = vrot.slane %v1746_v35, 7  ;;  %v1754_v50 = vshrl.u32 %v3885_v37, 16  ;;  %v1757_v51 = vshll.u32 %v3885_v37, 16  ;;  %v1687_v52 = vadd.f32 %v4711_v8, %v1653_v46  ;;  %v4076_v53 = vpop.f32.mrb[6].mxu0  ;;  %v1856_v37 = vld [vmem:[#allocation2 + $0x28] sm:$0xf] }
 0x171   : > { %v1767_v54 = vor.u32 %v1765_v32, %v1764_v39  ;;  %v1768_v55 = vrot.slane %v1764_v39, 4  ;;  %v1772_v56 = vrot.slane %v1770_v43, 7  ;;  %v1697_v58 = vmax.f32 %v1689_v45, 0.0  ;;  %v1656_v59 = vpop.f32.mrb[7].mxu0 }
 0x172   : > { %v1751_v60 = vor.u32 %v1749_v36, %v1748_v48  ;;  %v1752_v61 = vrot.slane %v1748_v48, 4  ;;  %v1756_v63 = vrot.slane %v1754_v50, 7  ;;  %v1695_v0 = vmax.f32 %v1687_v52, 0.0 }
 0x173   : > { %v1845_v1 = vsel %vm4730_vm10, %v1767_v54, %v1844_v33  ;;  %v1848_v2 = vsel %vm4737_vm11, %v1768_v55, %v1847_v34  ;;  %v1775_v3 = vor.u32 %v1773_v44, %v1772_v56  ;;  %v1776_v4 = vrot.slane %v1772_v56, 4  ;;  %v1871_v34 = vld [vmem:[#allocation2 + $0x3c] sm:$0x1]  ;;  %v1874_v55 = vld [vmem:[#allocation2 + $0x40] sm:$0xf] }
 0x174   : > { %1846 = vst [vmem:[#allocation2 + $0x18] sm:$0xf] %v1845_v1  ;;  %1849 = vst [vmem:[#allocation2 + $0x1c] sm:$0x1] %v1848_v2  ;;  %v1830_v10 = vsel %vm4730_vm10, %v1751_v60, %v1829_v42  ;;  %v1836_v11 = vsel %vm4737_vm11, %v1752_v61, %v1835_v49  ;;  %v1759_v12 = vor.u32 %v1757_v51, %v1756_v63  ;;  %v1760_v13 = vrot.slane %v1756_v63, 4 }
 0x175   : > { %1831 = vst [vmem:[#allocation2 + $0x8] sm:$0xf] %v1830_v10  ;;  %1837 = vst [vmem:[#allocation2 + $0xc] sm:$0x1] %v1836_v11  ;;  %v1851_v14 = vsel %vm4730_vm10, %v1775_v3, %v1850_v57  ;;  %v1854_v15 = vsel %vm4737_vm11, %v1776_v4, %v1853_v62  ;;  %v3890_v16 = vpack.c.bf16 %v1697_v58, %v1697_v58  ;;  %v4767_v43 = vrot.slane %v1907_v31, 5 }
 0x176   : > { %v3888_v17 = vpack.c.bf16 %v1695_v0, %v1695_v0  ;;  %1852 = vst [vmem:[#allocation2 + $0x20] sm:$0xf] %v1851_v14  ;;  %1855 = vst [vmem:[#allocation2 + $0x24] sm:$0x1] %v1854_v15  ;;  %v1839_v18 = vsel %vm4730_vm10, %v1759_v12, %v1838_v5  ;;  %v1842_v21 = vsel %vm4737_vm11, %v1760_v13, %v1841_v9  ;;  %v1877_v56 = vld [vmem:[#allocation2 + $0x44] sm:$0x1] }
 0x177   : > { %v1690_v22 = vadd.f32 %v4076_v53, %v4711_v8  ;;  %v1688_v23 = vadd.f32 %v4711_v8, %v1656_v59  ;;  %1840 = vst [vmem:[#allocation2 + $0x10] sm:$0xf] %v1839_v18  ;;  %1843 = vst [vmem:[#allocation2 + $0x14] sm:$0x1] %v1842_v21  ;;  %v1794_v24 = vshrl.u32 %v3890_v16, 16  ;;  %v1797_v33 = vshll.u32 %v3890_v16, 16 }
 0x178   : > { %v1778_v25 = vshrl.u32 %v3888_v17, 16  ;;  %v1781_v36 = vshll.u32 %v3888_v17, 16  ;;  %v4763_v8 = vrot.slane %v1904_v30, 4  ;;  %v1862_v57 = vld [vmem:[#allocation2 + $0x30] sm:$0xf] }
 0x179   : > { %v1698_v28 = vmax.f32 %v1690_v22, 0.0  ;;  %v1696_v29 = vmax.f32 %v1688_v23, 0.0  ;;  %v1796_v32 = vrot.slane %v1794_v24, 7  ;;  %v1865_v0 = vld [vmem:[#allocation2 + $0x34] sm:$0x1] }
 0x17a   : > { %v1780_v35 = vrot.slane %v1778_v25, 7  ;;  %v1910_v24 = vsel %vm4503_vm4, %v4763_v8, %v4767_v43 }
 0x17b   : > { %v3891_v39 = vpack.c.bf16 %v1698_v28, %v1698_v28  ;;  %v3889_v42 = vpack.c.bf16 %v1696_v29, %v1696_v29  ;;  %v1799_v44 = vor.u32 %v1797_v33, %v1796_v32  ;;  %v1800_v45 = vrot.slane %v1796_v32, 4  ;;  %v4769_v49 = vld [vmem:[#allocation2 + $0x18] sm:$0xf]  ;;  %v4803_v23 = vld [vmem:[#allocation2 + $0x1c] sm:$0x1] }
 0x17c   : > { %v1783_v46 = vor.u32 %v1781_v36, %v1780_v35  ;;  %v1784_v48 = vrot.slane %v1780_v35, 4  ;;  %v4771_v54 = vld [vmem:[#allocation2 + $0x8] sm:$0xf]  ;;  %v4781_v58 = vld [vmem:[#allocation2 + $0xc] sm:$0x1]  ;;  %v1940_v3 = vshrl.u32 %v4769_v49, 16 }
 0x17d   : > { %v1802_v50 = vshrl.u32 %v3891_v39, 16  ;;  %v1805_v51 = vshll.u32 %v3891_v39, 16  ;;  %v1786_v52 = vshrl.u32 %v3889_v42, 16  ;;  %v1789_v53 = vshll.u32 %v3889_v42, 16  ;;  %v4793_v16 = vld [vmem:[#allocation2 + $0x20] sm:$0xf] }
 0x17e   : > { %v1869_v19 = vsel %vm4730_vm10, %v1799_v44, %v1868_v26  ;;  %v1872_v20 = vsel %vm4737_vm11, %v1800_v45, %v1871_v34  ;;  %v1857_v30 = vsel %vm4730_vm10, %v1783_v46, %v1856_v37  ;;  %v1860_v31 = vsel %vm4737_vm11, %v1784_v48, %v1859_v38  ;;  %v4785_v63 = vld [vmem:[#allocation2 + $0x10] sm:$0xf]  ;;  %v4790_v11 = vld [vmem:[#allocation2 + $0x14] sm:$0x1]  ;;  %v4810_v41 = vld [vmem:[#allocation2 + $0x24] sm:$0x1] }
 0x17f   : > { %1870 = vst [vmem:[#allocation2 + $0x38] sm:$0xf] %v1869_v19  ;;  %1873 = vst [vmem:[#allocation2 + $0x3c] sm:$0x1] %v1872_v20  ;;  %v1804_v59 = vrot.slane %v1802_v50, 7  ;;  %v1788_v60 = vrot.slane %v1786_v52, 7 }
 0x180   : > { %1858 = vst [vmem:[#allocation2 + $0x28] sm:$0xf] %v1857_v30  ;;  %1861 = vst [vmem:[#allocation2 + $0x2c] sm:$0x1] %v1860_v31  ;;  %v1912_v61 = vshrl.u32 %v4771_v54, 16  ;;  %v1915_v62 = vshll.u32 %v4771_v54, 16 }
 0x181   : > { %v1926_v1 = vshrl.u32 %v4785_v63, 16  ;;  %v1929_v2 = vshll.u32 %v4785_v63, 16  ;;  %v1807_v4 = vor.u32 %v1805_v51, %v1804_v59  ;;  %v1808_v5 = vrot.slane %v1804_v59, 4 }
 0x182   : > { %v1791_v9 = vor.u32 %v1789_v53, %v1788_v60  ;;  %v1792_v10 = vrot.slane %v1788_v60, 4  ;;  %v1914_v12 = vrot.slane %v1912_v61, 4  ;;  %v1917_v13 = vrot.slane %v1915_v62, 5 }
 0x183   : > { %v1921_v14 = vshll.u32 %v4781_v58, 16  ;;  %v1928_v15 = vrot.slane %v1926_v1, 4  ;;  %v1875_v17 = vsel %vm4730_vm10, %v1807_v4, %v1874_v55  ;;  %v1878_v18 = vsel %vm4737_vm11, %v1808_v5, %v1877_v56 }
 0x184   : > { %v1863_v21 = vsel %vm4730_vm10, %v1791_v9, %v1862_v57  ;;  %v1866_v22 = vsel %vm4737_vm11, %v1792_v10, %v1865_v0  ;;  %1876 = vst [vmem:[#allocation2 + $0x40] sm:$0xf] %v1875_v17  ;;  %1879 = vst [vmem:[#allocation2 + $0x44] sm:$0x1] %v1878_v18  ;;  %v1918_v25 = vor.u32 %v1917_v13, %v1914_v12  ;;  %v1931_v26 = vrot.slane %v1929_v2, 5 }
 0x185   : > { %1864 = vst [vmem:[#allocation2 + $0x30] sm:$0xf] %v1863_v21  ;;  %1867 = vst [vmem:[#allocation2 + $0x34] sm:$0x1] %v1866_v22  ;;  %v1935_v28 = vshll.u32 %v4790_v11, 16  ;;  %v1942_v29 = vrot.slane %v1940_v3, 4 }
 0x186   : > { %v1943_v47 = vshll.u32 %v4769_v49, 16  ;;  %v1954_v32 = vshrl.u32 %v4793_v16, 16  ;;  %v1957_v33 = vshll.u32 %v4793_v16, 16  ;;  %v1919_v34 = vrot.slane %v1918_v25, 4  ;;  %v4825_v31 = vld [vmem:[#allocation2 + $0x38] sm:$0xf] }
 0x187   : > { %v1923_v35 = vrot.slane %v1921_v14, 5  ;;  %v1932_v36 = vor.u32 %v1931_v26, %v1928_v15  ;;  %v1949_v37 = vshll.u32 %v4803_v23, 16  ;;  %v4816_v38 = vld [vmem:[#allocation2 + $0x28] sm:$0xf]  ;;  %v1937_v39 = vrot.slane %v1935_v28, 5 }
 0x188   : > { %v1945_v42 = vrot.slane %v1943_v47, 5  ;;  %v1956_v8 = vrot.slane %v1954_v32, 4  ;;  %v1959_v43 = vrot.slane %v1957_v33, 5  ;;  %v4820_v46 = vld [vmem:[#allocation2 + $0x2c] sm:$0x1]  ;;  %v1963_v48 = vshll.u32 %v4810_v41, 16 }
 0x189   : > { %v1924_v44 = vsel %vm4503_vm4, %v1919_v34, %v1923_v35  ;;  %v1933_v45 = vrot.slane %v1932_v36, 4  ;;  %v1968_v50 = vshrl.u32 %v4816_v38, 16  ;;  %v1971_v19 = vshll.u32 %v4816_v38, 16  ;;  %v4839_v5 = vld [vmem:[#allocation2 + $0x3c] sm:$0x1] }
 0x18a   : > { %v3760_v51 = vcombine.low %v1910_v24, %v1924_v44  ;;  %v1946_v52 = vor.u32 %v1945_v42, %v1942_v29  ;;  %v1960_v53 = vor.u32 %v1959_v43, %v1956_v8  ;;  %v1951_v20 = vrot.slane %v1949_v37, 5  ;;  %v3784_v43 = vld [vmem:[%s5135_s3 + $0x8] sm:$0xf]  ;;  %v2205_v44 = vld [vmem:[#allocation2] sm:$0xe] }
 0x18b   : > { %v1970_v30 = vrot.slane %v1968_v50, 4  ;;  %v1938_v55 = vsel %vm4503_vm4, %v1933_v45, %v1937_v39  ;;  %v1973_v57 = vrot.slane %v1971_v19, 5  ;;  %v1977_v59 = vshll.u32 %v4820_v46, 16  ;;  %v2206_v45 = vld [vmem:[#allocation2 + $0x8] sm:$0xe] }
 0x18c   : > { %4079 = vmatprep.mubr.msk.bf16.mxu0 %vm2023_vm12, %v3760_v51  ;;  %v1947_v56 = vrot.slane %v1946_v52, 4  ;;  %v4831_v60 = vld [vmem:[#allocation2 + $0x30] sm:$0xf]  ;;  %v4833_v61 = vld [vmem:[#allocation2 + $0x34] sm:$0x1]  ;;  %v1961_v2 = vrot.slane %v1960_v53, 4  ;;  %v3768_v8 = vcombine.low %v4706_v7, %v4771_v54  ;;  %v3770_v7 = vcombine.low %v4793_v16, %v4816_v38 }
 0x18d   : > { %v1982_v62 = vshrl.u32 %v4831_v60, 16  ;;  %v1985_v0 = vshll.u32 %v4831_v60, 16  ;;  %v1965_v3 = vrot.slane %v1963_v48, 5  ;;  %v1974_v4 = vor.u32 %v1973_v57, %v1970_v30  ;;  %v3793_v54 = vld [vmem:[%s5135_s3 + $0xc] sm:$0xf] }
 0x18e   : > { %v1952_v1 = vsel %vm4503_vm4, %v1947_v56, %v1951_v20  ;;  %v1996_v13 = vshrl.u32 %v4825_v31, 16  ;;  %v1979_v15 = vrot.slane %v1977_v59, 5  ;;  %v1991_v17 = vshll.u32 %v4833_v61, 16  ;;  %v2207_v38 = vld [vmem:[#allocation2 + $0x10] sm:$0xe] }
 0x18f   : > { %v3761_v9 = vcombine.low %v1938_v55, %v1952_v1  ;;  %v1984_v10 = vrot.slane %v1982_v62, 4  ;;  %v1987_v12 = vrot.slane %v1985_v0, 5  ;;  %v1975_v14 = vrot.slane %v1974_v4, 4  ;;  %v2208_v19 = vld [vmem:[#allocation2 + $0x18] sm:$0xe] }
 0x190   : > { %v1999_v18 = vshll.u32 %v4825_v31, 16  ;;  %v1998_v22 = vrot.slane %v1996_v13, 4  ;;  %v1966_v24 = vsel %vm4503_vm4, %v1961_v2, %v1965_v3  ;;  %v2005_v28 = vshll.u32 %v4839_v5, 16  ;;  %v2209_v56 = vld [vmem:[#allocation2 + $0x20] sm:$0xe] }
 0x191   : > { %4080 = vmatmul.mubr.msk.bf16.vlgmr.msra.gmra.mrb[8].mxu0 %vm2023_vm12, %v3761_v9  ;;  %v1988_v21 = vor.u32 %v1987_v12, %v1984_v10  ;;  %v1980_v25 = vsel %vm4503_vm4, %v1975_v14, %v1979_v15  ;;  %v1993_v32 = vrot.slane %v1991_v17, 5  ;;  %v2138_v42 = vsel %vm2036_vm7, %v4702_v6, 0  ;;  %v3802_v13 = vld [vmem:[%s5135_s3 + $0x10] sm:$0xf] }
 0x192   : > { %v2001_v26 = vrot.slane %v1999_v18, 5  ;;  %v3762_v29 = vcombine.low %v1966_v24, %v1980_v25  ;;  %v2007_v36 = vrot.slane %v2005_v28, 5  ;;  %v3769_v48 = vcombine.low %v4785_v63, %v4769_v49  ;;  %v2486_v17 = vld [vmem:[#allocation2 + $0x10] sm:$0xf] }
 0x193   : > { %v1989_v47 = vrot.slane %v1988_v21, 4  ;;  %v2291_v6 = vsel %vm2036_vm7, %v3784_v43, 0  ;;  %v3776_v50 = vrot.slane %v2205_v44, 9  ;;  %v2234_v51 = vrot.slane %v4723_v27, 5  ;;  %v2210_v27 = vld [vmem:[#allocation2 + $0x28] sm:$0xe] }
 0x194   : > { %v2002_v33 = vor.u32 %v2001_v26, %v1998_v22  ;;  %4083 = vmatprep.mubr.msk.bf16.mxu1 %vm2023_vm12, %v3762_v29  ;;  %v3777_v52 = vrot.slane %v2206_v45, 9  ;;  %v2238_v53 = vrot.slane %v4781_v58, 5  ;;  %v3771_v58 = vcombine.low %v4831_v60, %v4825_v31  ;;  %v2211_v60 = vld [vmem:[#allocation2 + $0x30] sm:$0xe]  ;;  %v2484_v21 = vld [vmem:[#allocation2 + $0x8] sm:$0xf] }
 0x195   : > { %v1994_v34 = vsel %vm4503_vm4, %v1989_v47, %v1993_v32  ;;  %v2235_v63 = vsel %vm4877_vm15, %v3776_v50, %v2234_v51  ;;  %v3778_v30 = vrot.slane %v2207_v38, 9  ;;  %v2242_v55 = vrot.slane %v4790_v11, 5  ;;  %v4389_v29 = vld [vmem:[#allocation2 + $0x8] ss:$8 sps:$4 sm:$0xff]   ;;  %v2490_v32 = vld [vmem:[#allocation2 + $0x20] sm:$0xf] }
 0x196   : > { %v2003_v35 = vrot.slane %v2002_v33, 4  ;;  %v2239_v16 = vsel %vm4877_vm15, %v3777_v52, %v2238_v53  ;;  %v2254_v57 = vrot.slane %v4820_v46, 5  ;;  %v3781_v59 = vrot.slane %v2210_v27, 9  ;;  %v2494_v33 = vld [vmem:[#allocation2 + $0x30] sm:$0xf] }
 0x197   : > { %v3785_v20 = vcombine.low %v2235_v63, %v2239_v16  ;;  %v3779_v62 = vrot.slane %v2208_v19, 9  ;;  %v2246_v0 = vrot.slane %v4803_v23, 5  ;;  %v2250_v1 = vrot.slane %v4810_v41, 5  ;;  %v2212_v23 = vld [vmem:[#allocation2 + $0x38] sm:$0xe] }
 0x198   : > { %v2008_v37 = vsel %vm4503_vm4, %v2003_v35, %v2007_v36  ;;  %v3780_v2 = vrot.slane %v2209_v56, 9  ;;  %v2243_v31 = vsel %vm4877_vm15, %v3778_v30, %v2242_v55  ;;  %v2255_v11 = vsel %vm4877_vm15, %v3781_v59, %v2254_v57  ;;  %v2488_v36 = vld [vmem:[#allocation2 + $0x18] sm:$0xf]  ;;  %v4391_v16 = vld [vmem:[#allocation2 + $0x28] ss:$8 sps:$4 sm:$0xff]  }
 0x199   : > { %v3763_v39 = vcombine.low %v1994_v34, %v2008_v37  ;;  %v2247_v46 = vsel %vm4877_vm15, %v3779_v62, %v2246_v0  ;;  %v2409_v4 = vsel %vm2036_vm7, %v3793_v54, 0  ;;  %v3782_v41 = vrot.slane %v2211_v60, 9  ;;  %v4917_v37 = vld [vmem:[#allocation2 + $0x14] sm:$0x1]  ;;  %v4390_v50 = vld [vmem:[#allocation2 + $0x18] ss:$8 sps:$4 sm:$0xff]  }
 0x19a   : > { %v3786_v3 = vcombine.low %v2243_v31, %v2247_v46  ;;  %v2251_v9 = vsel %vm4877_vm15, %v3780_v2, %v2250_v1  ;;  %v2258_v12 = vrot.slane %v4833_v61, 5  ;;  %v3783_v14 = vrot.slane %v2212_v23, 9  ;;  %v4926_v38 = vld [vmem:[%s5135_s3 + $0x14] sm:$0xf]  ;;  %v2498_v56 = vld [vmem:[#allocation2 + $0x40] sm:$0xf] }
 0x19b   : > { %4084 = vmatmul.mubr.msk.bf16.vlgmr.msra.gmra.mrb[0].mxu1 %vm2023_vm12, %v3763_v39  ;;  %v3787_v10 = vcombine.low %v2251_v9, %v2255_v11  ;;  %v2262_v15 = vrot.slane %v4839_v5, 5  ;;  %v2515_v61 = vshrl.u32 %v2486_v17, 16  ;;  %v2518_v22 = vshll.u32 %v2486_v17, 16  ;;  %v4931_v57 = vld [vmem:[#allocation2 + $0x24] sm:$0x1] }
 0x19c   : > { %4088 = vmatpush3.bf16.msra.mxu1 %v2138_v42  ;;  %4089 = vmatprep.mubr.msk.bf16.mxu1 %vm2023_vm12, %v3768_v8  ;;  %v2259_v18 = vsel %vm4877_vm15, %v3782_v41, %v2258_v12  ;;  %v2501_v26 = vshrl.u32 %v2484_v21, 16  ;;  %v2504_v28 = vshll.u32 %v2484_v21, 16  ;;  %v2543_v39 = vshrl.u32 %v2490_v32, 16  ;;  %v2492_v8 = vld [vmem:[#allocation2 + $0x28] sm:$0xf] }
 0x19d   : > { %4343 = vmatprep.subr.msk.bf16.mxu1 %vm2036_vm7, %v3784_v43  ;;  %v2263_v24 = vsel %vm4877_vm15, %v3783_v14, %v2262_v15  ;;  %v2517_v47 = vrot.slane %v2515_v61, 4  ;;  %v2520_v5 = vrot.slane %v2518_v22, 5  ;;  %v2546_v42 = vshll.u32 %v2490_v32, 16  ;;  %v2496_v11 = vld [vmem:[#allocation2 + $0x38] sm:$0xf] }
 0x19e   : > { %v3788_v25 = vcombine.low %v2259_v18, %v2263_v24  ;;  %v2503_v34 = vrot.slane %v2501_v26, 4  ;;  %v2506_v35 = vrot.slane %v2504_v28, 5  ;;  %v2571_v44 = vshrl.u32 %v2494_v33, 16  ;;  %v4935_v60 = vld [vmem:[#allocation2 + $0x1c] sm:$0x1] }
 0x19f   : > { %v2521_v43 = vor.u32 %v2520_v5, %v2517_v47  ;;  %v2574_v45 = vshll.u32 %v2494_v33, 16  ;;  %v2524_v52 = vshll.u32 %v4917_v37, 16  ;;  %v2557_v53 = vshrl.u32 %v2492_v8, 16  ;;  %v4942_v14 = vld [vmem:[#allocation2 + $0x2c] sm:$0x1] }
 0x1a0   : > { %v2507_v51 = vor.u32 %v2506_v35, %v2503_v34  ;;  %v2560_v63 = vshll.u32 %v2492_v8, 16  ;;  %v2545_v27 = vrot.slane %v2543_v39, 4  ;;  %v2573_v30 = vrot.slane %v2571_v44, 4  ;;  %v4392_v18 = vld [vmem:[#allocation2 + $0x38] ss:$8 sps:$4 sm:$0xff]  }
 0x1a1   : > { %v2576_v55 = vrot.slane %v2574_v45, 5  ;;  %v2526_v1 = vrot.slane %v2524_v52, 5  ;;  %v2559_v2 = vrot.slane %v2557_v53, 4  ;;  %v2602_v9 = vshll.u32 %v2498_v56, 16  ;;  %v2715_v52 = vld [vmem:[#allocation2 + $0x10] sm:$0xe] }
 0x1a2   : > { %v2508_v0 = vrot.slane %v2507_v51, 4  ;;  %v2562_v31 = vrot.slane %v2560_v63, 5  ;;  %v2585_v15 = vshrl.u32 %v2496_v11, 16  ;;  %v2588_v17 = vshll.u32 %v2496_v11, 16  ;;  %v2717_v11 = vld [vmem:[#allocation2 + $0x20] sm:$0xe] }
 0x1a3   : > { %4090 = vmatmul.mubr.msk.bf16.vlgmr.msra.gmra.mrb[4].mxu1 %vm2023_vm12, %v3769_v48  ;;  %v2639_v48 = vsel %vm2036_vm7, %v3802_v13, 0  ;;  %v2577_v41 = vor.u32 %v2576_v55, %v2573_v30  ;;  %v2538_v61 = vshll.u32 %v4935_v60, 16  ;;  %v2566_v47 = vshll.u32 %v4942_v14, 16  ;;  %v3828_v30 = vld [vmem:[%s5135_s3 + $0x18] sm:$0xf] }
 0x1a4   : > { %4098 = vmatpush3.bf16.msra.mxu1 %v2291_v6  ;;  %4093 = vmatprep.mubr.msk.bf16.mxu1 %vm2023_vm12, %v3770_v7  ;;  %v4920_v6 = vld [vmem:[#allocation2 + $0xc] sm:$0x1]  ;;  %v2529_v7 = vshrl.u32 %v2488_v36, 16  ;;  %v2563_v22 = vor.u32 %v2562_v31, %v2559_v2  ;;  %v2587_v34 = vrot.slane %v2585_v15, 4  ;;  %v2590_v35 = vrot.slane %v2588_v17, 5 }
 0x1a5   : > { %4344 = vmatprep.subr.msk.bf16.mxu1 %vm2036_vm7, %v3793_v54  ;;  %v2532_v54 = vshll.u32 %v2488_v36, 16  ;;  %v2510_v19 = vshll.u32 %v4920_v6, 16  ;;  %v2578_v5 = vrot.slane %v2577_v41, 4  ;;  %v2540_v8 = vrot.slane %v2538_v61, 5 }
 0x1a6   : > { %v2531_v59 = vrot.slane %v2529_v7, 4  ;;  %v2564_v36 = vrot.slane %v2563_v22, 4  ;;  %v2568_v45 = vrot.slane %v2566_v47, 5  ;;  %v4957_v7 = vld [vmem:[#allocation2 + $0x3c] sm:$0x1]  ;;  %v2797_v63 = vsel %vm2036_vm7, %v4926_v38, 0 }
 0x1a7   : > { %v2534_v62 = vrot.slane %v2532_v54, 5  ;;  %v2512_v23 = vrot.slane %v2510_v19, 5  ;;  %v3812_v55 = vrot.slane %v2715_v52, 9  ;;  %v2752_v41 = vrot.slane %v4931_v57, 5 }
 0x1a8   : > { %v2756_v61 = vrot.slane %v4942_v14, 5 }
 0x1a9   : > { %v2535_v12 = vor.u32 %v2534_v62, %v2531_v59  ;;  %v2513_v21 = vsel %vm4503_vm4, %v2508_v0, %v2512_v23  ;;  %v2740_v0 = vrot.slane %v4920_v6, 5  ;;  %v2716_v23 = vld [vmem:[#allocation2 + $0x18] sm:$0xe] }
 0x1aa   : > { %v3813_v17 = vrot.slane %v2716_v23, 9 }
 0x1ab   : > { %4094 = vmatmul.mubr.msk.bf16.gmra.mrb[0].mxu1 %vm2023_vm12, %v3771_v58  ;;  %v2548_v58 = vrot.slane %v2546_v42, 5  ;;  %v2536_v32 = vrot.slane %v2535_v12, 4  ;;  %v4951_v42 = vld [vmem:[#allocation2 + $0x44] sm:$0x1]  ;;  %v2718_v12 = vld [vmem:[#allocation2 + $0x28] sm:$0xe] }
 0x1ac   : > { %4099 = vmatprep.mubr.msk.bf16.mxu1 %vm2023_vm12, %v3785_v20  ;;  %v2522_v20 = vrot.slane %v2521_v43, 4  ;;  %v2608_v51 = vshll.u32 %v4951_v42, 16  ;;  %v2768_v14 = vrot.slane %v4951_v42, 5 }
 0x1ad   : > { %v2549_v46 = vor.u32 %v2548_v58, %v2545_v27  ;;  %v2541_v54 = vsel %vm4503_vm4, %v2536_v32, %v2540_v8  ;;  %v2594_v58 = vshll.u32 %v4957_v7, 16 }
 0x1ae   : > { %v2610_v59 = vrot.slane %v2608_v51, 5  ;;  %v2999_v51 = vld [vmem:[#allocation2 + $0x30] sm:$0xf] }
 0x1af   : > { %v2550_v26 = vrot.slane %v2549_v46, 4  ;;  %v2719_v46 = vld [vmem:[#allocation2 + $0x30] sm:$0xe] }
 0x1b3   : > { %4100 = vmatmul.mubr.msk.bf16.vlgmr.msra.gmra.mrb[4].mxu1 %vm2023_vm12, %v3786_v3  ;;  %v4937_v3 = vld [vmem:[#allocation2 + $0x34] sm:$0x1] }
 0x1b4   : > { %4108 = vmatpush3.bf16.msra.mxu1 %v2409_v4  ;;  %4103 = vmatprep.mubr.msk.bf16.mxu1 %vm2023_vm12, %v3787_v10  ;;  %v2599_v4 = vshrl.u32 %v2498_v56, 16  ;;  %v2527_v10 = vsel %vm4503_vm4, %v2522_v20, %v2526_v1  ;;  %v2580_v24 = vshll.u32 %v4937_v3, 16  ;;  %v2714_v20 = vld [vmem:[#allocation2 + $0x8] sm:$0xe]  ;;  %v2744_v56 = vrot.slane %v4917_v37, 5 }
 0x1b5   : > { %4345 = vmatprep.subr.msk.bf16.mxu1 %vm2036_vm7, %v3802_v13  ;;  %v2552_v13 = vshll.u32 %v4931_v57, 16  ;;  %v3811_v62 = vrot.slane %v2714_v20, 9  ;;  %v2596_v1 = vrot.slane %v2594_v58, 5  ;;  %v2760_v15 = vrot.slane %v4937_v3, 5 }
 0x1b6   : > { %v2601_v28 = vrot.slane %v2599_v4, 4  ;;  %v2582_v39 = vrot.slane %v2580_v24, 5  ;;  %v2745_v31 = vsel %vm4877_vm15, %v3812_v55, %v2744_v56  ;;  %v2721_v24 = vld [vmem:[#allocation2 + $0x40] sm:$0xe]  ;;  %v2916_v3 = vsel %vm2036_vm7, %v3828_v30, 0 }
 0x1b7   : > { %v2554_v33 = vrot.slane %v2552_v13, 5  ;;  %v3816_v13 = vrot.slane %v2719_v46, 9  ;;  %v3818_v47 = vrot.slane %v2721_v24, 9  ;;  %v3067_v55 = vshll.u32 %v2999_v51, 16  ;;  %v3005_v56 = vld [vmem:[#allocation2 + $0x48] sm:$0xf] }
 0x1b8   : > { %v4395_v46 = vld [vmem:[#allocation2 + $0x30] ss:$8 sps:$4 sm:$0xff]  }
 0x1b9   : > { %v2555_v43 = vsel %vm4503_vm4, %v2550_v26, %v2554_v33  ;;  %v2761_v57 = vsel %vm4877_vm15, %v3816_v13, %v2760_v15  ;;  %v2764_v33 = vrot.slane %v4957_v7, 5  ;;  %v3003_v13 = vld [vmem:[#allocation2 + $0x40] sm:$0xf] }
 0x1ba   : > { %v3804_v53 = vcombine.low %v2541_v54, %v2555_v43 }
 0x1bb   : > { %4104 = vmatmul.mubr.msk.bf16.gmra.mrb[0].mxu1 %vm2023_vm12, %v3788_v25  ;;  %v3803_v25 = vcombine.low %v2513_v21, %v2527_v10  ;;  %v3814_v10 = vrot.slane %v2717_v11, 9  ;;  %v3815_v21 = vrot.slane %v2718_v12, 9  ;;  %v3069_v12 = vrot.slane %v3067_v55, 5 }
 0x1bc   : > { %4109 = vmatprep.mubr.msk.bf16.mxu1 %vm2023_vm12, %v4389_v29  ;;  %v2604_v29 = vrot.slane %v2602_v9, 5  ;;  %v2741_v9 = vsel %vm4877_vm15, %v3811_v62, %v2740_v0 }
 0x1bd   : > { %v3820_v6 = vcombine.low %v2741_v9, %v2745_v31  ;;  %v2753_v22 = vsel %vm4877_vm15, %v3814_v10, %v2752_v41 }
 0x1be   : > { %v2605_v44 = vor.u32 %v2604_v29, %v2601_v28  ;;  %v2757_v28 = vsel %vm4877_vm15, %v3815_v21, %v2756_v61  ;;  %v3109_v21 = vshll.u32 %v3005_v56, 16 }
 0x1bf   : > { %v3822_v29 = vcombine.low %v2757_v28, %v2761_v57  ;;  %v5028_v57 = vld [vmem:[#allocation2 + $0x2c] sm:$0x1]  ;;  %v5032_v28 = vld [vmem:[#allocation2 + $0x34] sm:$0x1] }
 0x1c0   : > { %v2606_v19 = vrot.slane %v2605_v44, 4  ;;  %v3263_v40 = vrot.slane %v5032_v28, 5 }
 0x1c2   : > { %v2611_v2 = vsel %vm4503_vm4, %v2606_v19, %v2610_v59  ;;  %v3001_v19 = vld [vmem:[#allocation2 + $0x38] sm:$0xf]  ;;  %v5015_v59 = vld [vmem:[#allocation2 + $0x1c] sm:$0x1] }
 0x1c3   : > { %4110 = vmatmul.mubr.msk.bf16.vlgmr.msra.gmra.mrb[4].mxu1 %vm2023_vm12, %v4390_v50  ;;  %v2591_v50 = vor.u32 %v2590_v35, %v2587_v34  ;;  %v2991_v34 = vld [vmem:[#allocation2 + $0x10] sm:$0xf]  ;;  %v2769_v35 = vsel %vm4877_vm15, %v3818_v47, %v2768_v14  ;;  %v3078_v11 = vshrl.u32 %v3001_v19, 16  ;;  %v3031_v10 = vshll.u32 %v5015_v59, 16 }
 0x1c4   : > { %4118 = vmatpush3.bf16.msra.mxu1 %v2639_v48  ;;  %4113 = vmatprep.mubr.msk.bf16.mxu1 %vm2023_vm12, %v4391_v16  ;;  %v2583_v48 = vsel %vm4503_vm4, %v2578_v5, %v2582_v39  ;;  %v2569_v16 = vsel %vm4503_vm4, %v2564_v36, %v2568_v45  ;;  %v3837_v5 = vld [vmem:[%s5135_s3 + $0x1c] sm:$0xf]  ;;  %v2993_v36 = vld [vmem:[#allocation2 + $0x18] sm:$0xf]  ;;  %v3008_v39 = vshrl.u32 %v2991_v34, 16  ;;  %v3011_v42 = vshll.u32 %v2991_v34, 16 }
 0x1c5   : > { %4346 = vmatprep.subr.msk.bf16.mxu1 %vm2036_vm7, %v4926_v38  ;;  %v3805_v27 = vcombine.low %v2569_v16, %v2583_v48  ;;  %v2592_v38 = vrot.slane %v2591_v50, 4  ;;  %v3022_v44 = vshrl.u32 %v2993_v36, 16  ;;  %v3025_v45 = vshll.u32 %v2993_v36, 16  ;;  %v4393_v48 = vld [vmem:[#allocation2 + $0x10] ss:$8 sps:$4 sm:$0xff]  }
 0x1c6   : > { %v3010_v54 = vrot.slane %v3008_v39, 4  ;;  %v3013_v7 = vrot.slane %v3011_v42, 5  ;;  %v2997_v50 = vld [vmem:[#allocation2 + $0x28] sm:$0xf]  ;;  %v5012_v16 = vld [vmem:[#allocation2 + $0x14] sm:$0x1] }
 0x1c7   : > { %v2597_v37 = vsel %vm4503_vm4, %v2592_v38, %v2596_v1  ;;  %v3024_v52 = vrot.slane %v3022_v44, 4  ;;  %v3053_v58 = vshll.u32 %v2997_v50, 16  ;;  %v3146_v38 = vsel %vm2036_vm7, %v3837_v5, 0  ;;  %v4394_v1 = vld [vmem:[#allocation2 + $0x20] ss:$8 sps:$4 sm:$0xff]  }
 0x1c8   : > { %v3806_v4 = vcombine.low %v2597_v37, %v2611_v2  ;;  %v3014_v20 = vor.u32 %v3013_v7, %v3010_v54  ;;  %v3017_v2 = vshll.u32 %v5012_v16, 16  ;;  %v3081_v37 = vshll.u32 %v3001_v19, 16  ;;  %v5037_v34 = vld [vmem:[#allocation2 + $0x3c] sm:$0x1]  ;;  %v4396_v39 = vld [vmem:[#allocation2 + $0x40] ss:$8 sps:$4 sm:$0xff]  }
 0x1c9   : > { %v3055_v23 = vrot.slane %v3053_v58, 5  ;;  %v3080_v24 = vrot.slane %v3078_v11, 4  ;;  %v3033_v14 = vrot.slane %v3031_v10, 5  ;;  %v3111_v36 = vrot.slane %v3109_v21, 5  ;;  %v5046_v58 = vld [vmem:[#allocation2 + $0x44] sm:$0x1] }
 0x1ca   : > { %v3019_v61 = vrot.slane %v3017_v2, 5  ;;  %v5048_v19 = vld [vmem:[#allocation2 + $0x4c] sm:$0x1]  ;;  %v3101_v2 = vshll.u32 %v5046_v58, 16 }
 0x1cb   : > { %4114 = vmatmul.mubr.msk.bf16.gmra.mrb[0].mxu1 %vm2023_vm12, %v4392_v18  ;;  %v2748_v18 = vrot.slane %v4935_v60, 5  ;;  %v2720_v60 = vld [vmem:[#allocation2 + $0x38] sm:$0xe] }
 0x1cc   : > { %4119 = vmatprep.mubr.msk.bf16.mxu1 %vm2023_vm12, %v3803_v25  ;;  %v3817_v32 = vrot.slane %v2720_v60, 9  ;;  %v3092_v60 = vshrl.u32 %v3003_v13, 16 }
 0x1cd   : > { %v2749_v25 = vsel %vm4877_vm15, %v3813_v17, %v2748_v18  ;;  %v3106_v18 = vshrl.u32 %v3005_v56, 16 }
 0x1ce   : > { %v3821_v26 = vcombine.low %v2749_v25, %v2753_v22  ;;  %v2765_v8 = vsel %vm4877_vm15, %v3817_v32, %v2764_v33  ;;  %v3083_v25 = vrot.slane %v3081_v37, 5  ;;  %v3059_v33 = vshll.u32 %v5028_v57, 16 }
 0x1cf   : > { %v3823_v43 = vcombine.low %v2765_v8, %v2769_v35  ;;  %v3108_v35 = vrot.slane %v3106_v18, 4  ;;  %v3094_v54 = vrot.slane %v3092_v60, 4  ;;  %v3251_v18 = vrot.slane %v5015_v59, 5  ;;  %v3223_v60 = vld [vmem:[#allocation2 + $0x20] sm:$0xe] }
 0x1d0   : > { %v3084_v44 = vor.u32 %v3083_v25, %v3080_v24  ;;  %v3224_v24 = vld [vmem:[#allocation2 + $0x28] sm:$0xe] }
 0x1d1   : > { %v3849_v59 = vrot.slane %v3224_v24, 9 }
 0x1d3   : > { %4120 = vmatmul.mubr.msk.bf16.vlgmr.msra.gmra.mrb[4].mxu1 %vm2023_vm12, %v3804_v53  ;;  %v3027_v53 = vrot.slane %v3025_v45, 5 }
 0x1d4   : > { %4128 = vmatpush3.bf16.msra.mxu1 %v2797_v63  ;;  %4123 = vmatprep.mubr.msk.bf16.mxu1 %vm2023_vm12, %v3805_v27  ;;  %v2995_v63 = vld [vmem:[#allocation2 + $0x20] sm:$0xf]  ;;  %v3050_v27 = vshrl.u32 %v2997_v50, 16 }
 0x1d5   : > { %4347 = vmatprep.subr.msk.bf16.mxu1 %vm2036_vm7, %v3828_v30  ;;  %v3064_v30 = vshrl.u32 %v2999_v51, 16  ;;  %v3036_v62 = vshrl.u32 %v2995_v63, 16  ;;  %v3039_v0 = vshll.u32 %v2995_v63, 16  ;;  %v3028_v31 = vor.u32 %v3027_v53, %v3024_v52 }
 0x1d6   : > { %v3052_v9 = vrot.slane %v3050_v27, 4  ;;  %v3087_v51 = vshll.u32 %v5037_v34, 16  ;;  %v3061_v53 = vrot.slane %v3059_v33, 5  ;;  %v3085_v27 = vrot.slane %v3084_v44, 4 }
 0x1d7   : > { %v3066_v41 = vrot.slane %v3064_v30, 4  ;;  %v3038_v15 = vrot.slane %v3036_v62, 4  ;;  %v3041_v17 = vrot.slane %v3039_v0, 5  ;;  %v3029_v22 = vrot.slane %v3028_v31, 4  ;;  %v3221_v31 = vld [vmem:[#allocation2 + $0x10] sm:$0xe] }
 0x1d8   : > { %v3089_v0 = vrot.slane %v3087_v51, 5 }
 0x1d9   : > { %v3042_v32 = vor.u32 %v3041_v17, %v3038_v15  ;;  %v3034_v42 = vsel %vm4503_vm4, %v3029_v22, %v3033_v14  ;;  %v3247_v15 = vrot.slane %v5012_v16, 5  ;;  %v3225_v16 = vld [vmem:[#allocation2 + $0x30] sm:$0xe]  ;;  %v3226_v14 = vld [vmem:[#allocation2 + $0x38] sm:$0xe] }
 0x1db   : > { %4124 = vmatmul.mubr.msk.bf16.gmra.mrb[0].mxu1 %vm2023_vm12, %v3806_v4  ;;  %v5021_v4 = vld [vmem:[%s5135_s3 + $0x20] sm:$0xf]  ;;  %v3043_v52 = vrot.slane %v3042_v32, 4  ;;  %v3848_v32 = vrot.slane %v3223_v60, 9 }
 0x1dc   : > { %4129 = vmatprep.mubr.msk.bf16.mxu1 %vm2023_vm12, %v3820_v6  ;;  %v3015_v6 = vrot.slane %v3014_v20, 4  ;;  %v3112_v20 = vor.u32 %v3111_v36, %v3108_v35  ;;  %v3304_v37 = vsel %vm2036_vm7, %v5021_v4, 0  ;;  %v3851_v35 = vrot.slane %v3226_v14, 9 }
 0x1dd   : > { %v3267_v36 = vrot.slane %v5037_v34, 5 }
 0x1de   : > { %v3020_v47 = vsel %vm4503_vm4, %v3015_v6, %v3019_v61 }
 0x1df   : > { %v3838_v45 = vcombine.low %v3020_v47, %v3034_v42  ;;  %v3259_v47 = vrot.slane %v5028_v57, 5  ;;  %v3228_v42 = vld [vmem:[#allocation2 + $0x48] sm:$0xe] }
 0x1e0   : > { %v3853_v34 = vrot.slane %v3228_v42, 9 }
 0x1e3   : > { %4130 = vmatmul.mubr.msk.bf16.vlgmr.msra.gmra.mrb[4].mxu1 %vm2023_vm12, %v3821_v26  ;;  %v5030_v26 = vld [vmem:[#allocation2 + $0x24] sm:$0x1] }
 0x1e4   : > { %4138 = vmatpush3.bf16.msra.mxu1 %v2916_v3  ;;  %4133 = vmatprep.mubr.msk.bf16.mxu1 %vm2023_vm12, %v3822_v29  ;;  %v3056_v3 = vor.u32 %v3055_v23, %v3052_v9  ;;  %v3095_v29 = vshll.u32 %v3003_v13, 16  ;;  %v3045_v8 = vshll.u32 %v5030_v26, 16  ;;  %v3113_v9 = vrot.slane %v3112_v20, 4 }
 0x1e5   : > { %4348 = vmatprep.subr.msk.bf16.mxu1 %vm2036_vm7, %v3837_v5  ;;  %v3070_v5 = vor.u32 %v3069_v12, %v3066_v41  ;;  %v3222_v41 = vld [vmem:[#allocation2 + $0x18] sm:$0xe]  ;;  %v3402_v12 = vld [vmem:[%s5137_s5] sm:$0x3]  ;;  %v3846_v13 = vrot.slane %v3221_v31, 9  ;;  %v3255_v33 = vrot.slane %v5030_v26, 5  ;;  %v3268_v26 = vsel %vm4877_vm15, %v3851_v35, %v3267_v36 }
 0x1e6   : > { %v3097_v7 = vrot.slane %v3095_v29, 5  ;;  %v3047_v30 = vrot.slane %v3045_v8, 5  ;;  %v3847_v17 = vrot.slane %v3222_v41, 9  ;;  %v3227_v8 = vld [vmem:[#allocation2 + $0x40] sm:$0xe]  ;;  %v3443_v44 = vsel %vm338_vm0, %v3402_v12, 0 }
 0x1e7   : > { %v3071_v50 = vrot.slane %v3070_v5, 4  ;;  %v3248_v22 = vsel %vm4877_vm15, %v3846_v13, %v3247_v15  ;;  %v3850_v5 = vrot.slane %v3225_v16, 9 }
 0x1e8   : > { %v3098_v56 = vor.u32 %v3097_v7, %v3094_v54  ;;  %v3271_v54 = vrot.slane %v5046_v58, 5  ;;  %v3275_v7 = vrot.slane %v5048_v19, 5  ;;  %v4400_v58 = vld [vmem:[%s4473_s11 + $0x108] ss:$8 sps:$4 sm:$0xff]  }
 0x1e9   : > { %v3264_v57 = vsel %vm4877_vm15, %v3850_v5, %v3263_v40 }
 0x1ea   : > { %v3099_v6 = vrot.slane %v3098_v56, 4  ;;  %v3276_v51 = vsel %vm4877_vm15, %v3853_v34, %v3275_v7 }
 0x1eb   : > { %4134 = vmatmul.mubr.msk.bf16.gmra.mrb[0].mxu1 %vm2023_vm12, %v3823_v43  ;;  %v3073_v43 = vshll.u32 %v5032_v28, 16  ;;  %v3256_v28 = vsel %vm4877_vm15, %v3848_v32, %v3255_v33 }
 0x1ec   : > { %4139 = vmatprep.mubr.msk.bf16.mxu1 %vm2023_vm12, %v4393_v48  ;;  %v3057_v48 = vrot.slane %v3056_v3, 4  ;;  %v3252_v3 = vsel %vm4877_vm15, %v3847_v17, %v3251_v18 }
 0x1ed   : > { %v3075_v63 = vrot.slane %v3073_v43, 5  ;;  %v3855_v29 = vcombine.low %v3248_v22, %v3252_v3 }
 0x1ee   : > { %v3062_v55 = vsel %vm4503_vm4, %v3057_v48, %v3061_v53  ;;  %v3852_v48 = vrot.slane %v3227_v8, 9 }
 0x1ef   : > { %v3076_v62 = vsel %vm4503_vm4, %v3071_v50, %v3075_v63  ;;  %v4398_v63 = vld [vmem:[%s4473_s11 + $0xe8] ss:$8 sps:$4 sm:$0xff]  }
 0x1f0   : > { %v3272_v50 = vsel %vm4877_vm15, %v3852_v48, %v3271_v54 }
 0x1f1   : > { %v3858_v53 = vcombine.low %v3272_v50, %v3276_v51 }
 0x1f3   : > { %4140 = vmatmul.mubr.msk.bf16.vlgmr.msra.gmra.mrb[4].mxu1 %vm2023_vm12, %v4394_v1  ;;  %v3048_v1 = vsel %vm4503_vm4, %v3043_v52, %v3047_v30  ;;  %v4397_v52 = vld [vmem:[%s4473_s11 + $0xd8] ss:$8 sps:$4 sm:$0xff]  }
 0x1f4   : > { %4148 = vmatpush3.bf16.msra.mxu1 %v3146_v38  ;;  %4143 = vmatprep.mubr.msk.bf16.mxu1 %vm2023_vm12, %v4395_v46  ;;  %v3115_v38 = vshll.u32 %v5048_v19, 16  ;;  %v3839_v11 = vcombine.low %v3048_v1, %v3062_v55  ;;  %v3090_v46 = vsel %vm4503_vm4, %v3085_v27, %v3089_v0  ;;  %v4399_v27 = vld [vmem:[%s4473_s11 + $0xf8] ss:$8 sps:$4 sm:$0xff]   ;;  %s3883_s11 = sshll.u32 %s5151_s25, 6 }
 0x1f5   : > { %4349 = vmatprep.subr.msk.bf16.mxu1 %vm2036_vm7, %v5021_v4  ;;  %v3840_v23 = vcombine.low %v3076_v62, %v3090_v46  ;;  %v3103_v4 = vrot.slane %v3101_v2, 5  ;;  %v3863_v55 = vld [vmem:[%s5136_s4] ss:$0 sm:$0xff]  ;;  %s283_s14 = scalar_lea.vmem %s5139_s7, %s3883_s11 }
 0x1f6   : > { %v3117_v10 = vrot.slane %v3115_v38, 5  ;;  %v3872_v62 = vld [vmem:[%s5138_s6] ss:$0 sm:$0xff] }
 0x1f7   : > { %v3104_v21 = vsel %vm4503_vm4, %v3099_v6, %v3103_v4  ;;  %v4193_v17 = vadd.f32 %v3872_v62, %v3863_v55 }
 0x1f8   : > { %v3118_v61 = vsel %vm4503_vm4, %v3113_v9, %v3117_v10 }
 0x1f9   : > { %v3841_v25 = vcombine.low %v3104_v21, %v3118_v61 }
 0x1fb   : > { %4144 = vmatmul.mubr.msk.bf16.gmra.mrb[0].mxu1 %vm2023_vm12, %v4396_v39  ;;  %v3260_v39 = vsel %vm4877_vm15, %v3849_v59, %v3259_v47 }
 0x1fc   : > { %4149 = vmatprep.mubr.msk.bf16.mxu1 %vm2023_vm12, %v3838_v45  ;;  %v3856_v43 = vcombine.low %v3256_v28, %v3260_v39  ;;  %v3857_v45 = vcombine.low %v3264_v57, %v3268_v26 }
 0x203   : > { %4150 = vmatmul.mubr.msk.bf16.vlgmr.msra.gmra.mrb[4].mxu1 %vm2023_vm12, %v3839_v11 }
 0x204   : > { %4158 = vmatpush3.bf16.msra.mxu1 %v3304_v37  ;;  %4153 = vmatprep.mubr.msk.bf16.mxu1 %vm2023_vm12, %v3840_v23 }
 0x205   : > { %4350 = vmatprep.subr.msk.bf16.mxu1 %vm338_vm0, %v3402_v12 }
 0x20b   : > { %4154 = vmatmul.mubr.msk.bf16.gmra.mrb[0].mxu1 %vm2023_vm12, %v3841_v25 }
 0x20c   : > { %4159 = vmatprep.mubr.msk.bf16.mxu1 %vm2023_vm12, %v3855_v29 }
 0x213   : > { %4160 = vmatmul.mubr.msk.bf16.vlgmr.msra.gmra.mrb[4].mxu1 %vm2023_vm12, %v3856_v43 }
 0x214   : > { %4168 = vmatpush3.bf16.msra.mxu1 %v3443_v44  ;;  %4163 = vmatprep.mubr.msk.bf16.mxu1 %vm2023_vm12, %v3857_v45 }
 0x21b   : > { %4164 = vmatmul.mubr.msk.bf16.gmra.mrb[0].mxu1 %vm2023_vm12, %v3858_v53 }
 0x21c   : > { %4169 = vmatprep.mubr.msk.bf16.mxu1 %vm325_vm1, %v4397_v52 }
 0x223   : > { %4170 = vmatmul.mubr.msk.bf16.vlgmr.msra.gmra.mrb[4].mxu1 %vm325_vm1, %v4398_v63 }
 0x224   : > { %4173 = vmatprep.mubr.msk.bf16.mxu1 %vm325_vm1, %v4399_v27 }
 0x22b   : > { %4174 = vmatmul.mubr.msk.bf16.gmra.mrb[0].mxu1 %vm325_vm1, %v4400_v58 }
 0x264   : > { %v4081_v19 = vpop.f32.mrb[8].mxu0 }
 0x265   : > { %v2074_v49 = vpop.f32.mrb[9].mxu0  ;;  %v4179_v0 = vadd.f32 %v4081_v19, %v3863_v55 }
 0x266   : > { %v4082_v20 = vpop.f32.mrb[10].mxu0  ;;  %v4182_v1 = vadd.f32 %v3863_v55, %v2074_v49 }
 0x267   : > { %v2077_v30 = vpop.f32.mrb[11].mxu0  ;;  %v4185_v56 = vadd.f32 %v4082_v20, %v3863_v55 }
 0x268   : > { %v4188_v38 = vadd.f32 %v3863_v55, %v2077_v30 }
 0x269   : > { %v4186_v37 = vadd.f32 %v4185_v56, %v3872_v62 }
 0x26a   : > { %v4189_v23 = vadd.f32 %v4188_v38, %v3872_v62 }
 0x2f6   : > { %v4171_v2 = vpop.f32.mrb[4].mxu1 }
 0x2f7   : > { %v4180_v31 = vadd.f32 %v4179_v0, %v4171_v2  ;;  %v3479_v11 = vpop.f32.mrb[5].mxu1 }
 0x2f8   : > { %v4183_v46 = vadd.f32 %v4182_v1, %v3479_v11  ;;  %v4172_v9 = vpop.f32.mrb[6].mxu1 }
 0x2f9   : > { %v4181_v6 = vadd.f32 %v4180_v31, %v3872_v62  ;;  %v4187_v10 = vadd.f32 %v4186_v37, %v4172_v9  ;;  %v3482_v41 = vpop.f32.mrb[7].mxu1 }
 0x2fa   : > { %v4184_v12 = vadd.f32 %v4183_v46, %v3872_v62  ;;  %v4190_v13 = vadd.f32 %v4189_v23, %v3482_v41 }
 0x2fb   : > { %v3520_v15 = vmax.f32 %v4181_v6, 0.0  ;;  %v3521_v4 = vmax.f32 %v4187_v10, 0.0 }
 0x2fc   : > { %v3518_v18 = vmax.f32 %v4184_v12, 0.0  ;;  %v3519_v21 = vmax.f32 %v4190_v13, 0.0 }
 0x2fd   : > { %3528 = vst.msk [vmem:[%s283_s14 + $0x10] sm:$0xff] %vm2023_vm12, %v3520_v15  ;;  %3529 = vst.msk [vmem:[%s283_s14 + $0x18] sm:$0xff] %vm2023_vm12, %v3521_v4 }
 0x2fe   : > { %3526 = vst.msk [vmem:[%s283_s14] sm:$0xff] %vm2023_vm12, %v3518_v18  ;;  %3527 = vst.msk [vmem:[%s283_s14 + $0x8] sm:$0xff] %vm2023_vm12, %v3519_v21  ;;  %v4175_v61 = vpop.f32.mrb[0].mxu1 }
 0x2ff   : > { %v4192_v22 = vadd.f32 %v4193_v17, %v4175_v61  ;;  %v3495_v24 = vpop.f32.mrb[1].mxu1 }
 0x300   : > { %v4194_v16 = vadd.f32 %v4193_v17, %v3495_v24  ;;  %v4176_v25 = vpop.f32.mrb[2].mxu1 }
 0x301   : > { %v3524_v3 = vmax.f32 %v4192_v22, 0.0  ;;  %v4196_v60 = vadd.f32 %v4193_v17, %v4176_v25  ;;  %v3498_v29 = vpop.f32.mrb[3].mxu1 }
 0x302   : > { %v3522_v59 = vmax.f32 %v4194_v16, 0.0  ;;  %v4198_v47 = vadd.f32 %v4193_v17, %v3498_v29 }
 0x303   : > { %3532 = vst.msk [vmem:[%s283_s14 + $0x30] sm:$0xff] %vm2023_vm12, %v3524_v3  ;;  %v3525_v14 = vmax.f32 %v4196_v60, 0.0 }
 0x304   : > { %3530 = vst.msk [vmem:[%s283_s14 + $0x20] sm:$0xff] %vm2023_vm12, %v3522_v59  ;;  %v3523_v5 = vmax.f32 %v4198_v47, 0.0 }
 0x305   : > { %3533 = vst.msk [vmem:[%s283_s14 + $0x38] sm:$0xff] %vm2023_vm12, %v3525_v14 }
 0x306   : > { %3531 = vst.msk [vmem:[%s283_s14 + $0x28] sm:$0xff] %vm2023_vm12, %v3523_v5 }
 0x307 PF: > { %s17_s24 = sadd.s32 1, %s4407_s24  }
 0x308   : > { %p14_p5 = scmp.ge.s32.totalorder %s17_s24, 4  }
 0x30a   :  { %16 = sbr.rel (!%p14_p5) target bundleno = 1 (0x1), region = 101 }

</bundles_post_ra>
